<compile_context>
chip_gen: v6e
topology: v6e:2x2x1
jax: 0.10.0
libtpu: 0.0.40
codegen_flags: <defaults>
</compile_context>

<pallas_src>
import math
import numpy as np
import jax
import jax.numpy as jnp
from jax import lax
from jax.experimental import pallas as pl
from jax.experimental.pallas import tpu as pltpu

HIDDEN      = 32                                  # BiLSTM hidden size per direction
EMBED       = 48                                  # stubbed text-embedder output size
LABEL_EMBED = 10
BOUND_EMBED = 10
SPAN_DIM    = 2 * HIDDEN + BOUND_EMBED            # 74  (hidden*2 + bound_embed)
NS_ITOS     = ['<pad>', 'NN', 'NS', 'SN']
RELA_ITOS   = ['<pad>', 'Elaboration', 'Attribution', 'Joint', 'Same-Unit', 'Contrast']
FEAT_DIM    = SPAN_DIM * 4 + LABEL_EMBED * 2      # 316 (use_parent_label=True)


def _round_up(x, m):
    return (x + m - 1) // m * m


# ---------------------------------------------------------------------------
# Pallas kernels
# ---------------------------------------------------------------------------

def span_precompute_kernel(h_ref, ids_ref, wfb_ref, wbnd_ref, bias_ref, wsec_ref,
                           p_ref, ug_ref, hg_ref):
    """One M-tile of span embeddings + every downstream projection, fully fused on the MXU.

    h_ref    : (1, Np+1, 2H) f32  edge-padded BiLSTM output (row 0 and rows > n are zero)
    ids_ref  : (1, TM, 3) int32   [l, r, boundary bucket (-1 for degenerate spans)]
    wfb_ref  : (64, 512)  bf16    forward/backward span rows of the packed weight
    wbnd_ref : (16, 512)  bf16    bound_tab @ boundary rows of the packed weight (host-folded)
    bias_ref : (1, 512)   f32     bias row: zeros | bl | 1 | 0 | br | 1 | 0
    wsec_ref : (256, 256) bf16    second projection: [hl->hl@W, hl.vl, 1 | hr->hr, 1, hr.vr+b]
    p_ref    : (1, TM, 256) bf16  span @ [W1_a|W1_b|W1_c|W1_d] (fused f_ns/f_rela first layer)
    ug_ref   : (1, TM, 128) bf16  [hl@W | hl.vl | 1 | 0...]    (augmented biaffine left operand)
    hg_ref   : (1, TM, 128) bf16  [hr   | 1 | hr.vr + b | 0..] (augmented biaffine right operand)
    """
    Np = h_ref.shape[1] - 1
    TM = ids_ref.shape[1]
    h = h_ref[0]                                         # (Np+1, 2H)
    fwd = h[0:Np, 0:HIDDEN]                              # rows 0..Np-1, forward half
    nbwd = -h[1:Np + 1, HIDDEN:]                         # rows 1..Np, backward half (negated)
    fb_tab = jnp.concatenate([fwd, nbwd], axis=1).astype(jnp.bfloat16)   # (Np, 2H)

    ids = ids_ref[0]
    l_col = ids[:, 0:1]
    r_col = ids[:, 1:2]
    b_col = ids[:, 2:3]

    # Selector one-hots rebuilt in-register from iota, in bf16 (MXU-native, half the VMEM).
    j_np = lax.broadcasted_iota(jnp.int32, (TM, Np), 1)
    diff = (j_np == r_col).astype(jnp.bfloat16) - (j_np == l_col).astype(jnp.bfloat16)
    j_16 = lax.broadcasted_iota(jnp.int32, (TM, 16), 1)
    bsel = (j_16 == b_col).astype(jnp.bfloat16)          # all-zero row when bucket == -1

    # fb[:, :H] = fwd[r] - fwd[l];  fb[:, H:] = bwd[l+1] - bwd[r+1]
    fb = jnp.dot(diff, fb_tab, preferred_element_type=jnp.float32)        # (TM, 2H)

    # TODO(synk): DeepBiAffine internals are not in the provided source; assumed standard deep
    # biaffine: ReLU MLP projections + bilinear + linear terms + bias (dropout = eval no-op).
    big = (jnp.dot(fb.astype(jnp.bfloat16), wfb_ref[...],
                   preferred_element_type=jnp.float32)
           + jnp.dot(bsel, wbnd_ref[...], preferred_element_type=jnp.float32)
           + bias_ref[...])                                               # (TM, 512)

    p_ref[0] = big[:, 0:256].astype(jnp.bfloat16)

    # cols 256..511 of big: [span@Wl+bl | 1 | 0... | span@Wr+br | 1 | 0...] (128-lane aligned).
    sec_in = jnp.maximum(big[:, 256:512], 0.0).astype(jnp.bfloat16)       # relu -> [hl|1|0|hr|1|0]
    sec = jnp.dot(sec_in, wsec_ref[...], preferred_element_type=jnp.float32)  # (TM, 256)
    ug_ref[0] = sec[:, 0:128].astype(jnp.bfloat16)
    hg_ref[0] = sec[:, 128:256].astype(jnp.bfloat16)


def split_argmax_kernel(ug_ref, hg_ref, bs_ref, bk_ref):
    """Best split per (l, r): running max / argmax over TK split points per grid step.

    ug_ref : (1, P8, TK*128) bf16  augmented left operands; lane block kk holds span (l, k)
    hg_ref : (1, TK, P8, 128) bf16 augmented right operands for spans (k, r)
    bs/bk  : (1, P8, P8) best biaffine score / best k per (l, r); used directly as the
             cross-grid-step accumulators (same output block across the k axis).
    """
    kblk = pl.program_id(1)
    P8 = bs_ref.shape[1]
    TK = hg_ref.shape[1]

    @pl.when(kblk == 0)
    def _():
        bs_ref[0] = jnp.full((P8, P8), -3.0e38, jnp.float32)
        bk_ref[0] = jnp.zeros((P8, P8), jnp.int32)

    l_idx = lax.broadcasted_iota(jnp.int32, (P8, P8), 0)
    r_idx = lax.broadcasted_iota(jnp.int32, (P8, P8), 1)

    ug = ug_ref[0]                                       # (P8, TK*128)
    hg = hg_ref[0]                                       # (TK, P8, 128)
    bs = bs_ref[0]
    bk = bk_ref[0]
    for kk in range(TK):                                 # static -> fully unrolled
        k = kblk * TK + kk
        ug_k = ug[:, kk * 128:(kk + 1) * 128]            # (P8, 128), 128-lane aligned slice
        hg_k = hg[kk]                                    # (P8, 128)
        s = lax.dot_general(ug_k, hg_k, (((1,), (1,)), ((), ())),
                            preferred_element_type=jnp.float32)          # (P8, P8)
        upd = (l_idx < k) & (k < r_idx) & (s > bs)       # strict '>' keeps the first argmax
        bs = jnp.where(upd, s, bs)
        bk = jnp.where(upd, k, bk)
    bs_ref[0] = bs
    bk_ref[0] = bk


# ---------------------------------------------------------------------------
# Device pipeline: exactly 2 pallas_calls per batch
# ---------------------------------------------------------------------------

@jax.jit
def device_pipeline(h_batch, ids, w_fb, w_bnd, bias, wsec):
    B, Tp, _ = h_batch.shape
    Np = Tp - 1
    M_pad = ids.shape[1]
    P8 = math.isqrt(M_pad)                               # padded EDU-index extent (mult of 8)

    # M-tile size: whole doc if small, else 8 full "l rows" (= 8*P8 spans) per step.
    TM = M_pad if M_pad <= 2048 else 8 * P8
    grid_m = M_pad // TM

    flops1 = 2 * B * M_pad * (Np * 64 + 64 * 512 + 16 * 512 + 256 * 256)
    bytes1 = (h_batch.size * 4 + ids.size * 4 + bias.size * 4
              + (w_fb.size + w_bnd.size + wsec.size) * 2
              + B * M_pad * (256 + 128 + 128) * 2)

    p_tab, ug, hg = pl.pallas_call(
        span_precompute_kernel,
        grid=(B, grid_m),
        in_specs=[
            pl.BlockSpec((1, Tp, 2 * HIDDEN), lambda b, m: (b, 0, 0)),
            pl.BlockSpec((1, TM, 3), lambda b, m: (b, m, 0)),
            pl.BlockSpec(w_fb.shape, lambda b, m: (0, 0)),
            pl.BlockSpec(w_bnd.shape, lambda b, m: (0, 0)),
            pl.BlockSpec(bias.shape, lambda b, m: (0, 0)),
            pl.BlockSpec(wsec.shape, lambda b, m: (0, 0)),
        ],
        out_specs=(
            pl.BlockSpec((1, TM, 256), lambda b, m: (b, m, 0)),
            pl.BlockSpec((1, TM, 128), lambda b, m: (b, m, 0)),
            pl.BlockSpec((1, TM, 128), lambda b, m: (b, m, 0)),
        ),
        out_shape=(
            jax.ShapeDtypeStruct((B, M_pad, 256), jnp.bfloat16),
            jax.ShapeDtypeStruct((B, M_pad, 128), jnp.bfloat16),
            jax.ShapeDtypeStruct((B, M_pad, 128), jnp.bfloat16),
        ),
        compiler_params=pltpu.CompilerParams(
            dimension_semantics=("parallel", "parallel"),
            vmem_limit_bytes=32 * 1024 * 1024),
        cost_estimate=pl.CostEstimate(flops=flops1, transcendentals=0,
                                      bytes_accessed=bytes1),
    )(h_batch, ids, w_fb, w_bnd, bias, wsec)

    # Free (layout-preserving) reshapes only: no transpose, no pad, no extra HBM passes.
    ug2 = ug.reshape(B, P8, P8 * 128)                    # lane block k holds span (l, k)
    hg4 = hg.reshape(B, P8, P8, 128)                     # [b, k, r, :]

    TK = 8
    KT = P8 // TK
    flops2 = 2 * B * P8 * P8 * P8 * 128
    bytes2 = 2 * B * M_pad * 128 * 2 + B * P8 * P8 * 8

    best_s, best_k = pl.pallas_call(
        split_argmax_kernel,
        grid=(B, KT),
        in_specs=[
            pl.BlockSpec((1, P8, TK * 128), lambda b, k: (b, 0, k)),
            pl.BlockSpec((1, TK, P8, 128), lambda b, k: (b, k, 0, 0)),
        ],
        out_specs=(
            pl.BlockSpec((1, P8, P8), lambda b, k: (b, 0, 0)),
            pl.BlockSpec((1, P8, P8), lambda b, k: (b, 0, 0)),
        ),
        out_shape=(
            jax.ShapeDtypeStruct((B, P8, P8), jnp.float32),
            jax.ShapeDtypeStruct((B, P8, P8), jnp.int32),
        ),
        compiler_params=pltpu.CompilerParams(
            dimension_semantics=("parallel", "arbitrary"),
            vmem_limit_bytes=32 * 1024 * 1024),
        cost_estimate=pl.CostEstimate(flops=flops2, transcendentals=0,
                                      bytes_accessed=bytes2),
    )(ug2, hg4)
    return p_tab, best_s, best_k


# ---------------------------------------------------------------------------
# Parameter packing (done once per forward, plain JAX / numpy)
# ---------------------------------------------------------------------------

def prep_device_weights(params):
    bi = params['biaffine']
    w1 = jnp.concatenate([params['f_ns']['W1'], params['f_rela']['W1']], axis=1)  # (316, 64)
    s, le = SPAN_DIM, LABEL_EMBED
    w1_spans = jnp.concatenate(
        [w1[0:s], w1[s:2 * s], w1[2 * s + 2 * le:3 * s + 2 * le], w1[3 * s + 2 * le:]],
        axis=1)                                                                    # (74, 256)
    # 512-lane packed weight: [W1 slots (0:256) | Wl (256:288) | 1-col (288) | Wr (384:416) | 1-col (416)]
    wspan = jnp.zeros((SPAN_DIM, 512), jnp.float32)
    wspan = wspan.at[:, 0:256].set(w1_spans)
    wspan = wspan.at[:, 256:288].set(bi['Wl'])
    wspan = wspan.at[:, 384:416].set(bi['Wr'])
    bias = jnp.zeros((1, 512), jnp.float32)
    bias = bias.at[:, 256:288].set(bi['bl'])
    bias = bias.at[:, 288].set(1.0)
    bias = bias.at[:, 384:416].set(bi['br'])
    bias = bias.at[:, 416].set(1.0)
    w_fb = wspan[0:2 * HIDDEN].astype(jnp.bfloat16)                                # (64, 512)
    w_bnd = (params['bound_tab'] @ wspan[2 * HIDDEN:SPAN_DIM]).astype(jnp.bfloat16)  # (16, 512)

    # Second projection: input = [hl | 1 | 0.. | hr | 1 | 0..] (256), output = [ug | hg] (256).
    wsec = jnp.zeros((256, 256), jnp.float32)
    wsec = wsec.at[0:HIDDEN, 0:HIDDEN].set(bi['W'])                 # ug[:, :32]  = hl @ W
    wsec = wsec.at[0:HIDDEN, HIDDEN].set(bi['vl'][0])               # ug[:, 32]   = hl . vl
    wsec = wsec.at[HIDDEN, HIDDEN + 1].set(1.0)                     # ug[:, 33]   = 1
    wsec = wsec.at[128:128 + HIDDEN, 128:128 + HIDDEN].set(jnp.eye(HIDDEN, dtype=jnp.float32))
    wsec = wsec.at[128 + HIDDEN, 128 + HIDDEN].set(1.0)             # hg[:, 32]   = 1
    wsec = wsec.at[128:128 + HIDDEN, 128 + HIDDEN + 1].set(bi['vr'][0])
    wsec = wsec.at[128 + HIDDEN, 128 + HIDDEN + 1].set(bi['b'][0, 0])  # hg[:, 33] = hr.vr + b
    wsec = wsec.astype(jnp.bfloat16)
    return w_fb, w_bnd, bias, wsec


def prep_host_tables(params):
    w1 = np.asarray(jnp.concatenate([params['f_ns']['W1'], params['f_rela']['W1']], axis=1))
    lab = w1[2 * SPAN_DIM:2 * SPAN_DIM + 2 * LABEL_EMBED]                 # (20, 64)
    return dict(
        ns_proj=np.asarray(params['ns_tab']) @ lab[:LABEL_EMBED],        # (4, 64)
        rela_proj=np.asarray(params['rela_tab']) @ lab[LABEL_EMBED:],    # (6, 64)
        b1=np.concatenate([np.asarray(params['f_ns']['b1'])[0],
                           np.asarray(params['f_rela']['b1'])[0]]),      # (64,)
        W2ns=np.asarray(params['f_ns']['W2']), b2ns=np.asarray(params['f_ns']['b2'])[0],
        W2re=np.asarray(params['f_rela']['W2']), b2re=np.asarray(params['f_rela']['b2'])[0])


def build_ids(starts_sentence, starts_paragraph, n, P8):
    """(P8*P8, 3) int32 [l, r, boundary bucket]; bucket = -1 => zero boundary embedding.
    Padded rows (l >= r, or l/r beyond the real document) are never read downstream."""
    ss = np.zeros(P8, np.int64)
    sp = np.zeros(P8, np.int64)
    ss[:n] = np.asarray(starts_sentence[:n], dtype=bool)
    sp[:n] = np.asarray(starts_paragraph[:n], dtype=bool)
    cs = np.concatenate([[0], np.cumsum(ss)])
    cp = np.concatenate([[0], np.cumsum(sp)])
    l = np.repeat(np.arange(P8), P8)
    r = np.tile(np.arange(P8), P8)
    bucket = (ss[l] + 2 * sp[l]
              + 4 * (cs[r] - cs[l + 1] > 0).astype(np.int64)
              + 8 * (cp[r] - cp[l + 1] > 0).astype(np.int64))
    bucket = np.where(l < r, bucket, -1)
    return np.stack([l, r, bucket], axis=1).astype(np.int32)


# ---------------------------------------------------------------------------
# Plain-JAX glue: BiLSTM, parameter init
# ---------------------------------------------------------------------------

def lstm_dir(xs, Wx, Wh, b):
    Hh = Wh.shape[0]

    def step(carry, x):
        h, c = carry
        z = x @ Wx + h @ Wh + b
        i, f, g, o = jnp.split(z, 4)
        i = jax.nn.sigmoid(i); f = jax.nn.sigmoid(f)
        g = jnp.tanh(g);       o = jax.nn.sigmoid(o)
        c = f * c + i * g
        h = o * jnp.tanh(c)
        return (h, c), h

    _, hs = lax.scan(step, (jnp.zeros(Hh), jnp.zeros(Hh)), xs)
    return hs


# TODO(synk): the external text_embedder and the sequential BiLSTM recurrence stay in plain
# JAX (lax.scan); they are not the span-scoring hot path targeted by the kernels.
def bilstm(xs, p):
    hf = lstm_dir(xs, p['Wxf'], p['Whf'], p['bf'])
    hb = lstm_dir(xs[::-1], p['Wxb'], p['Whb'], p['bb'])[::-1]
    return jnp.concatenate([hf, hb], axis=-1)


def init_params(key):
    ks = iter(jax.random.split(key, 32))

    def nrm(shape, s=0.1):
        return s * jax.random.normal(next(ks), shape, jnp.float32)

    p = {}
    p['bilstm'] = dict(
        Wxf=nrm((EMBED, 4 * HIDDEN)), Whf=nrm((HIDDEN, 4 * HIDDEN)), bf=nrm((4 * HIDDEN,)),
        Wxb=nrm((EMBED, 4 * HIDDEN)), Whb=nrm((HIDDEN, 4 * HIDDEN)), bb=nrm((4 * HIDDEN,)))
    p['bound_tab'] = nrm((16, BOUND_EMBED), 0.5)
    p['ns_tab'] = nrm((len(NS_ITOS), LABEL_EMBED), 0.5).at[0].set(0.0)      # padding_idx
    p['rela_tab'] = nrm((len(RELA_ITOS), LABEL_EMBED), 0.5).at[0].set(0.0)  # padding_idx
    p['biaffine'] = dict(
        Wl=nrm((SPAN_DIM, HIDDEN)), bl=nrm((1, HIDDEN)),
        Wr=nrm((SPAN_DIM, HIDDEN)), br=nrm((1, HIDDEN)),
        W=nrm((HIDDEN, HIDDEN)), vl=nrm((1, HIDDEN)), vr=nrm((1, HIDDEN)), b=nrm((1, 1)))
    p['f_ns'] = dict(W1=nrm((FEAT_DIM, HIDDEN)), b1=nrm((1, HIDDEN)),
                     W2=nrm((HIDDEN, len(NS_ITOS))), b2=nrm((1, len(NS_ITOS))))
    p['f_rela'] = dict(W1=nrm((FEAT_DIM, HIDDEN)), b1=nrm((1, HIDDEN)),
                       W2=nrm((HIDDEN, len(RELA_ITOS))), b2=nrm((1, len(RELA_ITOS))))
    return p


# ---------------------------------------------------------------------------
# Greedy decode on precomputed tables (pure numpy, zero device round-trips)
# ---------------------------------------------------------------------------

def decode_doc(p_tab, best_s, best_k, n, P8, parent_label, tabs):
    def label_ids(label):
        if label is None:
            return 0, 0
        return NS_ITOS.index(label[0]), RELA_ITOS.index(label[1])

    def helper(left, right, plabel):
        if right - left == 1:
            # TODO(synk): rsttree.LeafParseNode / convert().linearize() are external;
            # emit a simple bracketed string instead of the RST tree object.
            return '(text {})'.format(left), 0.0
        split = int(best_k[left, right])
        split_loss = float(best_s[left, right])                       # eval-mode predict_split
        ns_i, re_i = label_ids(plabel)
        # Feature FF first layer = sum of 5 precomputed projections (+ bias), fused ns|rela.
        h = (p_tab[left * P8 + split, 0:64] + p_tab[split * P8 + right, 64:128]
             + p_tab[left, 128:192] + p_tab[right * P8 + n, 192:256]
             + tabs['ns_proj'][ns_i] + tabs['rela_proj'][re_i] + tabs['b1'])
        h = np.maximum(h, 0.0)
        ns_scores = h[:HIDDEN] @ tabs['W2ns'] + tabs['b2ns']
        re_scores = h[HIDDEN:] @ tabs['W2re'] + tabs['b2re']

        def pick(scores):                                             # eval-mode predict_label
            if right - left < n:
                idx = int(scores.argmax())
            else:
                idx = int(scores[1:].argmax()) + 1
            return idx, float(scores[idx])

        ns_idx, ns_loss = pick(ns_scores)
        re_idx, re_loss = pick(re_scores)
        ns, rela = NS_ITOS[ns_idx], RELA_ITOS[re_idx]
        l_tree, l_loss = helper(left, split, (ns, rela))
        r_tree, r_loss = helper(split, right, (ns, rela))
        tree = '({}:{} {} {})'.format(ns, rela, l_tree, r_tree)
        return tree, ns_loss + re_loss + split_loss + l_loss + r_loss  # label_type == 'full'

    return helper(0, n, parent_label)


def forward(batch, params):
    w_fb, w_bnd, bias, wsec = prep_device_weights(params)
    tabs = prep_host_tables(params)
    n_list = [int(doc['edu_embed'].shape[0]) for doc in batch]
    n_max = max(n_list)
    Np = n_max + 1
    P8 = _round_up(Np, 8)                                              # padded span-index extent
    Tp = Np + 1

    h_list, ids_list = [], []
    for doc, n in zip(batch, n_list):
        rnn = bilstm(doc['edu_embed'], params['bilstm'])               # (n, 2H)
        h_list.append(jnp.pad(rnn, ((1, Tp - 1 - n), (0, 0))))         # nn.ZeroPad2d((0,0,1,1))
        ids_list.append(build_ids(doc['starts_sentence'], doc['starts_paragraph'], n, P8))
    h_batch = jnp.stack(h_list)                                        # (B, Tp, 2H)
    ids = jnp.asarray(np.stack(ids_list))                              # (B, P8*P8, 3)

    p_tab, best_s, best_k = device_pipeline(h_batch, ids, w_fb, w_bnd, bias, wsec)
    p_bf, bs_np, bk_np = jax.device_get((p_tab, best_s, best_k))       # single host sync
    p_np = np.asarray(p_bf).astype(np.float32)

    losses, trees = [], []
    for i, (doc, n) in enumerate(zip(batch, n_list)):
        tree, loss = decode_doc(p_np[i], bs_np[i], bk_np[i], n, P8, doc['parent_label'], tabs)
        trees.append(tree)
        losses.append(loss)
    loss = jnp.mean(jnp.asarray(losses, dtype=jnp.float32))
    return {'loss': loss, 'tree': trees}


if __name__ == '__main__':
    key = jax.random.PRNGKey(0)
    pkey, d0, d1 = jax.random.split(key, 3)
    params = init_params(pkey)
    batch = [
        dict(edu_embed=0.5 * jax.random.normal(d0, (8, EMBED), jnp.float32),
             starts_sentence=[i % 3 == 0 for i in range(8)],
             starts_paragraph=[i % 4 == 0 for i in range(8)],
             parent_label=None),
        dict(edu_embed=0.5 * jax.random.normal(d1, (6, EMBED), jnp.float32),
             starts_sentence=[i % 2 == 0 for i in range(6)],
             starts_paragraph=[i == 0 for i in range(6)],
             parent_label=None),
    ]
    out = forward(batch, params)
    jax.block_until_ready(out['loss'])
    print("KERNEL_OK")
</pallas_src>

<mosaic_0001>
module attributes {stable_mosaic.version = 11 : i64} {
  func.func @span_precompute_kernel(%arg0: i32, %arg1: i32, %arg2: memref<1x10x64xf32, #tpu.memory_space<vmem>>, %arg3: memref<1x256x3xi32, #tpu.memory_space<vmem>>, %arg4: memref<64x512xbf16, #tpu.memory_space<vmem>>, %arg5: memref<16x512xbf16, #tpu.memory_space<vmem>>, %arg6: memref<1x512xf32, #tpu.memory_space<vmem>>, %arg7: memref<256x256xbf16, #tpu.memory_space<vmem>>, %arg8: memref<1x256x256xbf16, #tpu.memory_space<vmem>>, %arg9: memref<1x256x128xbf16, #tpu.memory_space<vmem>>, %arg10: memref<1x256x128xbf16, #tpu.memory_space<vmem>>) attributes {dimension_semantics = [#tpu.dimension_semantics<parallel>, #tpu.dimension_semantics<parallel>], iteration_bounds = array<i64: 2, 1>, scalar_prefetch = 0 : i64, scratch_operands = 0 : i64, tpu.core_type = #tpu.core_type<tc>, window_params = [{transform_indices = @transform_0, window_bounds = array<i64: 1, 10, 64>}, {transform_indices = @transform_1, window_bounds = array<i64: 1, 256, 3>}, {pipeline_mode = #tpu.pipeline_mode<synchronous>, transform_indices = @transform_2, window_bounds = array<i64: 64, 512>}, {pipeline_mode = #tpu.pipeline_mode<synchronous>, transform_indices = @transform_3, window_bounds = array<i64: 16, 512>}, {pipeline_mode = #tpu.pipeline_mode<synchronous>, transform_indices = @transform_4, window_bounds = array<i64: 1, 512>}, {pipeline_mode = #tpu.pipeline_mode<synchronous>, transform_indices = @transform_5, window_bounds = array<i64: 256, 256>}, {transform_indices = @transform_6, window_bounds = array<i64: 1, 256, 256>}, {transform_indices = @transform_7, window_bounds = array<i64: 1, 256, 128>}, {transform_indices = @transform_8, window_bounds = array<i64: 1, 256, 128>}]} {
    %c0 = arith.constant 0 : index
    %c0_0 = arith.constant 0 : index
    %c0_1 = arith.constant 0 : index
    %0 = vector.load %arg2[%c0, %c0_0, %c0_1] : memref<1x10x64xf32, #tpu.memory_space<vmem>>, vector<1x10x64xf32>
    %1 = vector.shape_cast %0 : vector<1x10x64xf32> to vector<10x64xf32>
    %2 = vector.extract_strided_slice %1 {offsets = [0, 0], sizes = [9, 32], strides = [1, 1]} : vector<10x64xf32> to vector<9x32xf32>
    %3 = vector.extract_strided_slice %1 {offsets = [1, 32], sizes = [9, 32], strides = [1, 1]} : vector<10x64xf32> to vector<9x32xf32>
    %cst = arith.constant 0.000000e+00 : f32
    %4 = vector.broadcast %cst : f32 to vector<9x32xf32>
    %5 = arith.subf %4, %3 : vector<9x32xf32>
    %6 = tpu.concatenate %2, %5 in 1 : vector<9x32xf32>, vector<9x32xf32> -> vector<9x64xf32>
    %7 = arith.truncf %6 : vector<9x64xf32> to vector<9x64xbf16>
    %c0_2 = arith.constant 0 : index
    %c0_3 = arith.constant 0 : index
    %c0_4 = arith.constant 0 : index
    %8 = vector.load %arg3[%c0_2, %c0_3, %c0_4] : memref<1x256x3xi32, #tpu.memory_space<vmem>>, vector<1x256x3xi32>
    %9 = vector.shape_cast %8 : vector<1x256x3xi32> to vector<256x3xi32>
    %10 = vector.extract_strided_slice %9 {offsets = [0, 0], sizes = [256, 1], strides = [1, 1]} : vector<256x3xi32> to vector<256x1xi32>
    %11 = vector.extract_strided_slice %9 {offsets = [0, 1], sizes = [256, 1], strides = [1, 1]} : vector<256x3xi32> to vector<256x1xi32>
    %12 = vector.extract_strided_slice %9 {offsets = [0, 2], sizes = [256, 1], strides = [1, 1]} : vector<256x3xi32> to vector<256x1xi32>
    %13 = tpu.iota {dimensions = array<i32: 1>} : vector<256x9xi32>
    %14 = vector.broadcast %11 : vector<256x1xi32> to vector<256x9xi32>
    %15 = arith.cmpi eq, %13, %14 : vector<256x9xi32>
    %16 = arith.extui %15 : vector<256x9xi1> to vector<256x9xi32>
    %17 = arith.sitofp %16 : vector<256x9xi32> to vector<256x9xf32>
    %18 = arith.truncf %17 : vector<256x9xf32> to vector<256x9xbf16>
    %19 = vector.broadcast %10 : vector<256x1xi32> to vector<256x9xi32>
    %20 = arith.cmpi eq, %13, %19 : vector<256x9xi32>
    %21 = arith.extui %20 : vector<256x9xi1> to vector<256x9xi32>
    %22 = arith.sitofp %21 : vector<256x9xi32> to vector<256x9xf32>
    %23 = arith.truncf %22 : vector<256x9xf32> to vector<256x9xbf16>
    %24 = arith.subf %18, %23 : vector<256x9xbf16>
    %25 = tpu.iota {dimensions = array<i32: 1>} : vector<256x16xi32>
    %26 = vector.broadcast %12 : vector<256x1xi32> to vector<256x16xi32>
    %27 = arith.cmpi eq, %25, %26 : vector<256x16xi32>
    %28 = arith.extui %27 : vector<256x16xi1> to vector<256x16xi32>
    %29 = arith.sitofp %28 : vector<256x16xi32> to vector<256x16xf32>
    %30 = arith.truncf %29 : vector<256x16xf32> to vector<256x16xbf16>
    %cst_5 = arith.constant dense<0.000000e+00> : vector<256x64xf32>
    %31 = tpu.matmul %24, %7, %cst_5 {dimension_numbers = #tpu.dot_dimension_numbers<[1], [0], [0], [1], [0, 0, 1, 1], [], []>} : vector<256x9xbf16>, vector<9x64xbf16>, vector<256x64xf32> -> vector<256x64xf32>
    %32 = arith.truncf %31 : vector<256x64xf32> to vector<256x64xbf16>
    %c0_6 = arith.constant 0 : index
    %c0_7 = arith.constant 0 : index
    %33 = vector.load %arg4[%c0_6, %c0_7] : memref<64x512xbf16, #tpu.memory_space<vmem>>, vector<64x512xbf16>
    %cst_8 = arith.constant dense<0.000000e+00> : vector<256x512xf32>
    %34 = tpu.matmul %32, %33, %cst_8 {dimension_numbers = #tpu.dot_dimension_numbers<[1], [0], [0], [1], [0, 0, 1, 1], [], []>} : vector<256x64xbf16>, vector<64x512xbf16>, vector<256x512xf32> -> vector<256x512xf32>
    %c0_9 = arith.constant 0 : index
    %c0_10 = arith.constant 0 : index
    %35 = vector.load %arg5[%c0_9, %c0_10] : memref<16x512xbf16, #tpu.memory_space<vmem>>, vector<16x512xbf16>
    %cst_11 = arith.constant dense<0.000000e+00> : vector<256x512xf32>
    %36 = tpu.matmul %30, %35, %cst_11 {dimension_numbers = #tpu.dot_dimension_numbers<[1], [0], [0], [1], [0, 0, 1, 1], [], []>} : vector<256x16xbf16>, vector<16x512xbf16>, vector<256x512xf32> -> vector<256x512xf32>
    %37 = arith.addf %34, %36 : vector<256x512xf32>
    %c0_12 = arith.constant 0 : index
    %c0_13 = arith.constant 0 : index
    %38 = vector.load %arg6[%c0_12, %c0_13] : memref<1x512xf32, #tpu.memory_space<vmem>>, vector<1x512xf32>
    %39 = vector.broadcast %38 : vector<1x512xf32> to vector<256x512xf32>
    %40 = arith.addf %37, %39 : vector<256x512xf32>
    %41 = vector.extract_strided_slice %40 {offsets = [0, 0], sizes = [256, 256], strides = [1, 1]} : vector<256x512xf32> to vector<256x256xf32>
    %42 = arith.truncf %41 : vector<256x256xf32> to vector<256x256xbf16>
    %c0_14 = arith.constant 0 : index
    %c0_15 = arith.constant 0 : index
    %c0_16 = arith.constant 0 : index
    %43 = vector.load %arg8[%c0_14, %c0_15, %c0_16] : memref<1x256x256xbf16, #tpu.memory_space<vmem>>, vector<1x256x256xbf16>
    %44 = vector.shape_cast %43 : vector<1x256x256xbf16> to vector<256x256xbf16>
    %45 = vector.shape_cast %42 : vector<256x256xbf16> to vector<1x256x256xbf16>
    tpu.vector_store %arg8[%c0_14, %c0_15, %c0_16], %45 {strides = array<i32>} : memref<1x256x256xbf16, #tpu.memory_space<vmem>>, vector<1x256x256xbf16>,
    %46 = vector.extract_strided_slice %40 {offsets = [0, 256], sizes = [256, 256], strides = [1, 1]} : vector<256x512xf32> to vector<256x256xf32>
    %cst_17 = arith.constant 0.000000e+00 : f32
    %47 = vector.broadcast %cst_17 : f32 to vector<256x256xf32>
    %48 = arith.maximumf %46, %47 : vector<256x256xf32>
    %49 = arith.truncf %48 : vector<256x256xf32> to vector<256x256xbf16>
    %c0_18 = arith.constant 0 : index
    %c0_19 = arith.constant 0 : index
    %50 = vector.load %arg7[%c0_18, %c0_19] : memref<256x256xbf16, #tpu.memory_space<vmem>>, vector<256x256xbf16>
    %cst_20 = arith.constant dense<0.000000e+00> : vector<256x256xf32>
    %51 = tpu.matmul %49, %50, %cst_20 {dimension_numbers = #tpu.dot_dimension_numbers<[1], [0], [0], [1], [0, 0, 1, 1], [], []>} : vector<256x256xbf16>, vector<256x256xbf16>, vector<256x256xf32> -> vector<256x256xf32>
    %52 = vector.extract_strided_slice %51 {offsets = [0, 0], sizes = [256, 128], strides = [1, 1]} : vector<256x256xf32> to vector<256x128xf32>
    %53 = arith.truncf %52 : vector<256x128xf32> to vector<256x128xbf16>
    %c0_21 = arith.constant 0 : index
    %c0_22 = arith.constant 0 : index
    %c0_23 = arith.constant 0 : index
    %54 = vector.load %arg9[%c0_21, %c0_22, %c0_23] : memref<1x256x128xbf16, #tpu.memory_space<vmem>>, vector<1x256x128xbf16>
    %55 = vector.shape_cast %54 : vector<1x256x128xbf16> to vector<256x128xbf16>
    %56 = vector.shape_cast %53 : vector<256x128xbf16> to vector<1x256x128xbf16>
    tpu.vector_store %arg9[%c0_21, %c0_22, %c0_23], %56 {strides = array<i32>} : memref<1x256x128xbf16, #tpu.memory_space<vmem>>, vector<1x256x128xbf16>,
    %57 = vector.extract_strided_slice %51 {offsets = [0, 128], sizes = [256, 128], strides = [1, 1]} : vector<256x256xf32> to vector<256x128xf32>
    %58 = arith.truncf %57 : vector<256x128xf32> to vector<256x128xbf16>
    %c0_24 = arith.constant 0 : index
    %c0_25 = arith.constant 0 : index
    %c0_26 = arith.constant 0 : index
    %59 = vector.load %arg10[%c0_24, %c0_25, %c0_26] : memref<1x256x128xbf16, #tpu.memory_space<vmem>>, vector<1x256x128xbf16>
    %60 = vector.shape_cast %59 : vector<1x256x128xbf16> to vector<256x128xbf16>
    %61 = vector.shape_cast %58 : vector<256x128xbf16> to vector<1x256x128xbf16>
    tpu.vector_store %arg10[%c0_24, %c0_25, %c0_26], %61 {strides = array<i32>} : memref<1x256x128xbf16, #tpu.memory_space<vmem>>, vector<1x256x128xbf16>,
    return
  }
  func.func @transform_0(%arg0: i32, %arg1: i32) -> (i32, i32, i32) {
    %c0_i32 = arith.constant 0 : i32
    %c0_i32_0 = arith.constant 0 : i32
    %c0_i32_1 = arith.constant 0 : i32
    return %arg0, %c0_i32, %c0_i32_0 : i32, i32, i32
  }
  func.func @transform_1(%arg0: i32, %arg1: i32) -> (i32, i32, i32) {
    %c0_i32 = arith.constant 0 : i32
    %c0_i32_0 = arith.constant 0 : i32
    return %arg0, %arg1, %c0_i32 : i32, i32, i32
  }
  func.func @transform_2(%arg0: i32, %arg1: i32) -> (i32, i32) {
    %c0_i32 = arith.constant 0 : i32
    %c0_i32_0 = arith.constant 0 : i32
    %c0_i32_1 = arith.constant 0 : i32
    return %c0_i32, %c0_i32_0 : i32, i32
  }
  func.func @transform_3(%arg0: i32, %arg1: i32) -> (i32, i32) {
    %c0_i32 = arith.constant 0 : i32
    %c0_i32_0 = arith.constant 0 : i32
    %c0_i32_1 = arith.constant 0 : i32
    return %c0_i32, %c0_i32_0 : i32, i32
  }
  func.func @transform_4(%arg0: i32, %arg1: i32) -> (i32, i32) {
    %c0_i32 = arith.constant 0 : i32
    %c0_i32_0 = arith.constant 0 : i32
    %c0_i32_1 = arith.constant 0 : i32
    return %c0_i32, %c0_i32_0 : i32, i32
  }
  func.func @transform_5(%arg0: i32, %arg1: i32) -> (i32, i32) {
    %c0_i32 = arith.constant 0 : i32
    %c0_i32_0 = arith.constant 0 : i32
    %c0_i32_1 = arith.constant 0 : i32
    return %c0_i32, %c0_i32_0 : i32, i32
  }
  func.func @transform_6(%arg0: i32, %arg1: i32) -> (i32, i32, i32) {
    %c0_i32 = arith.constant 0 : i32
    %c0_i32_0 = arith.constant 0 : i32
    return %arg0, %arg1, %c0_i32 : i32, i32, i32
  }
  func.func @transform_7(%arg0: i32, %arg1: i32) -> (i32, i32, i32) {
    %c0_i32 = arith.constant 0 : i32
    %c0_i32_0 = arith.constant 0 : i32
    return %arg0, %arg1, %c0_i32 : i32, i32, i32
  }
  func.func @transform_8(%arg0: i32, %arg1: i32) -> (i32, i32, i32) {
    %c0_i32 = arith.constant 0 : i32
    %c0_i32_0 = arith.constant 0 : i32
    return %arg0, %arg1, %c0_i32 : i32, i32, i32
  }
}

module attributes {stable_mosaic.version = 11 : i64} {
  func.func @split_argmax_kernel(%arg0: i32, %arg1: i32, %arg2: memref<1x16x1024xbf16, #tpu.memory_space<vmem>>, %arg3: memref<1x8x16x128xbf16, #tpu.memory_space<vmem>>, %arg4: memref<1x16x16xf32, #tpu.memory_space<vmem>>, %arg5: memref<1x16x16xi32, #tpu.memory_space<vmem>>) attributes {dimension_semantics = [#tpu.dimension_semantics<parallel>, #tpu.dimension_semantics<arbitrary>], iteration_bounds = array<i64: 2, 2>, scalar_prefetch = 0 : i64, scratch_operands = 0 : i64, tpu.core_type = #tpu.core_type<tc>, window_params = [{transform_indices = @transform_0, window_bounds = array<i64: 1, 16, 1024>}, {transform_indices = @transform_1, window_bounds = array<i64: 1, 8, 16, 128>}, {transform_indices = @transform_2, window_bounds = array<i64: 1, 16, 16>}, {transform_indices = @transform_3, window_bounds = array<i64: 1, 16, 16>}]} {
    %c0_i32 = arith.constant 0 : i32
    %0 = arith.cmpi eq, %arg1, %c0_i32 : i32
    %1 = arith.extui %0 : i1 to i32
    %c0_i32_0 = arith.constant 0 : i32
    %2 = arith.cmpi ne, %1, %c0_i32_0 : i32
    scf.if %2 {
      %cst_34 = arith.constant -3.000000e+38 : f32
      %147 = vector.broadcast %cst_34 : f32 to vector<16x16xf32>
      %c0_35 = arith.constant 0 : index
      %c0_36 = arith.constant 0 : index
      %c0_37 = arith.constant 0 : index
      %148 = vector.load %arg4[%c0_35, %c0_36, %c0_37] : memref<1x16x16xf32, #tpu.memory_space<vmem>>, vector<1x16x16xf32>
      %149 = vector.shape_cast %148 : vector<1x16x16xf32> to vector<16x16xf32>
      %150 = vector.shape_cast %147 : vector<16x16xf32> to vector<1x16x16xf32>
      tpu.vector_store %arg4[%c0_35, %c0_36, %c0_37], %150 {strides = array<i32>} : memref<1x16x16xf32, #tpu.memory_space<vmem>>, vector<1x16x16xf32>,
      %c0_i32_38 = arith.constant 0 : i32
      %151 = vector.broadcast %c0_i32_38 : i32 to vector<16x16xi32>
      %c0_39 = arith.constant 0 : index
      %c0_40 = arith.constant 0 : index
      %c0_41 = arith.constant 0 : index
      %152 = vector.load %arg5[%c0_39, %c0_40, %c0_41] : memref<1x16x16xi32, #tpu.memory_space<vmem>>, vector<1x16x16xi32>
      %153 = vector.shape_cast %152 : vector<1x16x16xi32> to vector<16x16xi32>
      %154 = vector.shape_cast %151 : vector<16x16xi32> to vector<1x16x16xi32>
      tpu.vector_store %arg5[%c0_39, %c0_40, %c0_41], %154 {strides = array<i32>} : memref<1x16x16xi32, #tpu.memory_space<vmem>>, vector<1x16x16xi32>,
    } else {
    }
    %3 = tpu.iota {dimensions = array<i32: 0>} : vector<16x16xi32>
    %4 = tpu.iota {dimensions = array<i32: 1>} : vector<16x16xi32>
    %c0 = arith.constant 0 : index
    %c0_1 = arith.constant 0 : index
    %c0_2 = arith.constant 0 : index
    %5 = vector.load %arg2[%c0, %c0_1, %c0_2] : memref<1x16x1024xbf16, #tpu.memory_space<vmem>>, vector<1x16x1024xbf16>
    %6 = vector.shape_cast %5 : vector<1x16x1024xbf16> to vector<16x1024xbf16>
    %c0_3 = arith.constant 0 : index
    %c0_4 = arith.constant 0 : index
    %c0_5 = arith.constant 0 : index
    %c0_6 = arith.constant 0 : index
    %7 = vector.load %arg3[%c0_3, %c0_4, %c0_5, %c0_6] : memref<1x8x16x128xbf16, #tpu.memory_space<vmem>>, vector<1x8x16x128xbf16>
    %8 = vector.shape_cast %7 : vector<1x8x16x128xbf16> to vector<8x16x128xbf16>
    %c0_7 = arith.constant 0 : index
    %c0_8 = arith.constant 0 : index
    %c0_9 = arith.constant 0 : index
    %9 = vector.load %arg4[%c0_7, %c0_8, %c0_9] : memref<1x16x16xf32, #tpu.memory_space<vmem>>, vector<1x16x16xf32>
    %10 = vector.shape_cast %9 : vector<1x16x16xf32> to vector<16x16xf32>
    %c0_10 = arith.constant 0 : index
    %c0_11 = arith.constant 0 : index
    %c0_12 = arith.constant 0 : index
    %11 = vector.load %arg5[%c0_10, %c0_11, %c0_12] : memref<1x16x16xi32, #tpu.memory_space<vmem>>, vector<1x16x16xi32>
    %12 = vector.shape_cast %11 : vector<1x16x16xi32> to vector<16x16xi32>
    %c8_i32 = arith.constant 8 : i32
    %13 = arith.muli %arg1, %c8_i32 : i32
    %c0_i32_13 = arith.constant 0 : i32
    %14 = arith.addi %13, %c0_i32_13 : i32
    %15 = vector.extract_strided_slice %6 {offsets = [0, 0], sizes = [16, 128], strides = [1, 1]} : vector<16x1024xbf16> to vector<16x128xbf16>
    %16 = vector.extract_strided_slice %8 {offsets = [0, 0, 0], sizes = [1, 16, 128], strides = [1, 1, 1]} : vector<8x16x128xbf16> to vector<1x16x128xbf16>
    %17 = vector.shape_cast %16 : vector<1x16x128xbf16> to vector<16x128xbf16>
    %cst = arith.constant dense<0.000000e+00> : vector<16x16xf32>
    %18 = tpu.matmul %15, %17, %cst {dimension_numbers = #tpu.dot_dimension_numbers<[1], [1], [0], [0], [0, 0, 1, 0], [], []>} : vector<16x128xbf16>, vector<16x128xbf16>, vector<16x16xf32> -> vector<16x16xf32>
    %19 = vector.broadcast %14 : i32 to vector<16x16xi32>
    %20 = arith.cmpi slt, %3, %19 : vector<16x16xi32>
    %21 = vector.broadcast %14 : i32 to vector<16x16xi32>
    %22 = arith.cmpi slt, %21, %4 : vector<16x16xi32>
    %23 = arith.andi %20, %22 : vector<16x16xi1>
    %24 = arith.cmpf ogt, %18, %10 : vector<16x16xf32>
    %25 = arith.andi %23, %24 : vector<16x16xi1>
    %26 = arith.select %25, %18, %10 : vector<16x16xi1>, vector<16x16xf32>
    %27 = vector.broadcast %14 : i32 to vector<16x16xi32>
    %28 = arith.select %25, %27, %12 : vector<16x16xi1>, vector<16x16xi32>
    %c8_i32_14 = arith.constant 8 : i32
    %29 = arith.muli %arg1, %c8_i32_14 : i32
    %c1_i32 = arith.constant 1 : i32
    %30 = arith.addi %29, %c1_i32 : i32
    %31 = vector.extract_strided_slice %6 {offsets = [0, 128], sizes = [16, 128], strides = [1, 1]} : vector<16x1024xbf16> to vector<16x128xbf16>
    %32 = vector.extract_strided_slice %8 {offsets = [1, 0, 0], sizes = [1, 16, 128], strides = [1, 1, 1]} : vector<8x16x128xbf16> to vector<1x16x128xbf16>
    %33 = vector.shape_cast %32 : vector<1x16x128xbf16> to vector<16x128xbf16>
    %cst_15 = arith.constant dense<0.000000e+00> : vector<16x16xf32>
    %34 = tpu.matmul %31, %33, %cst_15 {dimension_numbers = #tpu.dot_dimension_numbers<[1], [1], [0], [0], [0, 0, 1, 0], [], []>} : vector<16x128xbf16>, vector<16x128xbf16>, vector<16x16xf32> -> vector<16x16xf32>
    %35 = vector.broadcast %30 : i32 to vector<16x16xi32>
    %36 = arith.cmpi slt, %3, %35 : vector<16x16xi32>
    %37 = vector.broadcast %30 : i32 to vector<16x16xi32>
    %38 = arith.cmpi slt, %37, %4 : vector<16x16xi32>
    %39 = arith.andi %36, %38 : vector<16x16xi1>
    %40 = arith.cmpf ogt, %34, %26 : vector<16x16xf32>
    %41 = arith.andi %39, %40 : vector<16x16xi1>
    %42 = arith.select %41, %34, %26 : vector<16x16xi1>, vector<16x16xf32>
    %43 = vector.broadcast %30 : i32 to vector<16x16xi32>
    %44 = arith.select %41, %43, %28 : vector<16x16xi1>, vector<16x16xi32>
    %c8_i32_16 = arith.constant 8 : i32
    %45 = arith.muli %arg1, %c8_i32_16 : i32
    %c2_i32 = arith.constant 2 : i32
    %46 = arith.addi %45, %c2_i32 : i32
    %47 = vector.extract_strided_slice %6 {offsets = [0, 256], sizes = [16, 128], strides = [1, 1]} : vector<16x1024xbf16> to vector<16x128xbf16>
    %48 = vector.extract_strided_slice %8 {offsets = [2, 0, 0], sizes = [1, 16, 128], strides = [1, 1, 1]} : vector<8x16x128xbf16> to vector<1x16x128xbf16>
    %49 = vector.shape_cast %48 : vector<1x16x128xbf16> to vector<16x128xbf16>
    %cst_17 = arith.constant dense<0.000000e+00> : vector<16x16xf32>
    %50 = tpu.matmul %47, %49, %cst_17 {dimension_numbers = #tpu.dot_dimension_numbers<[1], [1], [0], [0], [0, 0, 1, 0], [], []>} : vector<16x128xbf16>, vector<16x128xbf16>, vector<16x16xf32> -> vector<16x16xf32>
    %51 = vector.broadcast %46 : i32 to vector<16x16xi32>
    %52 = arith.cmpi slt, %3, %51 : vector<16x16xi32>
    %53 = vector.broadcast %46 : i32 to vector<16x16xi32>
    %54 = arith.cmpi slt, %53, %4 : vector<16x16xi32>
    %55 = arith.andi %52, %54 : vector<16x16xi1>
    %56 = arith.cmpf ogt, %50, %42 : vector<16x16xf32>
    %57 = arith.andi %55, %56 : vector<16x16xi1>
    %58 = arith.select %57, %50, %42 : vector<16x16xi1>, vector<16x16xf32>
    %59 = vector.broadcast %46 : i32 to vector<16x16xi32>
    %60 = arith.select %57, %59, %44 : vector<16x16xi1>, vector<16x16xi32>
    %c8_i32_18 = arith.constant 8 : i32
    %61 = arith.muli %arg1, %c8_i32_18 : i32
    %c3_i32 = arith.constant 3 : i32
    %62 = arith.addi %61, %c3_i32 : i32
    %63 = vector.extract_strided_slice %6 {offsets = [0, 384], sizes = [16, 128], strides = [1, 1]} : vector<16x1024xbf16> to vector<16x128xbf16>
    %64 = vector.extract_strided_slice %8 {offsets = [3, 0, 0], sizes = [1, 16, 128], strides = [1, 1, 1]} : vector<8x16x128xbf16> to vector<1x16x128xbf16>
    %65 = vector.shape_cast %64 : vector<1x16x128xbf16> to vector<16x128xbf16>
    %cst_19 = arith.constant dense<0.000000e+00> : vector<16x16xf32>
    %66 = tpu.matmul %63, %65, %cst_19 {dimension_numbers = #tpu.dot_dimension_numbers<[1], [1], [0], [0], [0, 0, 1, 0], [], []>} : vector<16x128xbf16>, vector<16x128xbf16>, vector<16x16xf32> -> vector<16x16xf32>
    %67 = vector.broadcast %62 : i32 to vector<16x16xi32>
    %68 = arith.cmpi slt, %3, %67 : vector<16x16xi32>
    %69 = vector.broadcast %62 : i32 to vector<16x16xi32>
    %70 = arith.cmpi slt, %69, %4 : vector<16x16xi32>
    %71 = arith.andi %68, %70 : vector<16x16xi1>
    %72 = arith.cmpf ogt, %66, %58 : vector<16x16xf32>
    %73 = arith.andi %71, %72 : vector<16x16xi1>
    %74 = arith.select %73, %66, %58 : vector<16x16xi1>, vector<16x16xf32>
    %75 = vector.broadcast %62 : i32 to vector<16x16xi32>
    %76 = arith.select %73, %75, %60 : vector<16x16xi1>, vector<16x16xi32>
    %c8_i32_20 = arith.constant 8 : i32
    %77 = arith.muli %arg1, %c8_i32_20 : i32
    %c4_i32 = arith.constant 4 : i32
    %78 = arith.addi %77, %c4_i32 : i32
    %79 = vector.extract_strided_slice %6 {offsets = [0, 512], sizes = [16, 128], strides = [1, 1]} : vector<16x1024xbf16> to vector<16x128xbf16>
    %80 = vector.extract_strided_slice %8 {offsets = [4, 0, 0], sizes = [1, 16, 128], strides = [1, 1, 1]} : vector<8x16x128xbf16> to vector<1x16x128xbf16>
    %81 = vector.shape_cast %80 : vector<1x16x128xbf16> to vector<16x128xbf16>
    %cst_21 = arith.constant dense<0.000000e+00> : vector<16x16xf32>
    %82 = tpu.matmul %79, %81, %cst_21 {dimension_numbers = #tpu.dot_dimension_numbers<[1], [1], [0], [0], [0, 0, 1, 0], [], []>} : vector<16x128xbf16>, vector<16x128xbf16>, vector<16x16xf32> -> vector<16x16xf32>
    %83 = vector.broadcast %78 : i32 to vector<16x16xi32>
    %84 = arith.cmpi slt, %3, %83 : vector<16x16xi32>
    %85 = vector.broadcast %78 : i32 to vector<16x16xi32>
    %86 = arith.cmpi slt, %85, %4 : vector<16x16xi32>
    %87 = arith.andi %84, %86 : vector<16x16xi1>
    %88 = arith.cmpf ogt, %82, %74 : vector<16x16xf32>
    %89 = arith.andi %87, %88 : vector<16x16xi1>
    %90 = arith.select %89, %82, %74 : vector<16x16xi1>, vector<16x16xf32>
    %91 = vector.broadcast %78 : i32 to vector<16x16xi32>
    %92 = arith.select %89, %91, %76 : vector<16x16xi1>, vector<16x16xi32>
    %c8_i32_22 = arith.constant 8 : i32
    %93 = arith.muli %arg1, %c8_i32_22 : i32
    %c5_i32 = arith.constant 5 : i32
    %94 = arith.addi %93, %c5_i32 : i32
    %95 = vector.extract_strided_slice %6 {offsets = [0, 640], sizes = [16, 128], strides = [1, 1]} : vector<16x1024xbf16> to vector<16x128xbf16>
    %96 = vector.extract_strided_slice %8 {offsets = [5, 0, 0], sizes = [1, 16, 128], strides = [1, 1, 1]} : vector<8x16x128xbf16> to vector<1x16x128xbf16>
    %97 = vector.shape_cast %96 : vector<1x16x128xbf16> to vector<16x128xbf16>
    %cst_23 = arith.constant dense<0.000000e+00> : vector<16x16xf32>
    %98 = tpu.matmul %95, %97, %cst_23 {dimension_numbers = #tpu.dot_dimension_numbers<[1], [1], [0], [0], [0, 0, 1, 0], [], []>} : vector<16x128xbf16>, vector<16x128xbf16>, vector<16x16xf32> -> vector<16x16xf32>
    %99 = vector.broadcast %94 : i32 to vector<16x16xi32>
    %100 = arith.cmpi slt, %3, %99 : vector<16x16xi32>
    %101 = vector.broadcast %94 : i32 to vector<16x16xi32>
    %102 = arith.cmpi slt, %101, %4 : vector<16x16xi32>
    %103 = arith.andi %100, %102 : vector<16x16xi1>
    %104 = arith.cmpf ogt, %98, %90 : vector<16x16xf32>
    %105 = arith.andi %103, %104 : vector<16x16xi1>
    %106 = arith.select %105, %98, %90 : vector<16x16xi1>, vector<16x16xf32>
    %107 = vector.broadcast %94 : i32 to vector<16x16xi32>
    %108 = arith.select %105, %107, %92 : vector<16x16xi1>, vector<16x16xi32>
    %c8_i32_24 = arith.constant 8 : i32
    %109 = arith.muli %arg1, %c8_i32_24 : i32
    %c6_i32 = arith.constant 6 : i32
    %110 = arith.addi %109, %c6_i32 : i32
    %111 = vector.extract_strided_slice %6 {offsets = [0, 768], sizes = [16, 128], strides = [1, 1]} : vector<16x1024xbf16> to vector<16x128xbf16>
    %112 = vector.extract_strided_slice %8 {offsets = [6, 0, 0], sizes = [1, 16, 128], strides = [1, 1, 1]} : vector<8x16x128xbf16> to vector<1x16x128xbf16>
    %113 = vector.shape_cast %112 : vector<1x16x128xbf16> to vector<16x128xbf16>
    %cst_25 = arith.constant dense<0.000000e+00> : vector<16x16xf32>
    %114 = tpu.matmul %111, %113, %cst_25 {dimension_numbers = #tpu.dot_dimension_numbers<[1], [1], [0], [0], [0, 0, 1, 0], [], []>} : vector<16x128xbf16>, vector<16x128xbf16>, vector<16x16xf32> -> vector<16x16xf32>
    %115 = vector.broadcast %110 : i32 to vector<16x16xi32>
    %116 = arith.cmpi slt, %3, %115 : vector<16x16xi32>
    %117 = vector.broadcast %110 : i32 to vector<16x16xi32>
    %118 = arith.cmpi slt, %117, %4 : vector<16x16xi32>
    %119 = arith.andi %116, %118 : vector<16x16xi1>
    %120 = arith.cmpf ogt, %114, %106 : vector<16x16xf32>
    %121 = arith.andi %119, %120 : vector<16x16xi1>
    %122 = arith.select %121, %114, %106 : vector<16x16xi1>, vector<16x16xf32>
    %123 = vector.broadcast %110 : i32 to vector<16x16xi32>
    %124 = arith.select %121, %123, %108 : vector<16x16xi1>, vector<16x16xi32>
    %c8_i32_26 = arith.constant 8 : i32
    %125 = arith.muli %arg1, %c8_i32_26 : i32
    %c7_i32 = arith.constant 7 : i32
    %126 = arith.addi %125, %c7_i32 : i32
    %127 = vector.extract_strided_slice %6 {offsets = [0, 896], sizes = [16, 128], strides = [1, 1]} : vector<16x1024xbf16> to vector<16x128xbf16>
    %128 = vector.extract_strided_slice %8 {offsets = [7, 0, 0], sizes = [1, 16, 128], strides = [1, 1, 1]} : vector<8x16x128xbf16> to vector<1x16x128xbf16>
    %129 = vector.shape_cast %128 : vector<1x16x128xbf16> to vector<16x128xbf16>
    %cst_27 = arith.constant dense<0.000000e+00> : vector<16x16xf32>
    %130 = tpu.matmul %127, %129, %cst_27 {dimension_numbers = #tpu.dot_dimension_numbers<[1], [1], [0], [0], [0, 0, 1, 0], [], []>} : vector<16x128xbf16>, vector<16x128xbf16>, vector<16x16xf32> -> vector<16x16xf32>
    %131 = vector.broadcast %126 : i32 to vector<16x16xi32>
    %132 = arith.cmpi slt, %3, %131 : vector<16x16xi32>
    %133 = vector.broadcast %126 : i32 to vector<16x16xi32>
    %134 = arith.cmpi slt, %133, %4 : vector<16x16xi32>
    %135 = arith.andi %132, %134 : vector<16x16xi1>
    %136 = arith.cmpf ogt, %130, %122 : vector<16x16xf32>
    %137 = arith.andi %135, %136 : vector<16x16xi1>
    %138 = arith.select %137, %130, %122 : vector<16x16xi1>, vector<16x16xf32>
    %139 = vector.broadcast %126 : i32 to vector<16x16xi32>
    %140 = arith.select %137, %139, %124 : vector<16x16xi1>, vector<16x16xi32>
    %c0_28 = arith.constant 0 : index
    %c0_29 = arith.constant 0 : index
    %c0_30 = arith.constant 0 : index
    %141 = vector.load %arg4[%c0_28, %c0_29, %c0_30] : memref<1x16x16xf32, #tpu.memory_space<vmem>>, vector<1x16x16xf32>
    %142 = vector.shape_cast %141 : vector<1x16x16xf32> to vector<16x16xf32>
    %143 = vector.shape_cast %138 : vector<16x16xf32> to vector<1x16x16xf32>
    tpu.vector_store %arg4[%c0_28, %c0_29, %c0_30], %143 {strides = array<i32>} : memref<1x16x16xf32, #tpu.memory_space<vmem>>, vector<1x16x16xf32>,
    %c0_31 = arith.constant 0 : index
    %c0_32 = arith.constant 0 : index
    %c0_33 = arith.constant 0 : index
    %144 = vector.load %arg5[%c0_31, %c0_32, %c0_33] : memref<1x16x16xi32, #tpu.memory_space<vmem>>, vector<1x16x16xi32>
    %145 = vector.shape_cast %144 : vector<1x16x16xi32> to vector<16x16xi32>
    %146 = vector.shape_cast %140 : vector<16x16xi32> to vector<1x16x16xi32>
    tpu.vector_store %arg5[%c0_31, %c0_32, %c0_33], %146 {strides = array<i32>} : memref<1x16x16xi32, #tpu.memory_space<vmem>>, vector<1x16x16xi32>,
    return
  }
  func.func @transform_0(%arg0: i32, %arg1: i32) -> (i32, i32, i32) {
    %c0_i32 = arith.constant 0 : i32
    %c0_i32_0 = arith.constant 0 : i32
    return %arg0, %c0_i32, %arg1 : i32, i32, i32
  }
  func.func @transform_1(%arg0: i32, %arg1: i32) -> (i32, i32, i32, i32) {
    %c0_i32 = arith.constant 0 : i32
    %c0_i32_0 = arith.constant 0 : i32
    %c0_i32_1 = arith.constant 0 : i32
    return %arg0, %arg1, %c0_i32, %c0_i32_0 : i32, i32, i32, i32
  }
  func.func @transform_2(%arg0: i32, %arg1: i32) -> (i32, i32, i32) {
    %c0_i32 = arith.constant 0 : i32
    %c0_i32_0 = arith.constant 0 : i32
    %c0_i32_1 = arith.constant 0 : i32
    return %arg0, %c0_i32, %c0_i32_0 : i32, i32, i32
  }
  func.func @transform_3(%arg0: i32, %arg1: i32) -> (i32, i32, i32) {
    %c0_i32 = arith.constant 0 : i32
    %c0_i32_0 = arith.constant 0 : i32
    %c0_i32_1 = arith.constant 0 : i32
    return %arg0, %c0_i32, %c0_i32_0 : i32, i32, i32
  }
}

</mosaic_0001>

<bundles_post_ra>
// kernel: device_pipeline.3
= control target key start
LH: loop header
LB: loop body
LE: loop exit
PB: predicated region body
PF: predicated region fallthrough
CT: control target
= control target key end

     0   :  { %s1984_s0 = inlined_call_operand.vmem [shape: bf16[2,16,2048], index: 0, kind: input, shape index: {}]   ;;  %s1985_s1 = inlined_call_operand.vmem [shape: bf16[2,16,16,128], index: 1, kind: input, shape index: {}]   ;;  %s1986_s2 = inlined_call_operand.hbm [shape: f32[2,16,16], index: 2, kind: output, shape index: {0}]   ;;  %s1987_s3 = inlined_call_operand.hbm [shape: s32[2,16,16], index: 3, kind: output, shape index: {1}]  }
   0x1   :  { %1997 = sst [smem:[#allocation12_spill]] %s1984_s0 }
   0x2   :  { %9 = vsyncpa [#allocation4], 0 }
   0x3   :  { %11 = vsyncpa [#allocation4 + $0x1], 0 }
   0x4   :  { %12 = vsyncpa [#allocation6], 0 }
   0x5   :  { %14 = vsyncpa [#allocation6 + $0x1], 0  ;;  %s1406_s12 = smov 0   ;;  %s1408_s13 = smov 0  }
   0x6   :  { %s1410_s14 = smov 0   ;;  %s1412_s15 = smov 0  }
   0x7   :  { %s1414_s16 = smov 0   ;;  %s1416_s17 = smov 0  }
   0x8   :  { %s1418_s18 = smov 0   ;;  %s1420_s19 = smov 0  }
   0x9   :  { %s1422_s20 = smov 0   ;;  %s1424_s21 = smov 0  }
   0xa LB: > { %1998 = sst [smem:[#allocation9_spill]] %s1372_s20  ;;  %s1024_s22 = sadd.s32 4294967295, %s1376_s21   ;;  %s1376_s21 = sphi %s1424_s21, %s20_s21   ;;  %s1372_s20 = sphi %s1422_s20, %s2059_s20   ;;  %s1368_s19 = sphi %s1420_s19, %s2066_s19   ;;  %s1364_s18 = sphi %s1418_s18, %s2057_s18   ;;  %s1360_s17 = sphi %s1416_s17, %s2065_s17   ;;  %s1356_s16 = sphi %s1414_s16, %s2064_s16   ;;  %s1352_s15 = sphi %s1412_s15, %s2063_s15   ;;  %s1348_s14 = sphi %s1410_s14, %s2062_s14   ;;  %s1344_s13 = sphi %s1408_s13, %s2061_s13   ;;  %s1340_s12 = sphi %s1406_s12, %s2060_s12  }
   0xb   : > { %s1025_s23 = sadd.s32 4294967294, %s1376_s21   ;;  %s29_s24 = sadd.s32 1, %s1368_s19 }
   0xc   : > { %s32_s25 = sadd.s32 1, %s1372_s20  ;;  %p30_p0 = scmp.ge.s32.totalorder %s29_s24, 2 }
   0xd   : > { %s41_s26 = sadd.s32 1, %s1356_s16  ;;  %p48_p1 = scmp.ne.s32.totalorder %s1356_s16, %s1352_s15 }
   0xe   : > { %p49_p2 = scmp.eq.s32.totalorder %s1376_s21, 0  ;;  %s2068_s24 = smov (%p30_p0, %s29_s24), 0 }
   0xf   : > { %1999 = sst [smem:[#allocation10_spill]] %s2068_s24  ;;  %s2070_s25 = smov (!%p30_p0, %s32_s25), %s1372_s20 }
  0x10   : > { %s37_s27 = ssub.s32 %s1368_s19, %s2068_s24  ;;  %p1469_p3 = por %p49_p2, %p48_p1 }
  0x11   : > { %p34_p4 = scmp.ge.s32.totalorder %s2070_s25, 2  ;;  %s95_s29 = sadd.s32 1, %s1348_s14 }
  0x12   : > { %p105_p5 = scmp.ne.s32.totalorder %s1348_s14, %s1344_s13  ;;  %p106_p6 = scmp.eq.s32.totalorder %s1024_s22, 3 }
  0x13   : > { %s2072_s25 = smov (%p34_p4, %s2070_s25), 0  ;;  %p111_p8 = scmp.ne.s32.totalorder %s1344_s13, %s1340_s12 }
  0x14   : > { %2001 = sst [smem:[#allocation11_spill]] %s2072_s25  ;;  %p1478_p7 = por %p106_p6, %p105_p5 }
  0x15   : > { %s36_s4 = ssub.s32 %s1372_s20, %s2072_s25  ;;  %p112_p9 = scmp.eq.s32.totalorder %s1025_s23, 3 }
  0x16   : > { %s38_s5 = sor.u32 %s37_s27, %s36_s4  ;;  %p93_p10 = scmp.eq.s32.totalorder %s36_s4, 0 }
  0x17   : > { %p39_p11 = scmp.eq.s32.totalorder %s38_s5, 0  ;;  %p1486_p12 = por %p112_p9, %p111_p8 }
  0x18   : > { %s1491_s7 = scalar_select %p93_p10, %s1348_s14, %s95_s29  }
  0x19   : > { %s1494_s8 = scalar_select %p39_p11, %s1356_s16, %s41_s26  }
  0x1a   : > { %p1027_p13 = scmp.ge.s32.totalorder %s1376_s21, 4 }
  0x1c   : > { %154 = sbr.rel (%p1027_p13) target bundleno = 47 (0x2f), region = 16 }
  0x21   : > { %157 = sbr.rel (!%p1469_p3) target bundleno = 47 (0x2f), region = 20  ;;  %s159_s9 = sand.u32 (%p1469_p3), 1, %s1356_s16  }
  0x22   : > { %s1029_s10 = sshll.u32 (%p1469_p3), %s1368_s19, 3  ;;  %s1028_s11 = sshll.u32 (%p1469_p3), %s159_s9, 6 }
  0x23   : > { %s1030_s22 = sshll.u32 (%p1469_p3), %s1372_s20, 5  ;;  %s2004_s0 = sld [smem:[#allocation12_spill]] (%p1469_p3) }
  0x24   : > { %s164_s23 = sadd.s32 (%p1469_p3), %s1030_s22, %s1029_s10  ;;  %s161_s5 = scalar_lea.vmem (%p1469_p3), [#allocation2], %s1028_s11 }
  0x25   : > { %s1031_s27 = sshll.u32 (%p1469_p3), %s164_s23, 2 }
  0x29   : > { %s166_s26 = scalar_lea.vmem %s2004_s0, %s1031_s27 }
  0x2a   : > { %v179_v0 = vld [vmem:[%s166_s26] sm:$0xff]  ;;  %v181_v1 = vld [vmem:[%s166_s26 + $0x8] sm:$0xff]  ;;  %v183_v2 = vld [vmem:[%s166_s26 + $0x10] sm:$0xff] }
  0x2b   : > { %180 = vst [vmem:[%s161_s5] sm:$0xff] %v179_v0  ;;  %182 = vst [vmem:[%s161_s5 + $0x8] sm:$0xff] %v181_v1  ;;  %v185_v3 = vld [vmem:[%s166_s26 + $0x18] sm:$0xff]  ;;  %v187_v4 = vld [vmem:[%s166_s26 + $0x40] sm:$0xff] }
  0x2c   : > { %184 = vst [vmem:[%s161_s5 + $0x10] sm:$0xff] %v183_v2  ;;  %v189_v5 = vld [vmem:[%s166_s26 + $0x48] sm:$0xff]  ;;  %186 = vst [vmem:[%s161_s5 + $0x18] sm:$0xff] %v185_v3  ;;  %v191_v6 = vld [vmem:[%s166_s26 + $0x50] sm:$0xff] }
  0x2d   : > { %188 = vst [vmem:[%s161_s5 + $0x20] sm:$0xff] %v187_v4  ;;  %190 = vst [vmem:[%s161_s5 + $0x28] sm:$0xff] %v189_v5  ;;  %v193_v7 = vld [vmem:[%s166_s26 + $0x58] sm:$0xff] }
  0x2e   : > { %192 = vst [vmem:[%s161_s5 + $0x30] sm:$0xff] %v191_v6  ;;  %194 = vst [vmem:[%s161_s5 + $0x38] sm:$0xff] %v193_v7 }
  0x2f PF: > { %p1032_p0 = scmp.ge.s32.totalorder %s1376_s21, 1  ;;  %p213_p1 = scmp.lt.s32.totalorder %s1376_s21, 5 }
  0x31   : > { %p214_p2 = pnand %p1032_p0, %p213_p1 }
  0x32   : > { %s220_s28 = sand.u32 (!%p214_p2), 1, %s1352_s15   ;;  %s1509_s9 = sand.u32 (!%p214_p2), 1, %s1344_s13  }
  0x33   : > { %217 = sbr.rel (%p214_p2) target bundleno = 338 (0x152), region = 47  ;;  %s1033_s10 = sshll.u32 (!%p214_p2), %s220_s28, 6 }
  0x34   : > { %s1034_s11 = sshll.u32 (!%p214_p2), %s1509_s9, 4  ;;  %s1513_s22 = sshll.u32 (!%p214_p2), %s1360_s17, 3 }
  0x35   : > { %p260_p3 = scmp.lt.s32.totalorder (!%p214_p2), %s1364_s18, 1  ;;  %p262_p4 = scmp.lt.s32.totalorder (!%p214_p2), %s1513_s22, 15 }
  0x36   : > { %s1524_s24 = scalar_lea.vmem (!%p214_p2), [#allocation2], %s1033_s10  ;;  %s1526_s28 = scalar_lea.vmem (!%p214_p2), [#allocation3], %s1034_s11 }
  0x37   : > { %s1528_s20 = scalar_lea.vmem (!%p214_p2), [#allocation5], %s1034_s11  ;;  %p1040_p5 = scmp.ne.s32.totalorder (!%p214_p2), %s1360_s17, 0 }
  0x38   : > { %s261_s23 = scalar_select %p260_p3, %s1364_s18, 1 }
  0x39   : > { %s263_s27 = scalar_select %p262_p4, %s1513_s22, 15 }
  0x3a   : > { %s1038_s4 = sshll.u32 %s261_s23, 5  ;;  %274 = sbr.rel (%p1040_p5) target bundleno = 66 (0x42), region = 55 }
  0x3b   : > { %s1037_s29 = sshll.u32 %s263_s27, 1 }
  0x3c   : > { %s266_s26 = sadd.s32 %s1038_s4, %s1037_s29 }
  0x3d   : > { %s1039_s5 = sshll.u32 %s266_s26, 2 }
  0x3e   : > { %s1522_s15 = scalar_lea.vmem %s1985_s1, %s1039_s5 }
  0x3f   : > { %vm275_vm0 = vcmask 130048   ;;  %v1378_v8 = vmov -3e+38   ;;  %v1379_v9 = vmov 0  }
  0x40   : > { %276 = vst.msk [vmem:[%s1526_s28] sm:$0xff] %vm275_vm0, %v1378_v8  ;;  %277 = vst.msk [vmem:[%s1526_s28 + $0x8] sm:$0xff] %vm275_vm0, %v1378_v8 }
  0x41   : > { %278 = vst.msk [vmem:[%s1528_s20] sm:$0xff] %vm275_vm0, %v1379_v9  ;;  %279 = vst.msk [vmem:[%s1528_s20 + $0x8] sm:$0xff] %vm275_vm0, %v1379_v9 }
  0x42 PF: > { %v1230_v10 = vld [vmem:[%s1522_s15] sm:$0xff]   ;;  %v1380_v11 = vmov 0.0   ;;  %v1231_v12 = vld [vmem:[%s1522_s15 + $0x8] sm:$0xff]   ;;  %vm1381_vm1 = vmmov 0   ;;  %v1232_v17 = vld [vmem:[%s1522_s15 + $0x10] sm:$0xff]   ;;  %v280_v35 = vlaneseq  ;;  %s381_s0 = sadd.s32 1, %s1513_s22  ;;  %v1565_v38 = vstv %s1513_s22 }
  0x43   : > { %1084 = vmatprep.subr.bf16.mxu0 %v1380_v11  ;;  %1090 = vmatprep.subr.bf16.mxu1 %v1380_v11  ;;  %v285_v13 = vld [vmem:[%s1524_s24] sm:$0xff]  ;;  %v1233_v18 = vld [vmem:[%s1522_s15 + $0x18] sm:$0xff]   ;;  %v286_v19 = vld [vmem:[%s1524_s24 + $0x8] sm:$0xff]  ;;  %v1567_v39 = vstv %s381_s0  ;;  %s447_s17 = sadd.s32 2, %s1513_s22  ;;  %s581_s25 = sadd.s32 4, %s1513_s22  ;;  %v2017_v63 = vmov 0 }
  0x44   : > { %1085 = vmatpush3.bf16.xpose.msra.mxu0 %v1230_v10  ;;  %1086 = vmatprep.mubr.msk.bf16.mxu0 %vm1381_vm1, %v1380_v11  ;;  %v289_v14 = vld [vmem:[%s1524_s24 + $0x20] sm:$0xff]  ;;  %v290_v20 = vld [vmem:[%s1524_s24 + $0x28] sm:$0xff]  ;;  %v287_v25 = vld [vmem:[%s1524_s24 + $0x10] sm:$0xff]  ;;  %v1559_v36 = vshrl.u32 %v280_v35, 7  ;;  %v1561_v37 = vand.u32 127, %v280_v35  ;;  %v1597_v45 = vstv %s447_s17  ;;  %s649_s10 = sadd.s32 5, %s1513_s22 }
  0x45   : > { %1091 = vmatpush3.bf16.xpose.msra.mxu1 %v1231_v12  ;;  %1092 = vmatprep.mubr.msk.bf16.mxu1 %vm1381_vm1, %v1380_v11  ;;  %v1042_v15 = vcombine.low %v285_v13, %v289_v14  ;;  %v1044_v16 = vcombine.high %v285_v13, %v289_v14  ;;  %v1046_v21 = vcombine.low %v286_v19, %v290_v20  ;;  %v1234_v23 = vld [vmem:[%s1522_s15 + $0x20] sm:$0xff]   ;;  %v1235_v24 = vld [vmem:[%s1522_s15 + $0x28] sm:$0xff]   ;;  %v291_v26 = vld [vmem:[%s1524_s24 + $0x30] sm:$0xff]  ;;  %v1662_v1 = vstv %s581_s25  ;;  %s715_s11 = sadd.s32 6, %s1513_s22  ;;  %s783_s23 = sadd.s32 7, %s1513_s22 }
  0x46   : > { %1096 = vmatprep.subr.bf16.mxu0 %v1380_v11  ;;  %1102 = vmatprep.subr.bf16.mxu1 %v1380_v11  ;;  %v1048_v22 = vcombine.high %v286_v19, %v290_v20  ;;  %v1050_v27 = vcombine.low %v287_v25, %v291_v26  ;;  %v1052_v28 = vcombine.high %v287_v25, %v291_v26  ;;  %v1236_v29 = vld [vmem:[%s1522_s15 + $0x30] sm:$0xff]   ;;  %v1237_v30 = vld [vmem:[%s1522_s15 + $0x38] sm:$0xff]   ;;  %v1574_v40 = vadd.s32 8, %v1559_v36  ;;  %s873_s27 = sshll.u32 %s1526_s28, 4  ;;  %s889_s26 = sshll.u32 %s1528_s20, 4  ;;  %s1881_s27 = int_to_ptr.vmem [resolvable:$true] %s873_s27  ;;  %s1894_s26 = int_to_ptr.vmem [resolvable:$true] %s889_s26 }
  0x47   : > { %v288_v31 = vld [vmem:[%s1524_s24 + $0x18] sm:$0xff]  ;;  %vm368_vm2 = vcmp.lt.s32.totalorder %v1559_v36, %v1565_v38  ;;  %vm370_vm3 = vcmp.lt.s32.totalorder %v1565_v38, %v1561_v37  ;;  %v309_v41 = vld [vmem:[%s1526_s28] sm:$0xff]  ;;  %vm434_vm4 = vcmp.lt.s32.totalorder %v1559_v36, %v1567_v39  ;;  %vm436_vm5 = vcmp.lt.s32.totalorder %v1567_v39, %v1561_v37  ;;  %s855_s17 = scalar_lea.sflag [#allocation4], %s1509_s9  ;;  %s1382_s25 = smov [#allocation3]  }
  0x48   : > { %v292_v32 = vld [vmem:[%s1524_s24 + $0x38] sm:$0xff]  ;;  %vm371_vm6 = vmand %vm368_vm2, %vm370_vm3  ;;  %s515_s24 = sadd.s32 3, %s1513_s22  ;;  %vm369_vm7 = vcmp.lt.s32.totalorder %v1574_v40, %v1565_v38  ;;  %vm435_vm10 = vcmp.lt.s32.totalorder %v1574_v40, %v1567_v39  ;;  %vm502_vm15 = vcmp.lt.s32.totalorder %v1559_v36, %v1597_v45  ;;  %vm504_vm0 = vcmp.lt.s32.totalorder %v1597_v45, %v1561_v37  ;;  %s1066_s22 = sshll.u32 %s1364_s18, 8 }
  0x49   : > { %v1054_v33 = vcombine.low %v288_v31, %v292_v32  ;;  %v1056_v34 = vcombine.high %v288_v31, %v292_v32  ;;  %vm1591_vm9 = vmand %vm434_vm4, %vm436_vm5  ;;  %v310_v48 = vld [vmem:[%s1526_s28 + $0x8] sm:$0xff]  ;;  %v1604_v49 = vstv %s515_s24  ;;  %v1668_v4 = vstv %s649_s10  ;;  %s1875_s29 = scalar_lea.hbm %s1986_s2, %s1066_s22  ;;  %s1892_s0 = scalar_lea.hbm %s1987_s3, %s1066_s22 }
  0x4a   : > { %vm372_vm12 = vmand %vm369_vm7, %vm370_vm3  ;;  %vm568_vm3 = vcmp.lt.s32.totalorder %v1559_v36, %v1604_v49  ;;  %vm570_vm4 = vcmp.lt.s32.totalorder %v1604_v49, %v1561_v37  ;;  %v2025_v12 = vmov 0  ;;  %v2029_v19 = vmov 0  ;;  %s1238_s24 = scalar_lea.vmem %s1881_s27, 256  ;;  %s1242_s10 = sshll.u32 %s1382_s25, 4  ;;  %s1243_s10 = int_to_ptr.vmem [resolvable:$false] %s1242_s10 }
  0x4b   : > { %1087 = vmatmul.mubr.bf16.vlgmr.msra.gmra.mxu0 %v1042_v15  ;;  %vm1614_vm14 = vmand %vm435_vm10, %vm436_vm5  ;;  %p1239_p6 = scmp.ne.s32.totalorder %s1881_s27, %s1238_s24  ;;  %p1245_p10 = scmp.lt.s32.totalorder %s1881_s27, %s1243_s10 }
  0x4c   : > { %1093 = vmatmul.mubr.bf16.vlgmr.msra.gmra.mxu1 %v1044_v16  ;;  %1097 = vmatpush3.bf16.xpose.msra.mxu0 %v1232_v17 }
  0x4d   : > { %1103 = vmatpush3.bf16.xpose.msra.mxu1 %v1233_v18  ;;  %1098 = vmatprep.mubr.msk.bf16.mxu0 %vm1381_vm1, %v1380_v11  ;;  %p1240_p8 = pnand %p1239_p6, %p1478_p7 }
  0x4e   : > { %1104 = vmatprep.mubr.msk.bf16.mxu1 %vm1381_vm1, %v1380_v11  ;;  %1108 = vmatprep.subr.bf16.mxu0 %v1380_v11 }
  0x4f   : > { %1114 = vmatprep.subr.bf16.mxu1 %v1380_v11  ;;  %p1241_p9 = pneg %p1240_p8 }
  0x53   : > { %1099 = vmatmul.mubr.bf16.vlgmr.msra.gmra.mxu0 %v1046_v21  ;;  %v1728_v21 = vstv %s715_s11  ;;  %s1244_s11 = scalar_lea.vmem %s1243_s10, 512 }
  0x54   : > { %1105 = vmatmul.mubr.bf16.vlgmr.msra.gmra.mxu1 %v1048_v22  ;;  %1109 = vmatpush3.bf16.xpose.msra.mxu0 %v1234_v23  ;;  %v2031_v22 = vmov 0  ;;  %p1246_p11 = scmp.lt.s32.totalorder %s1244_s11, %s1238_s24 }
  0x55   : > { %1115 = vmatpush3.bf16.xpose.msra.mxu1 %v1235_v24  ;;  %1110 = vmatprep.mubr.msk.bf16.mxu0 %vm1381_vm1, %v1380_v11  ;;  %v1734_v24 = vstv %s783_s23 }
  0x56   : > { %1116 = vmatprep.mubr.msk.bf16.mxu1 %vm1381_vm1, %v1380_v11  ;;  %1120 = vmatprep.subr.bf16.mxu0 %v1380_v11  ;;  %p1247_p13 = por %p1246_p11, %p1245_p10 }
  0x57   : > { %1126 = vmatprep.subr.bf16.mxu1 %v1380_v11 }
  0x58   : > { %p1248_p0 = pnand %p1247_p13, %p1241_p9 }
  0x5b   : > { %1111 = vmatmul.mubr.bf16.vlgmr.msra.gmra.mxu0 %v1050_v27  ;;  %v311_v27 = vld [vmem:[%s1528_s20] sm:$0xff] }
  0x5c   : > { %1117 = vmatmul.mubr.bf16.vlgmr.msra.gmra.mxu1 %v1052_v28  ;;  %1121 = vmatpush3.bf16.xpose.msra.mxu0 %v1236_v29 }
  0x5d   : > { %1127 = vmatpush3.bf16.xpose.msra.mxu1 %v1237_v30  ;;  %1122 = vmatprep.mubr.msk.bf16.mxu0 %vm1381_vm1, %v1380_v11 }
  0x5e   : > { %1128 = vmatprep.mubr.msk.bf16.mxu1 %vm1381_vm1, %v1380_v11 }
  0x63   : > { %1123 = vmatmul.mubr.bf16.vlgmr.msra.gmra.mxu0 %v1054_v33 }
  0x64   : > { %1129 = vmatmul.mubr.bf16.vlgmr.msra.gmra.mxu1 %v1056_v34 }
 0x10b   : > { %v360_v42 = vpop.f32.mrf.mxu0 }
 0x10c   : > { %vm373_vm8 = vcmp.gt.f32.partialorder %v360_v42, %v309_v41  ;;  %v426_v43 = vpop.f32.mrf.mxu1 }
 0x10d   : > { %vm1599_vm11 = vmand %vm371_vm6, %vm373_vm8  ;;  %v1088_v47 = vpop.f32.mrf.mxu0 }
 0x10e   : > { %v377_v50 = vsel %vm1599_vm11, %v360_v42, %v309_v41  ;;  %v1094_v51 = vpop.f32.mrf.mxu1  ;;  %vm505_vm6 = vmand %vm502_vm15, %vm504_vm0  ;;  %v379_v35 = vsel %vm1599_vm11, %v1565_v38, %v311_v27 }
 0x10f   : > { %vm439_vm13 = vcmp.gt.f32.partialorder %v426_v43, %v377_v50  ;;  %v363_v52 = vpop.f32.mrf.mxu0  ;;  %vm1648_vm8 = vmand %vm568_vm3, %vm570_vm4 }
 0x110   : > { %vm1624_vm1 = vmand %vm1591_vm9, %vm439_vm13  ;;  %vm374_vm2 = vcmp.gt.f32.partialorder %v363_v52, %v310_v48  ;;  %v429_v55 = vpop.f32.mrf.mxu1  ;;  %vm503_vm9 = vcmp.lt.s32.totalorder %v1574_v40, %v1597_v45  ;;  %vm569_vm13 = vcmp.lt.s32.totalorder %v1574_v40, %v1604_v49 }
 0x111   : > { %vm1632_vm5 = vmand %vm372_vm12, %vm374_vm2  ;;  %v1089_v57 = vpop.f32.mrf.mxu0  ;;  %v443_v60 = vsel %vm1624_vm1, %v426_v43, %v377_v50  ;;  %v312_v43 = vld [vmem:[%s1528_s20 + $0x8] sm:$0xff] }
 0x112   : > { %v378_v58 = vsel %vm1632_vm5, %v363_v52, %v310_v48  ;;  %v1095_v59 = vpop.f32.mrf.mxu1  ;;  %vm1680_vm3 = vmand %vm569_vm13, %vm570_vm4  ;;  %vm702_vm4 = vcmp.lt.s32.totalorder %v1559_v36, %v1668_v4 }
 0x113   : > { %vm440_vm7 = vcmp.gt.f32.partialorder %v429_v55, %v378_v58  ;;  %v494_v61 = vpop.f32.mrf.mxu0 }
 0x114   : > { %vm1656_vm10 = vmand %vm1614_vm14, %vm440_vm7  ;;  %vm507_vm12 = vcmp.gt.f32.partialorder %v494_v61, %v443_v60  ;;  %v560_v0 = vpop.f32.mrf.mxu1  ;;  %vm1991_vm7 = vcmp.lt.s32.totalorder %v1662_v1, %v1561_v37 }
 0x115   : > { %v2018_v63 = vsel %vm1656_vm10, 4294967295, %v2017_v63  ;;  %vm1664_vm15 = vmand %vm505_vm6, %vm507_vm12  ;;  %v1100_v3 = vpop.f32.mrf.mxu0  ;;  %v444_v7 = vsel %vm1656_vm10, %v429_v55, %v378_v58  ;;  %vm636_vm6 = vcmp.lt.s32.totalorder %v1559_v36, %v1662_v1  ;;  %vm1993_vm12 = vcmp.lt.s32.totalorder %v1668_v4, %v1561_v37 }
 0x116   : > { %v511_v5 = vsel %vm1664_vm15, %v494_v61, %v443_v60  ;;  %v1106_v6 = vpop.f32.mrf.mxu1  ;;  %vm506_vm14 = vmand %vm503_vm9, %vm504_vm0  ;;  %vm770_vm10 = vcmp.lt.s32.totalorder %v1559_v36, %v1728_v21  ;;  %v380_v55 = vsel %vm1632_vm5, %v1565_v38, %v312_v43  ;;  %vm2050_vm5 = vnez %v2018_v63 }
 0x117   : > { %vm573_vm2 = vcmp.gt.f32.partialorder %v560_v0, %v511_v5  ;;  %v497_v8 = vpop.f32.mrf.mxu0  ;;  %v446_v38 = vsel %vm2050_vm5, %v1567_v39, %v380_v55 }
 0x118   : > { %vm1690_vm0 = vmand %vm1648_vm8, %vm573_vm2  ;;  %vm508_vm9 = vcmp.gt.f32.partialorder %v497_v8, %v444_v7  ;;  %v563_v11 = vpop.f32.mrf.mxu1 }
 0x119   : > { %vm1698_vm13 = vmand %vm506_vm14, %vm508_vm9  ;;  %v1101_v13 = vpop.f32.mrf.mxu0  ;;  %v577_v16 = vsel %vm1690_vm0, %v560_v0, %v511_v5  ;;  %vm637_vm9 = vcmp.lt.s32.totalorder %v1574_v40, %v1662_v1 }
 0x11a   : > { %v2026_v12 = vsel %vm1698_vm13, 4294967295, %v2025_v12  ;;  %v512_v14 = vsel %vm1698_vm13, %v497_v8, %v444_v7  ;;  %v1107_v15 = vpop.f32.mrf.mxu1  ;;  %vm639_vm8 = vmand %vm636_vm6, %vm1991_vm7  ;;  %vm703_vm13 = vcmp.lt.s32.totalorder %v1574_v40, %v1668_v4 }
 0x11b   : > { %vm574_vm2 = vcmp.gt.f32.partialorder %v563_v11, %v512_v14  ;;  %v628_v17 = vpop.f32.mrf.mxu0  ;;  %vm1714_vm14 = vmand %vm702_vm4, %vm1993_vm12 }
 0x11c   : > { %vm1722_vm6 = vmand %vm1680_vm3, %vm574_vm2  ;;  %vm641_vm7 = vcmp.gt.f32.partialorder %v628_v17, %v577_v16  ;;  %v694_v20 = vpop.f32.mrf.mxu1  ;;  %vm2033_vm3 = vcmp.lt.s32.totalorder %v1662_v1, %v1561_v37 }
 0x11d   : > { %v2030_v19 = vsel %vm1722_vm6, 4294967295, %v2029_v19  ;;  %vm1730_vm4 = vmand %vm639_vm8, %vm641_vm7  ;;  %v1112_v23 = vpop.f32.mrf.mxu0  ;;  %v578_v28 = vsel %vm1722_vm6, %v563_v11, %v512_v14  ;;  %vm2034_vm7 = vcmp.lt.s32.totalorder %v1668_v4, %v1561_v37 }
 0x11e   : > { %v2032_v22 = vsel %vm1730_vm4, 4294967295, %v2031_v22  ;;  %v645_v25 = vsel %vm1730_vm4, %v628_v17, %v577_v16  ;;  %v1118_v26 = vpop.f32.mrf.mxu1  ;;  %vm640_vm2 = vmand %vm637_vm9, %vm2033_vm3  ;;  %vm772_vm9 = vcmp.lt.s32.totalorder %v1728_v21, %v1561_v37 }
 0x11f   : > { %vm707_vm12 = vcmp.gt.f32.partialorder %v694_v20, %v645_v25  ;;  %v631_v29 = vpop.f32.mrf.mxu0  ;;  %vm1747_vm8 = vmand %vm703_vm13, %vm2034_vm7  ;;  %vm836_vm13 = vcmp.lt.s32.totalorder %v1559_v36, %v1734_v24  ;;  %vm838_vm7 = vcmp.lt.s32.totalorder %v1734_v24, %v1561_v37  ;;  %v445_v36 = vsel %vm1624_vm1, %v1567_v39, %v379_v35 }
 0x120   : > { %vm1757_vm3 = vmand %vm1714_vm14, %vm707_vm12  ;;  %vm642_vm6 = vcmp.gt.f32.partialorder %v631_v29, %v578_v28  ;;  %v697_v32 = vpop.f32.mrf.mxu1  ;;  %v513_v48 = vsel %vm1664_vm15, %v1597_v45, %v445_v36  ;;  %vm2047_vm15 = vnez %v2032_v22 }
 0x121   : > { %vm1765_vm4 = vmand %vm640_vm2, %vm642_vm6  ;;  %v1113_v34 = vpop.f32.mrf.mxu0  ;;  %v711_v44 = vsel %vm1757_vm3, %v694_v20, %v645_v25  ;;  %vm837_vm2 = vcmp.lt.s32.totalorder %v1574_v40, %v1734_v24  ;;  %v579_v52 = vsel %vm1690_vm0, %v1604_v49, %v513_v48 }
 0x122   : > { %v646_v41 = vsel %vm1765_vm4, %v631_v29, %v578_v28  ;;  %v1119_v42 = vpop.f32.mrf.mxu1  ;;  %vm773_vm12 = vmand %vm770_vm10, %vm772_vm9  ;;  %vm771_vm10 = vcmp.lt.s32.totalorder %v1574_v40, %v1728_v21  ;;  %v647_v57 = vsel %vm2047_vm15, %v1662_v1, %v579_v52 }
 0x123   : > { %vm708_vm14 = vcmp.gt.f32.partialorder %v697_v32, %v646_v41  ;;  %v762_v47 = vpop.f32.mrf.mxu0  ;;  %vm1786_vm11 = vmand %vm836_vm13, %vm838_vm7  ;;  %v713_v56 = vsel %vm1757_vm3, %v1668_v4, %v647_v57  ;;  %vm2053_vm3 = vnez %v2026_v12 }
 0x124   : > { %vm1797_vm1 = vmand %vm1747_vm8, %vm708_vm14  ;;  %vm775_vm6 = vcmp.gt.f32.partialorder %v762_v47, %v711_v44  ;;  %v828_v51 = vpop.f32.mrf.mxu1  ;;  %vm849_vm8 = vcmask 130048   ;;  %v514_v39 = vsel %vm2053_vm3, %v1597_v45, %v446_v38 }
 0x125   : > { %vm1806_vm13 = vmand %vm773_vm12, %vm775_vm6  ;;  %v1124_v54 = vpop.f32.mrf.mxu0  ;;  %v712_v61 = vsel %vm1797_vm1, %v697_v32, %v646_v41 }
 0x126   : > { %v779_v58 = vsel %vm1806_vm13, %v762_v47, %v711_v44  ;;  %v1130_v59 = vpop.f32.mrf.mxu1  ;;  %vm1821_vm0 = vmand %vm771_vm10, %vm772_vm9  ;;  %v781_v0 = vsel %vm1806_vm13, %v1728_v21, %v713_v56 }
 0x127   : > { %vm841_vm12 = vcmp.gt.f32.partialorder %v828_v51, %v779_v58  ;;  %v765_v62 = vpop.f32.mrf.mxu0  ;;  %vm1839_vm9 = vmand %vm837_vm2, %vm838_vm7  ;;  %vm2054_vm7 = vnez %v2030_v19 }
 0x128   : > { %vm843_vm14 = vmand %vm1786_vm11, %vm841_vm12  ;;  %vm776_vm10 = vcmp.gt.f32.partialorder %v765_v62, %v712_v61  ;;  %v831_v37 = vpop.f32.mrf.mxu1  ;;  %v580_v40 = vsel %vm2054_vm7, %v1604_v49, %v514_v39 }
 0x129   : > { %v845_v2 = vsel %vm843_vm14, %v828_v51, %v779_v58  ;;  %v847_v3 = vsel %vm843_vm14, %v1734_v24, %v781_v0  ;;  %vm1859_vm6 = vmand %vm1821_vm0, %vm776_vm10  ;;  %v1125_v5 = vpop.f32.mrf.mxu0  ;;  %v648_v6 = vsel %vm1765_vm4, %v1662_v1, %v580_v40 }
 0x12a   : > { %850 = vst.msk [vmem:[%s1526_s28] sm:$0xff] %vm849_vm8, %v845_v2  ;;  %852 = vst.msk [vmem:[%s1528_s20] sm:$0xff] %vm849_vm8, %v847_v3  ;;  %v780_v49 = vsel %vm1859_vm6, %v765_v62, %v712_v61  ;;  %v1131_v7 = vpop.f32.mrf.mxu1  ;;  %v714_v1 = vsel %vm1797_vm1, %v1668_v4, %v648_v6 }
 0x12b   : > { %vm842_vm4 = vcmp.gt.f32.partialorder %v831_v37, %v780_v49  ;;  %v782_v8 = vsel %vm1859_vm6, %v1728_v21, %v714_v1 }
 0x12c   : > { %vm844_vm11 = vmand %vm1839_vm9, %vm842_vm4 }
 0x12d   : > { %v846_v9 = vsel %vm844_vm11, %v831_v37, %v780_v49  ;;  %v848_v10 = vsel %vm844_vm11, %v1734_v24, %v782_v8 }
 0x12e   : > { %851 = vst.msk [vmem:[%s1526_s28 + $0x8] sm:$0xff] %vm849_vm8, %v846_v9  ;;  %853 = vst.msk [vmem:[%s1528_s20 + $0x8] sm:$0xff] %vm849_vm8, %v848_v10 }
 0x12f   : > { %1251 = shalt.err (!%p1248_p0)
}
 0x130   : > { %s1252_s20 = scalar_lea.hbm %s1875_s29, 256  ;;  %s1256_s22 = scalar_lea.hbm %s1986_s2, 512 }
 0x131   : > { %p1253_p1 = scmp.ne.s32.totalorder %s1875_s29, %s1252_s20  ;;  %p1257_p4 = scmp.lt.s32.totalorder %s1875_s29, %s1986_s2 }
 0x132   : > { %p1258_p5 = scmp.lt.s32.totalorder %s1256_s22, %s1252_s20 }
 0x133   : > { %p1254_p2 = pnand %p1253_p1, %p1478_p7 }
 0x134   : > { %p1259_p6 = por %p1258_p5, %p1257_p4 }
 0x135   : > { %p1255_p3 = pneg %p1254_p2 }
 0x137   : > { %p1260_p8 = pnand %p1259_p6, %p1255_p3 }
 0x139   : > { %1263 = shalt.err (!%p1260_p8)
}
 0x13a   : > { %s1383_s5 = smov 128   ;;  %s1384_s15 = smov 8  }
 0x13b   : > { %1132 = dma.vmem_to_hbm [thread:$0]  (%p1478_p7), %s1881_s27, 256, %s1875_s29, %s855_s17, %s1383_s5, %s1383_s5, %s1384_s15  }
 0x13c   : > { %s860_s24 = scalar_lea.sflag [#allocation6], %s1509_s9  ;;  %s1264_s25 = scalar_lea.vmem %s1894_s26, 256 }
 0x13d   : > { %p1265_p9 = scmp.ne.s32.totalorder %s1894_s26, %s1264_s25  ;;  %s1385_s10 = smov [#allocation5]  }
 0x13e   : > { %s1268_s11 = sshll.u32 %s1385_s10, 4  ;;  %s1269_s11 = int_to_ptr.vmem [resolvable:$false] %s1268_s11 }
 0x13f   : > { %p1266_p10 = pnand %p1265_p9, %p1478_p7  ;;  %s1270_s20 = scalar_lea.vmem %s1269_s11, 512 }
 0x140   : > { %p1271_p13 = scmp.lt.s32.totalorder %s1894_s26, %s1269_s11  ;;  %p1272_p0 = scmp.lt.s32.totalorder %s1270_s20, %s1264_s25 }
 0x141   : > { %p1267_p11 = pneg %p1266_p10 }
 0x142   : > { %p1273_p1 = por %p1272_p0, %p1271_p13 }
 0x144   : > { %p1274_p2 = pnand %p1273_p1, %p1267_p11 }
 0x146   : > { %1277 = shalt.err (!%p1274_p2)
}
 0x147   : > { %s1278_s27 = scalar_lea.hbm %s1892_s0, 256  ;;  %s1282_s17 = scalar_lea.hbm %s1987_s3, 512 }
 0x148   : > { %p1279_p3 = scmp.ne.s32.totalorder %s1892_s0, %s1278_s27  ;;  %p1283_p6 = scmp.lt.s32.totalorder %s1892_s0, %s1987_s3 }
 0x149   : > { %p1284_p8 = scmp.lt.s32.totalorder %s1282_s17, %s1278_s27 }
 0x14a   : > { %p1280_p4 = pnand %p1279_p3, %p1478_p7 }
 0x14b   : > { %p1285_p9 = por %p1284_p8, %p1283_p6 }
 0x14c   : > { %p1281_p5 = pneg %p1280_p4 }
 0x14e   : > { %p1286_p10 = pnand %p1285_p9, %p1281_p5 }
 0x150   : > { %1289 = shalt.err (!%p1286_p10)
}
 0x151   : > { %1133 = dma.vmem_to_hbm [thread:$0]  (%p1478_p7), %s1894_s26, 256, %s1892_s0, %s860_s24, %s1383_s5, %s1383_s5, %s1384_s15  }
 0x152 PF: > { %p1143_p11 = scmp.ge.s32.totalorder %s1376_s21, 2  ;;  %s904_s22 = sand.u32 1, %s1340_s12  }
 0x153   : > { %s905_s18 = scalar_lea.sflag [#allocation4], %s904_s22 }
 0x154   : > { %p1137_p13 = pnand %p1143_p11, %p1486_p12 }
 0x156   : > { %p1138_p0 = pneg %p1137_p13 }
 0x158   : > { %1331 = dma.done.wait (%p1138_p0), %s905_s18, 256  }
 0x159   : > { %1333 = vsyncadd (%p1138_p0), %s905_s18, 4294967040  ;;  %s914_s4 = scalar_lea.sflag [#allocation6], %s904_s22 }
 0x15a   : > { %1335 = dma.done.wait (%p1138_p0), %s914_s4, 256  }
 0x15b   : > { %1337 = vsyncadd (%p1138_p0), %s914_s4, 4294967040  ;;  %s20_s21 = sadd.s32 1, %s1376_s21   ;;  %s2057_s18 = sld [smem:[#allocation9_spill]] }
 0x15c   : > { %p17_p1 = scmp.ge.s32.totalorder %s20_s21, 6   ;;  %s2058_s30 = sld [smem:[#allocation10_spill]] }
 0x15d   : > { %s2059_s20 = sld [smem:[#allocation11_spill]]  ;;  %s2060_s12 = smov %s1344_s13 }
 0x15e   : > { %s2061_s13 = smov %s1348_s14  ;;  %s2062_s14 = smov %s1491_s7 }
 0x15f   : > { %s2063_s15 = smov %s1356_s16  ;;  %s2064_s16 = smov %s1494_s8 }
 0x160   : > { %s2065_s17 = smov %s1368_s19  ;;  %19 = sbr.rel (!%p17_p1) target bundleno = 10 (0xa), region = 115 }
 0x162   : > { %s2066_s19 = smov %s2058_s30 }
 0x165   :  { %919 = vsyncpa [#allocation4], 1 }
 0x166   :  { %921 = vsyncpa [#allocation4 + $0x1], 1 }
 0x167   :  { %922 = vsyncpa [#allocation6], 1 }
 0x168   :  { %924 = vsyncpa [#allocation6 + $0x1], 1 }

// kernel: device_pipeline.2
= control target key start
LH: loop header
LB: loop body
LE: loop exit
PB: predicated region body
PF: predicated region fallthrough
CT: control target
= control target key end

     0   :  { %s6295_s0 = inlined_call_operand.vmem [shape: f32[2,10,64], index: 0, kind: input, shape index: {}]   ;;  %s6296_s1 = inlined_call_operand.vmem [shape: s32[2,256,3], index: 1, kind: input, shape index: {}]   ;;  %s6297_s2 = inlined_call_operand.vmem [shape: bf16[64,512], index: 2, kind: input, shape index: {}]   ;;  %s6298_s3 = inlined_call_operand.vmem [shape: bf16[16,512], index: 3, kind: input, shape index: {}]   ;;  %s6299_s4 = inlined_call_operand.vmem [shape: f32[1,512], index: 4, kind: input, shape index: {}]   ;;  %s6300_s5 = inlined_call_operand.vmem [shape: bf16[256,256], index: 5, kind: input, shape index: {}]   ;;  %s6301_s6 = inlined_call_operand.hbm [shape: bf16[2,256,256], index: 6, kind: output, shape index: {0}]   ;;  %s6302_s7 = inlined_call_operand.vmem [shape: bf16[2,256,128], index: 7, kind: output, shape index: {1}]   ;;  %s6303_s8 = inlined_call_operand.vmem [shape: bf16[2,256,128], index: 8, kind: output, shape index: {2}]  }
   0x1   :  { %6305 = sst [smem:[#allocation65_spill]] %s6295_s0 }
   0x2   :  { %14 = vsyncpa [#allocation3], 0 }
   0x3   :  { %16 = vsyncpa [#allocation3 + $0x1], 0  ;;  %s4693_s27 = smov 0   ;;  %s4695_s28 = smov 0  }
   0x4   :  { %s4697_s29 = smov 0   ;;  %s4699_s30 = smov 0  }
   0x5   :  { %s4701_s9 = smov 0   ;;  %s4703_s10 = smov 0  }
   0x6 LB: > { %s3699_s11 = sadd.s32 4294967295, %s4638_s10   ;;  %s3700_s12 = sadd.s32 4294967294, %s4638_s10   ;;  %s4638_s10 = sphi %s4703_s10, %s22_s10   ;;  %s4634_s9 = sphi %s4701_s9, %s6436_s9   ;;  %s4630_s30 = sphi %s4699_s30, %s6435_s30   ;;  %s4626_s29 = sphi %s4697_s29, %s6434_s29   ;;  %s4622_s28 = sphi %s4695_s28, %s6433_s28   ;;  %s4618_s27 = sphi %s4693_s27, %s6432_s27  }
   0x7   : > { %s34_s13 = sadd.s32 1, %s4634_s9  ;;  %s181_s14 = sadd.s32 1, %s4626_s29 }
   0x8   : > { %p36_p0 = scmp.ge.s32.totalorder %s34_s13, 2  ;;  %p191_p1 = scmp.ne.s32.totalorder %s4626_s29, %s4622_s28 }
   0x9   : > { %p192_p2 = scmp.eq.s32.totalorder %s3699_s11, 1  ;;  %p197_p3 = scmp.ne.s32.totalorder %s4622_s28, %s4618_s27 }
   0xa   : > { %s6438_s13 = smov (%p36_p0, %s34_s13), 0  ;;  %p198_p5 = scmp.eq.s32.totalorder %s3700_s12, 1 }
   0xb   : > { %p4733_p4 = por %p192_p2, %p191_p1  ;;  %s176_s16 = ssub.s32 %s4634_s9, %s6438_s13 }
   0xc   : > { %p3703_p6 = scmp.ge.s32.totalorder %s4638_s10, 1  ;;  %p179_p7 = scmp.eq.s32.totalorder %s176_s16, 0 }
   0xd   : > { %p4740_p8 = por %p198_p5, %p197_p3  ;;  %p305_p9 = scmp.lt.s32.totalorder %s4638_s10, 3 }
   0xe   : > { %s4746_s18 = scalar_select %p179_p7, %s4626_s29, %s181_s14  }
   0xf   : > { %p306_p10 = pnand %p3703_p6, %p305_p9 }
  0x11   : > { %309 = sbr.rel (%p306_p10) target bundleno = 1049 (0x419), region = 44 }
  0x16   : > { %p366_p11 = scmp.lt.s32.totalorder %s4630_s30, 1  ;;  %v4640_v0 = vmov 0   ;;  %v4641_v7 = vmov 1   ;;  %s6308_s0 = sld [smem:[#allocation65_spill]]  ;;  %vm409_vm0 = vcmask 1046528   ;;  %vm415_vm1 = vcmask 261120  }
  0x17   : > { %4450 = vset.pattern.permute.xlu0 %v4640_v0  ;;  %4448 = vset.pattern.permute.xlu1 %v4640_v0  ;;  %vm1142_vm2 = vcmask 1043456   ;;  %vm1143_vm3 = vcmask 1044480   ;;  %v4642_v25 = vmov 65535   ;;  %v4643_v42 = vmov 2   ;;  %v4486_v49 = vld [vmem:[%s6298_s3 + $0x4] ss:$16 sps:$4 sm:$0xff]  }
  0x18   : > { %s4752_s19 = scalar_select %p366_p11, %s4630_s30, 1  ;;  %1487 = vmatprep.mubr.bf16.mxu1 %v4640_v0  ;;  %v1144_v26 = vsel %vm1142_vm2, 4294967295, %v4642_v25  ;;  %v4928_v50 = vld [vmem:[%s6298_s3] ss:$16 sps:$4 sm:$0xff]   ;;  %4384 = vmatprep.subr.bf16.mxu1 %v4486_v49  ;;  %v6304_v59 = vlaneseq  ;;  %vm1093_vm11 = vcmask 72704  }
  0x19   : > { %v1145_v27 = vsel %vm1143_vm3, %v1144_v26, 0  ;;  %4385 = vmatpush1.bf16.msra.mxu1 %v4928_v50  ;;  %s4142_s12 = sshll.u32 %s4630_s30, 12  ;;  %s4645_s30 = smov [#allocation2]  }
  0x1a   : > { %s4043_s20 = sshll.u32 %s4752_s19, 8  ;;  %s4042_s24 = sshll.u32 %s4752_s19, 4  ;;  %v4953_v63 = vand.u32 127, %v6304_v59 }
  0x1b   : > { %s4759_s23 = scalar_lea.vmem %s6296_s1, %s4043_s20  ;;  %s6198_s21 = scalar_lea.hbm %s6301_s6, %s4142_s12 }
  0x1c   : > { %v4762_v1 = vld [vmem:[%s4759_s23 + $0x10] sm:$0xff]  ;;  %v4765_v2 = vld [vmem:[%s4759_s23] sm:$0xff]  ;;  %v4773_v4 = vld [vmem:[%s4759_s23 + $0x8] sm:$0xff]  ;;  %s370_s11 = scalar_lea.vmem %s6308_s0, %s4042_s24  ;;  %s341_s24 = sand.u32 1, %s4622_s28  }
  0x1d   : > { %668 = vperm.xlu0 %4450, %v4762_v1   ;;  %662 = vperm.xlu1 %4448, %v4765_v2   ;;  %v4770_v3 = vld [vmem:[%s4759_s23 + $0x30] sm:$0xff]  ;;  %v4781_v6 = vld [vmem:[%s4759_s23 + $0x18] sm:$0xff]  ;;  %v4796_v10 = vld [vmem:[%s4759_s23 + $0x20] sm:$0xff]  ;;  %s3704_s25 = sshll.u32 %s341_s24, 8  ;;  %s6204_s22 = scalar_lea.sflag [#allocation3], %s341_s24 }
  0x1e   : > { %v4778_v5 = vld [vmem:[%s4759_s23 + $0x50] sm:$0xff]  ;;  %v403_v13 = vld [vmem:[%s370_s11] sm:$0xff]  ;;  %v404_v14 = vld [vmem:[%s370_s11 + $0x8] sm:$0x3]  ;;  %s5860_s26 = scalar_lea.vmem [#allocation2], %s3704_s25  ;;  %s4566_s25 = sshll.u32 %s4645_s30, 4  ;;  %s4567_s25 = int_to_ptr.vmem [resolvable:$false] %s4566_s25 }
  0x1f   : > { %v4786_v8 = vld [vmem:[%s4759_s23 + $0x70] sm:$0xff]  ;;  %v4816_v15 = vld [vmem:[%s4759_s23 + $0x28] sm:$0xff]  ;;  %v405_v16 = vsub.f32 0.0, %v403_v13  ;;  %v406_v17 = vsub.f32 0.0, %v404_v14  ;;  %v4822_v21 = vld [vmem:[%s4759_s23 + $0x38] sm:$0xff]  ;;  %s3526_s14 = sshll.u32 %s5860_s26, 4  ;;  %s6200_s14 = int_to_ptr.vmem [resolvable:$true] %s3526_s14 }
  0x20   : > { %v4790_v9 = vld [vmem:[%s4759_s23 + $0x90] sm:$0xff]  ;;  %v4831_v29 = vld [vmem:[%s4759_s23 + $0x40] sm:$0xff]  ;;  %v4838_v30 = vld [vmem:[%s4759_s23 + $0x48] sm:$0xff]  ;;  %p4569_p1 = scmp.lt.s32.totalorder %s6200_s14, %s4567_s25 }
  0x21   : > { %680 = vperm.xlu0 %4450, %v4770_v3   ;;  %665 = vperm.xlu1 %4448, %v4773_v4   ;;  %v4799_v11 = vld [vmem:[%s4759_s23 + $0xb0] sm:$0xff]  ;;  %v410_v18 = vrot.slane %v405_v16, 1  ;;  %v411_v19 = vrot.slane %v406_v17, 1  ;;  %v4846_v31 = vld [vmem:[%s4759_s23 + $0x58] sm:$0xff]  ;;  %v4849_v32 = vld [vmem:[%s4759_s23 + $0x68] sm:$0xff] }
  0x22   : > { %v4806_v12 = vld [vmem:[%s4759_s23 + $0xd0] sm:$0xff]  ;;  %v4858_v33 = vld [vmem:[%s4759_s23 + $0x88] sm:$0xff]  ;;  %v431_v34 = vld [vmem:[%s4759_s23 + $0x60] sm:$0xff] }
  0x23   : > { %v412_v20 = vsel %vm409_vm0, %v410_v18, %v411_v19  ;;  %v417_v23 = vsel %vm415_vm1, %v404_v14, %v411_v19  ;;  %v4865_v35 = vld [vmem:[%s4759_s23 + $0xa8] sm:$0xff]  ;;  %v4872_v36 = vld [vmem:[%s4759_s23 + $0x78] sm:$0xff]  ;;  %v435_v39 = vld [vmem:[%s4759_s23 + $0x80] sm:$0xff] }
  0x24   : > { %v416_v22 = vsel %vm415_vm1, %v403_v13, %v412_v20  ;;  %v4875_v37 = vld [vmem:[%s4759_s23 + $0xc8] sm:$0xff]  ;;  %v4890_v40 = vld [vmem:[%s4759_s23 + $0xf0] sm:$0xff]  ;;  %v4898_v41 = vld [vmem:[%s4759_s23 + $0x98] sm:$0xff] }
  0x25   : > { %692 = vperm.xlu0 %4450, %v4778_v5   ;;  %4449 = vset.pattern.permute.xlu1 %v4641_v7  ;;  %v418_v24 = vpack.c.bf16 %v417_v23, %v416_v22  ;;  %v4884_v38 = vld [vmem:[%s4759_s23 + $0xe8] sm:$0xff]  ;;  %v439_v43 = vld [vmem:[%s4759_s23 + $0xa0] sm:$0xff]  ;;  %v4915_v46 = vld [vmem:[%s4759_s23 + $0xb8] sm:$0xff] }
  0x26   : > { %463 = vperm.xlu1 %4449, %v4781_v6   ;;  %v443_v54 = vld [vmem:[%s4759_s23 + $0xc0] sm:$0xff]  ;;  %v4950_v62 = vld [vmem:[%s4759_s23 + $0xd8] sm:$0xff] }
  0x27   : > { %v1147_v28 = vand.u32 %v1145_v27, %v418_v24 }
  0x29   : > { %704 = vperm.xlu0 %4450, %v4786_v8   ;;  %4350 = vmatprep.subr.bf16.mxu0 %v1147_v28 }
  0x2a   : > { %4451 = vset.pattern.permute.xlu1 %v4640_v0  ;;  %4351 = vmatpush3.bf16.msra.mxu0 %v1147_v28 }
  0x2b   : > { %671 = vperm.xlu1 %4451, %v4781_v6   ;;  %1429 = vmatprep.subr.bf16.mxu0 %v4486_v49 }
  0x2d   : > { %716 = vperm.xlu0 %4450, %v4790_v9  }
  0x2f   : > { %4452 = vset.pattern.permute.xlu1 %v4641_v7 }
  0x30   : > { %466 = vperm.xlu1 %4452, %v4796_v10  }
  0x31   : > { %728 = vperm.xlu0 %4450, %v4799_v11  }
  0x34   : > { %4453 = vset.pattern.permute.xlu1 %v4640_v0 }
  0x35   : > { %740 = vperm.xlu0 %4450, %v4806_v12   ;;  %674 = vperm.xlu1 %4453, %v4796_v10  }
  0x39   : > { %4475 = vset.pattern.permute.xlu0 %v4641_v7  ;;  %677 = vperm.xlu1 %4453, %v4816_v15  }
  0x3a   : > { %454 = vperm.xlu0 %4475, %v4765_v2  }
  0x3d   : > { %4454 = vset.pattern.permute.xlu1 %v4641_v7 }
  0x3e   : > { %457 = vperm.xlu0 %4475, %v4773_v4   ;;  %475 = vperm.xlu1 %4454, %v4822_v21  }
  0x42   : > { %460 = vperm.xlu0 %4475, %v4762_v1   ;;  %4455 = vset.pattern.permute.xlu1 %v4640_v0 }
  0x43   : > { %683 = vperm.xlu1 %4455, %v4822_v21  }
  0x46   : > { %469 = vperm.xlu0 %4475, %v4816_v15  }
  0x47   : > { %4456 = vset.pattern.permute.xlu1 %v4641_v7 }
  0x48   : > { %478 = vperm.xlu1 %4456, %v4831_v29  }
  0x4a   : > { %472 = vperm.xlu0 %4475, %v4770_v3  }
  0x4c   : > { %4457 = vset.pattern.permute.xlu1 %v4640_v0 }
  0x4d   : > { %686 = vperm.xlu1 %4457, %v4831_v29  }
  0x4e   : > { %481 = vperm.xlu0 %4475, %v4838_v30  }
  0x51   : > { %689 = vperm.xlu1 %4457, %v4838_v30  }
  0x52   : > { %484 = vperm.xlu0 %4475, %v4778_v5  }
  0x55   : > { %4458 = vset.pattern.permute.xlu1 %v4641_v7 }
  0x56   : > { %487 = vperm.xlu1 %4458, %v4846_v31   ;;  %493 = vperm.xlu0 %4475, %v4849_v32  }
  0x5a   : > { %4459 = vset.pattern.permute.xlu1 %v4640_v0  ;;  %496 = vperm.xlu0 %4475, %v4786_v8  }
  0x5b   : > { %695 = vperm.xlu1 %4459, %v4846_v31  }
  0x5e   : > { %505 = vperm.xlu0 %4475, %v4858_v33  }
  0x5f   : > { %4460 = vset.pattern.permute.xlu1 %v4641_v7 }
  0x60   : > { %490 = vperm.xlu1 %4460, %v431_v34  }
  0x62   : > { %508 = vperm.xlu0 %4475, %v4790_v9  }
  0x64   : > { %4461 = vset.pattern.permute.xlu1 %v4640_v0 }
  0x65   : > { %698 = vperm.xlu1 %4461, %v431_v34  }
  0x66   : > { %517 = vperm.xlu0 %4475, %v4865_v35  }
  0x69   : > { %701 = vperm.xlu1 %4461, %v4849_v32  }
  0x6a   : > { %520 = vperm.xlu0 %4475, %v4799_v11  }
  0x6d   : > { %4462 = vset.pattern.permute.xlu1 %v4641_v7 }
  0x6e   : > { %499 = vperm.xlu1 %4462, %v4872_v36   ;;  %529 = vperm.xlu0 %4475, %v4875_v37  }
  0x72   : > { %4463 = vset.pattern.permute.xlu1 %v4640_v0  ;;  %532 = vperm.xlu0 %4475, %v4806_v12  }
  0x73   : > { %707 = vperm.xlu1 %4463, %v4872_v36  }
  0x76   : > { %541 = vperm.xlu0 %4475, %v4884_v38  }
  0x77   : > { %4464 = vset.pattern.permute.xlu1 %v4641_v7 }
  0x78   : > { %502 = vperm.xlu1 %4464, %v435_v39  }
  0x7a   : > { %544 = vperm.xlu0 %4475, %v4890_v40  }
  0x7c   : > { %4465 = vset.pattern.permute.xlu1 %v4640_v0 }
  0x7d   : > { %710 = vperm.xlu1 %4465, %v435_v39  }
  0x7e   : > { %4480 = vset.pattern.permute.xlu0 %v4640_v0 }
  0x7f   : > { %752 = vperm.xlu0 %4480, %v4890_v40  }
  0x81   : > { %713 = vperm.xlu1 %4465, %v4858_v33  }
  0x83   : > { %4483 = vset.pattern.permute.xlu0 %v4643_v42 }
  0x84   : > { %889 = vperm.xlu0 %4483, %v4773_v4  }
  0x85   : > { %4466 = vset.pattern.permute.xlu1 %v4641_v7 }
  0x86   : > { %511 = vperm.xlu1 %4466, %v4898_v41  }
  0x88   : > { %898 = vperm.xlu0 %4483, %v4796_v10  }
  0x8a   : > { %4467 = vset.pattern.permute.xlu1 %v4640_v0 }
  0x8b   : > { %719 = vperm.xlu1 %4467, %v4898_v41  }
  0x8c   : > { %904 = vperm.xlu0 %4483, %v4770_v3  }
  0x8f   : > { %4468 = vset.pattern.permute.xlu1 %v4641_v7 }
  0x90   : > { %514 = vperm.xlu1 %4468, %v439_v43   ;;  %910 = vperm.xlu0 %4483, %v4831_v29  }
  0x94   : > { %4469 = vset.pattern.permute.xlu1 %v4640_v0  ;;  %916 = vperm.xlu0 %4483, %v4778_v5   ;;  %v447_v5 = vld [vmem:[%s4759_s23 + $0xe0] sm:$0xff] }
  0x95   : > { %722 = vperm.xlu1 %4469, %v439_v43  }
  0x98   : > { %v663_v44 = vpop.permute.xlu1 %662  ;;  %v669_v45 = vpop.permute.xlu0 %668  ;;  %922 = vperm.xlu0 %4483, %v431_v34  }
  0x99   : > { %725 = vperm.xlu1 %4469, %v4865_v35   ;;  %vm757_vm6 = vcmp.eq.s32.totalorder %v4953_v63, %v663_v44  ;;  %vm759_vm7 = vcmp.eq.s32.totalorder %v4953_v63, %v669_v45 }
  0x9c   : > { %v666_v47 = vpop.permute.xlu1 %665  ;;  %v4917_v48 = vpop.permute.xlu0 %680  ;;  %928 = vperm.xlu0 %4483, %v4786_v8   ;;  %v4644_v8 = vmov 0.0  }
  0x9d   : > { %4470 = vset.pattern.permute.xlu1 %v4641_v7  ;;  %vm758_vm4 = vcmp.eq.s32.totalorder %v4953_v63, %v666_v47  ;;  %v3745_v13 = vsel %vm757_vm6, 1.0, %v4644_v8  ;;  %v3747_v14 = vsel %vm759_vm7, 1.0, %v4644_v8  ;;  %vm763_vm0 = vcmp.eq.s32.totalorder %v4953_v63, %v4917_v48 }
  0x9e   : > { %523 = vperm.xlu1 %4470, %v4915_v46   ;;  %v3751_v48 = vsel %vm763_vm0, 1.0, %v4644_v8 }
  0xa0   : > { %v4930_v51 = vpop.permute.xlu0 %692  ;;  %934 = vperm.xlu0 %4483, %v435_v39  }
  0xa1   : > { %v464_v52 = vpop.permute.xlu1 %463 }
  0xa2   : > { %4471 = vset.pattern.permute.xlu1 %v4640_v0  ;;  %vm552_vm10 = vcmp.eq.s32.totalorder %v4953_v63, %v464_v52 }
  0xa3   : > { %731 = vperm.xlu1 %4471, %v4915_v46   ;;  %v3716_v24 = vsel %vm552_vm10, 1.0, %v4644_v8 }
  0xa4   : > { %v4935_v53 = vpop.permute.xlu0 %704  ;;  %940 = vperm.xlu0 %4483, %v4790_v9   ;;  %v3746_v9 = vsel %vm758_vm4, 1.0, %v4644_v8 }
  0xa5   : > { %v853_v19 = vpack.c.bf16 %v3746_v9, %v3745_v13 }
  0xa6   : > { %v672_v55 = vpop.permute.xlu1 %671 }
  0xa7   : > { %4472 = vset.pattern.permute.xlu1 %v4641_v7  ;;  %vm760_vm8 = vcmp.eq.s32.totalorder %v4953_v63, %v672_v55 }
  0xa8   : > { %526 = vperm.xlu1 %4472, %v443_v54   ;;  %v4940_v56 = vpop.permute.xlu0 %716  ;;  %946 = vperm.xlu0 %4483, %v439_v43   ;;  %v3748_v17 = vsel %vm760_vm8, 1.0, %v4644_v8 }
  0xa9   : > { %v854_v25 = vpack.c.bf16 %v3748_v17, %v3747_v14 }
  0xab   : > { %v467_v57 = vpop.permute.xlu1 %466 }
  0xac   : > { %4473 = vset.pattern.permute.xlu1 %v4640_v0  ;;  %v4943_v58 = vpop.permute.xlu0 %728  ;;  %952 = vperm.xlu0 %4483, %v4799_v11   ;;  %vm553_vm14 = vcmp.eq.s32.totalorder %v4953_v63, %v467_v57 }
  0xad   : > { %734 = vperm.xlu1 %4473, %v443_v54   ;;  %v3717_v39 = vsel %vm553_vm14, 1.0, %v4644_v8 }
  0xb0   : > { %v675_v60 = vpop.permute.xlu1 %674  ;;  %v4946_v61 = vpop.permute.xlu0 %740  ;;  %958 = vperm.xlu0 %4483, %v443_v54  }
  0xb1   : > { %737 = vperm.xlu1 %4473, %v4875_v37   ;;  %vm761_vm15 = vcmp.eq.s32.totalorder %v4953_v63, %v675_v60 }
  0xb4   : > { %v678_v3 = vpop.permute.xlu1 %677  ;;  %964 = vperm.xlu0 %4483, %v4806_v12  }
  0xb5   : > { %v455_v4 = vpop.permute.xlu0 %454  ;;  %4474 = vset.pattern.permute.xlu1 %v4641_v7  ;;  %vm762_vm12 = vcmp.eq.s32.totalorder %v4953_v63, %v678_v3 }
  0xb6   : > { %vm549_vm5 = vcmp.eq.s32.totalorder %v4953_v63, %v455_v4  ;;  %535 = vperm.xlu1 %4474, %v4950_v62   ;;  %v3750_v28 = vsel %vm762_vm12, 1.0, %v4644_v8 }
  0xb7   : > { %v3713_v10 = vsel %vm549_vm5, 1.0, %v4644_v8 }
  0xb8   : > { %970 = vperm.xlu0 %4483, %v447_v5  }
  0xb9   : > { %v458_v11 = vpop.permute.xlu0 %457  ;;  %v476_v12 = vpop.permute.xlu1 %475 }
  0xba   : > { %vm550_vm9 = vcmp.eq.s32.totalorder %v4953_v63, %v458_v11  ;;  %4476 = vset.pattern.permute.xlu1 %v4640_v0  ;;  %vm556_vm3 = vcmp.eq.s32.totalorder %v4953_v63, %v476_v12 }
  0xbb   : > { %v3714_v16 = vsel %vm550_vm9, 1.0, %v4644_v8  ;;  %743 = vperm.xlu1 %4476, %v4950_v62   ;;  %v3720_v55 = vsel %vm556_vm3, 1.0, %v4644_v8  ;;  %vm767_vm9 = vcmp.eq.s32.totalorder %v4953_v63, %v4930_v51 }
  0xbc   : > { %v645_v18 = vpack.c.bf16 %v3714_v16, %v3713_v10  ;;  %976 = vperm.xlu0 %4483, %v4890_v40   ;;  %v3749_v40 = vsel %vm761_vm15, 1.0, %v4644_v8 }
  0xbd   : > { %v461_v20 = vpop.permute.xlu0 %460  ;;  %v855_v45 = vpack.c.bf16 %v3750_v28, %v3749_v40 }
  0xbe   : > { %vm551_vm13 = vcmp.eq.s32.totalorder %v4953_v63, %v461_v20  ;;  %v684_v22 = vpop.permute.xlu1 %683  ;;  %v869_v23 = vsub.bf16 %v645_v18, %v853_v19 }
  0xbf   : > { %v3715_v26 = vsel %vm551_vm13, 1.0, %v4644_v8  ;;  %4477 = vset.pattern.permute.xlu1 %v4641_v7  ;;  %vm764_vm1 = vcmp.eq.s32.totalorder %v4953_v63, %v684_v22 }
  0xc0   : > { %v646_v27 = vpack.c.bf16 %v3716_v24, %v3715_v26  ;;  %538 = vperm.xlu1 %4477, %v447_v5   ;;  %4352 = vmatprep.mubr.msk.bf16.mxu0 %vm1093_vm11, %v869_v23  ;;  %v3752_v49 = vsel %vm764_vm1, 1.0, %v4644_v8 }
  0xc1   : > { %v470_v29 = vpop.permute.xlu0 %469  ;;  %v856_v60 = vpack.c.bf16 %v3752_v49, %v3751_v48 }
  0xc2   : > { %v870_v34 = vsub.bf16 %v646_v27, %v854_v25  ;;  %vm554_vm2 = vcmp.eq.s32.totalorder %v4953_v63, %v470_v29 }
  0xc3   : > { %v3718_v43 = vsel %vm554_vm2, 1.0, %v4644_v8  ;;  %v479_v44 = vpop.permute.xlu1 %478 }
  0xc4   : > { %v647_v47 = vpack.c.bf16 %v3718_v43, %v3717_v39  ;;  %4478 = vset.pattern.permute.xlu1 %v4640_v0  ;;  %4353 = vmatmul.mubr.msk.bf16.vlgmr.msra.gmra.mxu0 %vm1093_vm11, %v870_v34  ;;  %vm557_vm6 = vcmp.eq.s32.totalorder %v4953_v63, %v479_v44  ;;  %v4489_v34 = vld [vmem:[%s6298_s3 + $0xc] ss:$16 sps:$4 sm:$0xff]  }
  0xc5   : > { %v473_v52 = vpop.permute.xlu0 %472  ;;  %746 = vperm.xlu1 %4478, %v447_v5   ;;  %1430 = vmatpush1.bf16.msra.mxu0 %v4928_v50  ;;  %v5006_v50 = vld [vmem:[%s4759_s23 + $0xf8] sm:$0xff]  ;;  %v3721_v12 = vsel %vm557_vm6, 1.0, %v4644_v8  ;;  %s4562_s23 = scalar_lea.vmem %s6200_s14, 4096 }
  0xc6   : > { %v871_v54 = vsub.bf16 %v647_v47, %v855_v45  ;;  %vm555_vm4 = vcmp.eq.s32.totalorder %v4953_v63, %v473_v52  ;;  %1622 = vmatprep.subr.bf16.mxu0 %v4489_v34  ;;  %p4563_p12 = scmp.ne.s32.totalorder %s6200_s14, %s4562_s23 }
  0xc7   : > { %v3719_v57 = vsel %vm555_vm4, 1.0, %v4644_v8  ;;  %vm771_vm4 = vcmp.eq.s32.totalorder %v4953_v63, %v4935_v53 }
  0xc8   : > { %v648_v3 = vpack.c.bf16 %v3720_v55, %v3719_v57  ;;  %v687_v4 = vpop.permute.xlu1 %686  ;;  %4356 = vmatprep.mubr.msk.bf16.mxu0 %vm1093_vm11, %v871_v54  ;;  %p4564_p13 = pnand %p4563_p12, %p4733_p4 }
  0xc9   : > { %v482_v9 = vpop.permute.xlu0 %481  ;;  %749 = vperm.xlu1 %4478, %v4884_v38   ;;  %vm765_vm7 = vcmp.eq.s32.totalorder %v4953_v63, %v687_v4 }
  0xca   : > { %v872_v10 = vsub.bf16 %v648_v3, %v856_v60  ;;  %vm558_vm5 = vcmp.eq.s32.totalorder %v4953_v63, %v482_v9  ;;  %v3753_v13 = vsel %vm765_vm7, 1.0, %v4644_v8  ;;  %p4565_p0 = pneg %p4564_p13 }
  0xcb   : > { %v3722_v5 = vsel %vm558_vm5, 1.0, %v4644_v8 }
  0xcc   : > { %v690_v11 = vpop.permute.xlu1 %689  ;;  %4357 = vmatmul.mubr.msk.bf16.gmra.mxu0 %vm1093_vm11, %v872_v10  ;;  %v649_v16 = vpack.c.bf16 %v3722_v5, %v3721_v12 }
  0xcd   : > { %vm766_vm8 = vcmp.eq.s32.totalorder %v4953_v63, %v690_v11  ;;  %4479 = vset.pattern.permute.xlu1 %v4641_v7  ;;  %v485_v18 = vpop.permute.xlu0 %484  ;;  %v3755_v7 = vsel %vm767_vm9, 1.0, %v4644_v8 }
  0xce   : > { %v3754_v14 = vsel %vm766_vm8, 1.0, %v4644_v8  ;;  %547 = vperm.xlu1 %4479, %v5006_v50   ;;  %vm559_vm10 = vcmp.eq.s32.totalorder %v4953_v63, %v485_v18 }
  0xcf   : > { %v857_v17 = vpack.c.bf16 %v3754_v14, %v3753_v13  ;;  %v3723_v22 = vsel %vm559_vm10, 1.0, %v4644_v8 }
  0xd1   : > { %v873_v19 = vsub.bf16 %v649_v16, %v857_v17  ;;  %v488_v20 = vpop.permute.xlu1 %487  ;;  %v494_v29 = vpop.permute.xlu0 %493 }
  0xd2   : > { %4481 = vset.pattern.permute.xlu1 %v4640_v0  ;;  %vm560_vm12 = vcmp.eq.s32.totalorder %v4953_v63, %v488_v20  ;;  %vm562_vm14 = vcmp.eq.s32.totalorder %v4953_v63, %v494_v29 }
  0xd3   : > { %755 = vperm.xlu1 %4481, %v5006_v50   ;;  %4360 = vmatprep.mubr.msk.bf16.mxu0 %vm1093_vm11, %v873_v19  ;;  %v3724_v23 = vsel %vm560_vm12, 1.0, %v4644_v8 }
  0xd4   : > { %v650_v25 = vpack.c.bf16 %v3724_v23, %v3723_v22 }
  0xd5   : > { %v497_v45 = vpop.permute.xlu0 %496 }
  0xd6   : > { %v696_v24 = vpop.permute.xlu1 %695  ;;  %vm563_vm2 = vcmp.eq.s32.totalorder %v4953_v63, %v497_v45 }
  0xd7   : > { %vm768_vm13 = vcmp.eq.s32.totalorder %v4953_v63, %v696_v24  ;;  %4482 = vset.pattern.permute.xlu1 %v4643_v42 }
  0xd8   : > { %v3756_v51 = vsel %vm768_vm13, 1.0, %v4644_v8  ;;  %886 = vperm.xlu1 %4482, %v4765_v2   ;;  %v3726_v2 = vsel %vm562_vm14, 1.0, %v4644_v8  ;;  %vm775_vm13 = vcmp.eq.s32.totalorder %v4953_v63, %v4940_v56 }
  0xd9   : > { %v858_v26 = vpack.c.bf16 %v3756_v51, %v3755_v7  ;;  %v506_v53 = vpop.permute.xlu0 %505 }
  0xda   : > { %vm566_vm6 = vcmp.eq.s32.totalorder %v4953_v63, %v506_v53 }
  0xdb   : > { %v874_v27 = vsub.bf16 %v650_v25, %v858_v26  ;;  %v491_v28 = vpop.permute.xlu1 %490 }
  0xdc   : > { %892 = vperm.xlu1 %4482, %v4762_v1   ;;  %vm561_vm15 = vcmp.eq.s32.totalorder %v4953_v63, %v491_v28 }
  0xdd   : > { %4361 = vmatmul.mubr.msk.bf16.gmra.mxu0 %vm1093_vm11, %v874_v27  ;;  %v3725_v1 = vsel %vm561_vm15, 1.0, %v4644_v8  ;;  %v509_v13 = vpop.permute.xlu0 %508 }
  0xde   : > { %v651_v43 = vpack.c.bf16 %v3726_v2, %v3725_v1  ;;  %vm567_vm10 = vcmp.eq.s32.totalorder %v4953_v63, %v509_v13 }
  0xe0   : > { %895 = vperm.xlu1 %4482, %v4781_v6   ;;  %v699_v42 = vpop.permute.xlu1 %698 }
  0xe1   : > { %vm769_vm0 = vcmp.eq.s32.totalorder %v4953_v63, %v699_v42  ;;  %v518_v7 = vpop.permute.xlu0 %517 }
  0xe2   : > { %v3757_v40 = vsel %vm769_vm0, 1.0, %v4644_v8  ;;  %vm570_vm0 = vcmp.eq.s32.totalorder %v4953_v63, %v518_v7 }
  0xe4   : > { %901 = vperm.xlu1 %4482, %v4816_v15   ;;  %v702_v39 = vpop.permute.xlu1 %701  ;;  %v3727_v15 = vsel %vm563_vm2, 1.0, %v4644_v8 }
  0xe5   : > { %vm770_vm1 = vcmp.eq.s32.totalorder %v4953_v63, %v702_v39 }
  0xe6   : > { %v3758_v6 = vsel %vm770_vm1, 1.0, %v4644_v8 }
  0xe7   : > { %v859_v44 = vpack.c.bf16 %v3758_v6, %v3757_v40 }
  0xe8   : > { %907 = vperm.xlu1 %4482, %v4822_v21   ;;  %v3759_v21 = vsel %vm771_vm4, 1.0, %v4644_v8  ;;  %vm779_vm4 = vcmp.eq.s32.totalorder %v4953_v63, %v4943_v58 }
  0xe9   : > { %v875_v47 = vsub.bf16 %v651_v43, %v859_v44  ;;  %v500_v48 = vpop.permute.xlu1 %499  ;;  %v3767_v29 = vsel %vm779_vm4, 1.0, %v4644_v8 }
  0xea   : > { %vm564_vm3 = vcmp.eq.s32.totalorder %v4953_v63, %v500_v48 }
  0xeb   : > { %4364 = vmatprep.mubr.msk.bf16.mxu0 %vm1093_vm11, %v875_v47  ;;  %v3728_v49 = vsel %vm564_vm3, 1.0, %v4644_v8 }
  0xec   : > { %913 = vperm.xlu1 %4482, %v4838_v30   ;;  %v652_v55 = vpack.c.bf16 %v3728_v49, %v3727_v15 }
  0xee   : > { %v708_v52 = vpop.permute.xlu1 %707 }
  0xef   : > { %vm772_vm5 = vcmp.eq.s32.totalorder %v4953_v63, %v708_v52 }
  0xf0   : > { %v3760_v54 = vsel %vm772_vm5, 1.0, %v4644_v8  ;;  %919 = vperm.xlu1 %4482, %v4846_v31   ;;  %v3730_v31 = vsel %vm566_vm6, 1.0, %v4644_v8 }
  0xf1   : > { %v860_v57 = vpack.c.bf16 %v3760_v54, %v3759_v21 }
  0xf3   : > { %v876_v60 = vsub.bf16 %v652_v55, %v860_v57  ;;  %v503_v30 = vpop.permute.xlu1 %502 }
  0xf4   : > { %925 = vperm.xlu1 %4482, %v4849_v32   ;;  %vm565_vm7 = vcmp.eq.s32.totalorder %v4953_v63, %v503_v30 }
  0xf5   : > { %4365 = vmatmul.mubr.msk.bf16.gmra.mxu0 %vm1093_vm11, %v876_v60  ;;  %v3729_v4 = vsel %vm565_vm7, 1.0, %v4644_v8 }
  0xf6   : > { %v653_v10 = vpack.c.bf16 %v3730_v31, %v3729_v4  ;;  %v4498_v31 = vld [vmem:[%s6297_s2 + $0x64] ss:$16 sps:$4 sm:$0xff]  }
  0xf7   : > { %1938 = vmatprep.subr.bf16.mxu1 %v4498_v31  ;;  %v4505_v31 = vld [vmem:[%s6297_s2 + $0x20] ss:$16 sps:$4 sm:$0xff]  }
  0xf8   : > { %931 = vperm.xlu1 %4482, %v4872_v36   ;;  %v711_v3 = vpop.permute.xlu1 %710 }
  0xf9   : > { %vm773_vm8 = vcmp.eq.s32.totalorder %v4953_v63, %v711_v3 }
  0xfa   : > { %v3761_v32 = vsel %vm773_vm8, 1.0, %v4644_v8 }
  0xfc   : > { %937 = vperm.xlu1 %4482, %v4858_v33   ;;  %v714_v9 = vpop.permute.xlu1 %713  ;;  %v3731_v33 = vsel %vm567_vm10, 1.0, %v4644_v8 }
  0xfd   : > { %vm774_vm9 = vcmp.eq.s32.totalorder %v4953_v63, %v714_v9 }
  0xfe   : > { %v3762_v36 = vsel %vm774_vm9, 1.0, %v4644_v8 }
  0xff   : > { %v861_v5 = vpack.c.bf16 %v3762_v36, %v3761_v32 }
 0x100   : > { %943 = vperm.xlu1 %4482, %v4898_v41   ;;  %v3763_v41 = vsel %vm775_vm13, 1.0, %v4644_v8  ;;  %vm783_vm13 = vcmp.eq.s32.totalorder %v4953_v63, %v4946_v61 }
 0x101   : > { %v877_v11 = vsub.bf16 %v653_v10, %v861_v5  ;;  %v512_v12 = vpop.permute.xlu1 %511  ;;  %v3771_v57 = vsel %vm783_vm13, 1.0, %v4644_v8 }
 0x102   : > { %vm568_vm12 = vcmp.eq.s32.totalorder %v4953_v63, %v512_v12 }
 0x103   : > { %4368 = vmatprep.mubr.msk.bf16.mxu0 %vm1093_vm11, %v877_v11  ;;  %v3732_v14 = vsel %vm568_vm12, 1.0, %v4644_v8 }
 0x104   : > { %949 = vperm.xlu1 %4482, %v4865_v35   ;;  %v654_v18 = vpack.c.bf16 %v3732_v14, %v3731_v33 }
 0x106   : > { %v720_v16 = vpop.permute.xlu1 %719 }
 0x107   : > { %vm776_vm14 = vcmp.eq.s32.totalorder %v4953_v63, %v720_v16 }
 0x108   : > { %v3764_v17 = vsel %vm776_vm14, 1.0, %v4644_v8  ;;  %955 = vperm.xlu1 %4482, %v4915_v46  }
 0x109   : > { %v862_v19 = vpack.c.bf16 %v3764_v17, %v3763_v41 }
 0x10b   : > { %v878_v20 = vsub.bf16 %v654_v18, %v862_v19  ;;  %v515_v35 = vpop.permute.xlu1 %514 }
 0x10c   : > { %961 = vperm.xlu1 %4482, %v4875_v37   ;;  %vm569_vm15 = vcmp.eq.s32.totalorder %v4953_v63, %v515_v35  ;;  %v3734_v37 = vsel %vm570_vm0, 1.0, %v4644_v8 }
 0x10d   : > { %4369 = vmatmul.mubr.msk.bf16.gmra.mxu0 %vm1093_vm11, %v878_v20  ;;  %v3733_v46 = vsel %vm569_vm15, 1.0, %v4644_v8 }
 0x10e   : > { %v655_v24 = vpack.c.bf16 %v3734_v37, %v3733_v46 }
 0x110   : > { %967 = vperm.xlu1 %4482, %v4950_v62   ;;  %v723_v56 = vpop.permute.xlu1 %722 }
 0x111   : > { %vm777_vm1 = vcmp.eq.s32.totalorder %v4953_v63, %v723_v56 }
 0x112   : > { %v3765_v23 = vsel %vm777_vm1, 1.0, %v4644_v8 }
 0x114   : > { %973 = vperm.xlu1 %4482, %v4884_v38   ;;  %v726_v22 = vpop.permute.xlu1 %725  ;;  %v521_v38 = vpop.permute.xlu0 %520 }
 0x115   : > { %vm778_vm2 = vcmp.eq.s32.totalorder %v4953_v63, %v726_v22  ;;  %vm571_vm5 = vcmp.eq.s32.totalorder %v4953_v63, %v521_v38  ;;  %v4487_v38 = vld [vmem:[%s6298_s3 + $0x8] ss:$16 sps:$4 sm:$0xff]  }
 0x116   : > { %v3766_v62 = vsel %vm778_vm2, 1.0, %v4644_v8 }
 0x117   : > { %v863_v51 = vpack.c.bf16 %v3766_v62, %v3765_v23 }
 0x118   : > { %979 = vperm.xlu1 %4482, %v5006_v50   ;;  %v3735_v50 = vsel %vm571_vm5, 1.0, %v4644_v8  ;;  %v530_v40 = vpop.permute.xlu0 %529 }
 0x119   : > { %v879_v25 = vsub.bf16 %v655_v24, %v863_v51  ;;  %v524_v26 = vpop.permute.xlu1 %523  ;;  %vm574_vm8 = vcmp.eq.s32.totalorder %v4953_v63, %v530_v40 }
 0x11a   : > { %vm572_vm3 = vcmp.eq.s32.totalorder %v4953_v63, %v524_v26  ;;  %v3738_v44 = vsel %vm574_vm8, 1.0, %v4644_v8 }
 0x11b   : > { %4372 = vmatprep.mubr.msk.bf16.mxu0 %vm1093_vm11, %v879_v25  ;;  %v3736_v27 = vsel %vm572_vm3, 1.0, %v4644_v8 }
 0x11c   : > { %v656_v42 = vpack.c.bf16 %v3736_v27, %v3735_v50  ;;  %v533_v21 = vpop.permute.xlu0 %532 }
 0x11d   : > { %vm575_vm14 = vcmp.eq.s32.totalorder %v4953_v63, %v533_v21  ;;  %v4502_v21 = vld [vmem:[%s6297_s2 + $0x40] ss:$16 sps:$4 sm:$0xff]  }
 0x11e   : > { %v732_v28 = vpop.permute.xlu1 %731  ;;  %v3739_v60 = vsel %vm575_vm14, 1.0, %v4644_v8 }
 0x11f   : > { %vm780_vm6 = vcmp.eq.s32.totalorder %v4953_v63, %v732_v28  ;;  %v4492_v28 = vld [vmem:[%s6297_s2 + $0x6c] ss:$16 sps:$4 sm:$0xff]  }
 0x120   : > { %v3768_v34 = vsel %vm780_vm6, 1.0, %v4644_v8  ;;  %v542_v9 = vpop.permute.xlu0 %541 }
 0x121   : > { %v864_v2 = vpack.c.bf16 %v3768_v34, %v3767_v29  ;;  %vm578_vm1 = vcmp.eq.s32.totalorder %v4953_v63, %v542_v9 }
 0x122   : > { %v3742_v5 = vsel %vm578_vm1, 1.0, %v4644_v8 }
 0x123   : > { %v880_v1 = vsub.bf16 %v656_v42, %v864_v2  ;;  %v527_v39 = vpop.permute.xlu1 %526 }
 0x124   : > { %vm573_vm7 = vcmp.eq.s32.totalorder %v4953_v63, %v527_v39  ;;  %v545_v11 = vpop.permute.xlu0 %544 }
 0x125   : > { %4373 = vmatmul.mubr.msk.bf16.gmra.mxu0 %vm1093_vm11, %v880_v1  ;;  %v3737_v6 = vsel %vm573_vm7, 1.0, %v4644_v8  ;;  %vm579_vm6 = vcmp.eq.s32.totalorder %v4953_v63, %v545_v11 }
 0x126   : > { %v657_v48 = vpack.c.bf16 %v3738_v44, %v3737_v6  ;;  %v3743_v35 = vsel %vm579_vm6, 1.0, %v4644_v8 }
 0x128   : > { %v735_v58 = vpop.permute.xlu1 %734  ;;  %v753_v17 = vpop.permute.xlu0 %752 }
 0x129   : > { %vm781_vm9 = vcmp.eq.s32.totalorder %v4953_v63, %v735_v58  ;;  %vm787_vm4 = vcmp.eq.s32.totalorder %v4953_v63, %v753_v17 }
 0x12a   : > { %v3769_v45 = vsel %vm781_vm9, 1.0, %v4644_v8  ;;  %v3775_v18 = vsel %vm787_vm4, 1.0, %v4644_v8 }
 0x12c   : > { %v738_v43 = vpop.permute.xlu1 %737  ;;  %v890_v22 = vpop.permute.xlu0 %889 }
 0x12d   : > { %vm782_vm10 = vcmp.eq.s32.totalorder %v4953_v63, %v738_v43  ;;  %vm982_vm8 = vcmp.eq.s32.totalorder %v4953_v63, %v890_v22 }
 0x12e   : > { %v3770_v47 = vsel %vm782_vm10, 1.0, %v4644_v8  ;;  %v3778_v62 = vsel %vm982_vm8, 1.0, %v4644_v8  ;;  %vm1366_vm10 = vcmask 130048  }
 0x12f   : > { %v865_v15 = vpack.c.bf16 %v3770_v47, %v3769_v45  ;;  %v4496_v47 = vld [vmem:[%s6297_s2 + $0x60] ss:$16 sps:$4 sm:$0xff]  }
 0x130   : > { %v899_v25 = vpop.permute.xlu0 %898 }
 0x131   : > { %v881_v49 = vsub.bf16 %v657_v48, %v865_v15  ;;  %v536_v52 = vpop.permute.xlu1 %535 }
 0x132   : > { %vm576_vm12 = vcmp.eq.s32.totalorder %v4953_v63, %v536_v52 }
 0x133   : > { %4376 = vmatprep.mubr.msk.bf16.mxu0 %vm1093_vm11, %v881_v49  ;;  %v3740_v54 = vsel %vm576_vm12, 1.0, %v4644_v8  ;;  %v4504_v49 = vld [vmem:[%s6297_s2 + $0x44] ss:$16 sps:$4 sm:$0xff]  }
 0x134   : > { %v658_v53 = vpack.c.bf16 %v3740_v54, %v3739_v60  ;;  %v905_v29 = vpop.permute.xlu0 %904 }
 0x135   : > { %vm987_vm4 = vcmp.eq.s32.totalorder %v4953_v63, %v905_v29 }
 0x136   : > { %v744_v55 = vpop.permute.xlu1 %743 }
 0x137   : > { %vm784_vm15 = vcmp.eq.s32.totalorder %v4953_v63, %v744_v55  ;;  %v4507_v55 = vld [vmem:[%s6297_s2 + $0x24] ss:$16 sps:$4 sm:$0xff]  }
 0x138   : > { %v3772_v30 = vsel %vm784_vm15, 1.0, %v4644_v8  ;;  %v911_v39 = vpop.permute.xlu0 %910  ;;  %vm985_vm15 = vcmp.eq.s32.totalorder %v4953_v63, %v899_v25 }
 0x139   : > { %v866_v3 = vpack.c.bf16 %v3772_v30, %v3771_v57  ;;  %vm989_vm14 = vcmp.eq.s32.totalorder %v4953_v63, %v911_v39  ;;  %v3781_v44 = vsel %vm985_vm15, 1.0, %v4644_v8 }
 0x13a   : > { %v3785_v6 = vsel %vm989_vm14, 1.0, %v4644_v8 }
 0x13b   : > { %v882_v61 = vsub.bf16 %v658_v53, %v866_v3  ;;  %v539_v4 = vpop.permute.xlu1 %538  ;;  %v3783_v53 = vsel %vm987_vm4, 1.0, %v4644_v8 }
 0x13c   : > { %vm577_vm0 = vcmp.eq.s32.totalorder %v4953_v63, %v539_v4  ;;  %v917_v52 = vpop.permute.xlu0 %916  ;;  %v4510_v4 = vld [vmem:[%s6297_s2 + $0x4] ss:$16 sps:$4 sm:$0xff]  }
 0x13d   : > { %4377 = vmatmul.mubr.msk.bf16.gmra.mxu0 %vm1093_vm11, %v882_v61  ;;  %v3741_v36 = vsel %vm577_vm0, 1.0, %v4644_v8 }
 0x13e   : > { %v659_v33 = vpack.c.bf16 %v3742_v5, %v3741_v36 }
 0x140   : > { %v747_v32 = vpop.permute.xlu1 %746  ;;  %v923_v9 = vpop.permute.xlu0 %922 }
 0x141   : > { %vm785_vm2 = vcmp.eq.s32.totalorder %v4953_v63, %v747_v32  ;;  %vm993_vm6 = vcmp.eq.s32.totalorder %v4953_v63, %v923_v9  ;;  %v4508_v32 = vld [vmem:[%s6297_s2] ss:$16 sps:$4 sm:$0xff]  }
 0x142   : > { %v3773_v12 = vsel %vm785_vm2, 1.0, %v4644_v8 }
 0x144   : > { %v750_v10 = vpop.permute.xlu1 %749 }
 0x145   : > { %vm786_vm3 = vcmp.eq.s32.totalorder %v4953_v63, %v750_v10  ;;  %v3789_v10 = vsel %vm993_vm6, 1.0, %v4644_v8 }
 0x146   : > { %v3774_v13 = vsel %vm786_vm3, 1.0, %v4644_v8  ;;  %vm991_vm3 = vcmp.eq.s32.totalorder %v4953_v63, %v917_v52 }
 0x147   : > { %v867_v14 = vpack.c.bf16 %v3774_v13, %v3773_v12  ;;  %v3787_v60 = vsel %vm991_vm3, 1.0, %v4644_v8  ;;  %v4490_v12 = vld [vmem:[%s6297_s2 + $0x68] ss:$16 sps:$4 sm:$0xff]   ;;  %v4495_v13 = vld [vmem:[%s6297_s2 + $0x4c] ss:$16 sps:$4 sm:$0xff]  }
 0x149   : > { %v883_v16 = vsub.bf16 %v659_v33, %v867_v14  ;;  %v548_v41 = vpop.permute.xlu1 %547  ;;  %v929_v33 = vpop.permute.xlu0 %928  ;;  %v4493_v14 = vld [vmem:[%s6297_s2 + $0x48] ss:$16 sps:$4 sm:$0xff]  }
 0x14a   : > { %vm580_vm5 = vcmp.eq.s32.totalorder %v4953_v63, %v548_v41  ;;  %vm995_vm8 = vcmp.eq.s32.totalorder %v4953_v63, %v929_v33  ;;  %v4501_v41 = vld [vmem:[%s6297_s2 + $0x2c] ss:$16 sps:$4 sm:$0xff]  }
 0x14b   : > { %4380 = vmatprep.mubr.msk.bf16.mxu0 %vm1093_vm11, %v883_v16  ;;  %v3744_v19 = vsel %vm580_vm5, 1.0, %v4644_v8  ;;  %v3791_v17 = vsel %vm995_vm8, 1.0, %v4644_v8 }
 0x14c   : > { %v660_v7 = vpack.c.bf16 %v3744_v19, %v3743_v35  ;;  %v4513_v35 = vld [vmem:[%s6297_s2 + $0xc] ss:$16 sps:$4 sm:$0xff]  }
 0x14e   : > { %v756_v20 = vpop.permute.xlu1 %755 }
 0x14f   : > { %vm788_vm7 = vcmp.eq.s32.totalorder %v4953_v63, %v756_v20  ;;  %v4499_v20 = vld [vmem:[%s6297_s2 + $0x28] ss:$16 sps:$4 sm:$0xff]  }
 0x150   : > { %v3776_v56 = vsel %vm788_vm7, 1.0, %v4644_v8 }
 0x151   : > { %v868_v46 = vpack.c.bf16 %v3776_v56, %v3775_v18  ;;  %v935_v56 = vpop.permute.xlu0 %934 }
 0x153   : > { %v884_v37 = vsub.bf16 %v660_v7, %v868_v46  ;;  %v887_v23 = vpop.permute.xlu1 %886  ;;  %v4511_v7 = vld [vmem:[%s6297_s2 + $0x8] ss:$16 sps:$4 sm:$0xff]  }
 0x154   : > { %vm981_vm9 = vcmp.eq.s32.totalorder %v4953_v63, %v887_v23 }
 0x155   : > { %4381 = vmatmul.mubr.msk.bf16.gmra.mxu0 %vm1093_vm11, %v884_v37  ;;  %v3777_v24 = vsel %vm981_vm9, 1.0, %v4644_v8 }
 0x156   : > { %1447 = vmatprep.mubr.bf16.mxu0 %v4640_v0  ;;  %v5152_v26 = vpack.c.bf16 %v3778_v62, %v3777_v24  ;;  %v941_v62 = vpop.permute.xlu0 %940 }
 0x157   : > { %v893_v51 = vpop.permute.xlu1 %892 }
 0x158   : > { %vm983_vm12 = vcmp.eq.s32.totalorder %v4953_v63, %v893_v51 }
 0x159   : > { %v3779_v42 = vsel %vm983_vm12, 1.0, %v4644_v8 }
 0x15b   : > { %v896_v27 = vpop.permute.xlu1 %895 }
 0x15c   : > { %vm984_vm11 = vcmp.eq.s32.totalorder %v4953_v63, %v896_v27 }
 0x15d   : > { %3829 = vmatmul.mubr.msk.bf16.vlgmr.msra.gmra.mxu0 %vm1366_vm10, %v5152_v26  ;;  %v3780_v34 = vsel %vm984_vm11, 1.0, %v4644_v8  ;;  %vm997_vm11 = vcmp.eq.s32.totalorder %v4953_v63, %v935_v56 }
 0x15e   : > { %1623 = vmatpush1.bf16.msra.mxu0 %v4487_v38  ;;  %1457 = vmatprep.mubr.bf16.mxu0 %v4640_v0  ;;  %v5167_v2 = vpack.c.bf16 %v3780_v34, %v3779_v42  ;;  %v3793_v22 = vsel %vm997_vm11, 1.0, %v4644_v8  ;;  %v947_v38 = vpop.permute.xlu0 %946  ;;  %vm1881_vm11 = vcmask 523264  }
 0x15f   : > { %v902_v50 = vpop.permute.xlu1 %901  ;;  %2131 = vmatprep.subr.bf16.mxu0 %v4492_v28  ;;  %vm1001_vm15 = vcmp.eq.s32.totalorder %v4953_v63, %v947_v38 }
 0x160   : > { %vm986_vm13 = vcmp.eq.s32.totalorder %v4953_v63, %v902_v50  ;;  %v3797_v28 = vsel %vm1001_vm15, 1.0, %v4644_v8 }
 0x161   : > { %v3782_v40 = vsel %vm986_vm13, 1.0, %v4644_v8  ;;  %vm999_vm13 = vcmp.eq.s32.totalorder %v4953_v63, %v941_v62 }
 0x162   : > { %v5185_v48 = vpack.c.bf16 %v3782_v40, %v3781_v44  ;;  %v3795_v51 = vsel %vm999_vm13, 1.0, %v4644_v8  ;;  %v953_v34 = vpop.permute.xlu0 %952 }
 0x163   : > { %v908_v1 = vpop.permute.xlu1 %907 }
 0x164   : > { %vm988_vm2 = vcmp.eq.s32.totalorder %v4953_v63, %v908_v1 }
 0x165   : > { %3830 = vmatmul.mubr.msk.bf16.gmra.mxu0 %vm1366_vm10, %v5167_v2  ;;  %v3784_v57 = vsel %vm988_vm2, 1.0, %v4644_v8 }
 0x166   : > { %1467 = vmatprep.mubr.bf16.mxu0 %v4640_v0  ;;  %v5215_v61 = vpack.c.bf16 %v3784_v57, %v3783_v53 }
 0x167   : > { %v914_v58 = vpop.permute.xlu1 %913 }
 0x168   : > { %vm990_vm0 = vcmp.eq.s32.totalorder %v4953_v63, %v914_v58  ;;  %v959_v58 = vpop.permute.xlu0 %958 }
 0x169   : > { %v3786_v43 = vsel %vm990_vm0, 1.0, %v4644_v8  ;;  %vm1005_vm3 = vcmp.eq.s32.totalorder %v4953_v63, %v959_v58 }
 0x16a   : > { %v5180_v45 = vpack.c.bf16 %v3786_v43, %v3785_v6  ;;  %v3801_v6 = vsel %vm1005_vm3, 1.0, %v4644_v8 }
 0x16b   : > { %v920_v15 = vpop.permute.xlu1 %919 }
 0x16c   : > { %vm992_vm1 = vcmp.eq.s32.totalorder %v4953_v63, %v920_v15  ;;  %3833 = vmatmul.mubr.msk.bf16.vlgmr.msra.gmra.mxu1 %vm1366_vm10, %v5180_v45 }
 0x16d   : > { %3831 = vmatmul.mubr.msk.bf16.gmra.mxu0 %vm1366_vm10, %v5185_v48  ;;  %1497 = vmatprep.mubr.bf16.mxu1 %v4640_v0  ;;  %v3788_v54 = vsel %vm992_vm1, 1.0, %v4644_v8  ;;  %vm1003_vm1 = vcmp.eq.s32.totalorder %v4953_v63, %v953_v34 }
 0x16e   : > { %1477 = vmatprep.mubr.bf16.mxu0 %v4640_v0  ;;  %1939 = vmatpush1.bf16.msra.mxu1 %v4496_v47  ;;  %v5210_v3 = vpack.c.bf16 %v3788_v54, %v3787_v60 }
 0x16f   : > { %1940 = vmatprep.subr.bf16.mxu1 %v4504_v49  ;;  %v926_v30 = vpop.permute.xlu1 %925 }
 0x170   : > { %vm994_vm5 = vcmp.eq.s32.totalorder %v4953_v63, %v926_v30 }
 0x171   : > { %v3790_v36 = vsel %vm994_vm5, 1.0, %v4644_v8 }
 0x172   : > { %1941 = vmatpush1.bf16.msra.mxu1 %v4502_v21  ;;  %v5233_v11 = vpack.c.bf16 %v3790_v36, %v3789_v10 }
 0x173   : > { %1942 = vmatprep.subr.bf16.mxu1 %v4507_v55  ;;  %v932_v5 = vpop.permute.xlu1 %931 }
 0x174   : > { %3834 = vmatmul.mubr.msk.bf16.gmra.mxu1 %vm1366_vm10, %v5210_v3  ;;  %vm996_vm7 = vcmp.eq.s32.totalorder %v4953_v63, %v932_v5  ;;  %v4516_v5 = vld [vmem:[%s6300_s5 + $0x74] ss:$8 sps:$4 sm:$0xff]  }
 0x175   : > { %3832 = vmatmul.mubr.msk.bf16.gmra.mxu0 %vm1366_vm10, %v5215_v61  ;;  %1507 = vmatprep.mubr.bf16.mxu1 %v4640_v0  ;;  %v3792_v16 = vsel %vm996_vm7, 1.0, %v4644_v8 }
 0x176   : > { %1640 = vmatprep.mubr.bf16.mxu0 %v4640_v0  ;;  %1943 = vmatpush1.bf16.msra.mxu1 %v4505_v31  ;;  %v5257_v19 = vpack.c.bf16 %v3792_v16, %v3791_v17  ;;  %v4519_v16 = vld [vmem:[%s6300_s5 + $0x64] ss:$8 sps:$4 sm:$0xff]  }
 0x177   : > { %1944 = vmatprep.subr.bf16.mxu1 %v4510_v4  ;;  %v938_v18 = vpop.permute.xlu1 %937 }
 0x178   : > { %vm998_vm9 = vcmp.eq.s32.totalorder %v4953_v63, %v938_v18 }
 0x179   : > { %v3794_v46 = vsel %vm998_vm9, 1.0, %v4644_v8 }
 0x17a   : > { %1945 = vmatpush1.bf16.msra.mxu1 %v4508_v32  ;;  %v5278_v23 = vpack.c.bf16 %v3794_v46, %v3793_v22  ;;  %v4523_v46 = vld [vmem:[%s6300_s5 + $0x40] ss:$8 sps:$4 sm:$0xff]   ;;  %v4525_v22 = vld [vmem:[%s6300_s5 + $0x44] ss:$8 sps:$4 sm:$0xff]  }
 0x17b   : > { %v944_v37 = vpop.permute.xlu1 %943  ;;  %2978 = vmatprep.subr.bf16.mxu1 %v4516_v5 }
 0x17c   : > { %3835 = vmatmul.mubr.msk.bf16.gmra.mxu1 %vm1366_vm10, %v5233_v11  ;;  %vm1000_vm12 = vcmp.eq.s32.totalorder %v4953_v63, %v944_v37 }
 0x17d   : > { %3845 = vmatmul.mubr.msk.bf16.vlgmr.msra.gmra.mxu0 %vm1366_vm10, %v5152_v26  ;;  %1517 = vmatprep.mubr.bf16.mxu1 %v4640_v0  ;;  %v3796_v24 = vsel %vm1000_vm12, 1.0, %v4644_v8 }
 0x17e   : > { %2132 = vmatpush1.bf16.msra.mxu0 %v4490_v12  ;;  %1650 = vmatprep.mubr.bf16.mxu0 %v4640_v0  ;;  %v5290_v26 = vpack.c.bf16 %v3796_v24, %v3795_v51  ;;  %v4526_v51 = vld [vmem:[%s6300_s5 + $0x30] ss:$8 sps:$4 sm:$0xff]  }
 0x17f   : > { %2133 = vmatprep.subr.bf16.mxu0 %v4495_v13  ;;  %v950_v25 = vpop.permute.xlu1 %949 }
 0x180   : > { %vm1002_vm14 = vcmp.eq.s32.totalorder %v4953_v63, %v950_v25  ;;  %v4528_v25 = vld [vmem:[%s6300_s5 + $0x34] ss:$8 sps:$4 sm:$0xff]  }
 0x181   : > { %v3798_v27 = vsel %vm1002_vm14, 1.0, %v4644_v8 }
 0x182   : > { %2134 = vmatpush1.bf16.msra.mxu0 %v4493_v14  ;;  %v5302_v50 = vpack.c.bf16 %v3798_v27, %v3797_v28  ;;  %v4517_v14 = vld [vmem:[%s6300_s5 + $0x60] ss:$8 sps:$4 sm:$0xff]  }
 0x183   : > { %2135 = vmatprep.subr.bf16.mxu0 %v4501_v41  ;;  %v956_v29 = vpop.permute.xlu1 %955  ;;  %v4529_v28 = vld [vmem:[%s6300_s5 + $0x20] ss:$8 sps:$4 sm:$0xff]  }
 0x184   : > { %3836 = vmatmul.mubr.msk.bf16.gmra.mxu1 %vm1366_vm10, %v5257_v19  ;;  %vm1004_vm0 = vcmp.eq.s32.totalorder %v4953_v63, %v956_v29  ;;  %v4354_v15 = vpop.f32.mrf.mxu0  ;;  %v4531_v29 = vld [vmem:[%s6300_s5 + $0x24] ss:$8 sps:$4 sm:$0xff]  }
 0x185   : > { %3846 = vmatmul.mubr.msk.bf16.gmra.mxu0 %vm1366_vm10, %v5167_v2  ;;  %1527 = vmatprep.mubr.bf16.mxu1 %v4640_v0  ;;  %v3800_v42 = vsel %vm1004_vm0, 1.0, %v4644_v8  ;;  %v3799_v2 = vsel %vm1003_vm1, 1.0, %v4644_v8 }
 0x186   : > { %1660 = vmatprep.mubr.bf16.mxu0 %v4640_v0  ;;  %2136 = vmatpush1.bf16.msra.mxu0 %v4499_v20  ;;  %v5314_v39 = vpack.c.bf16 %v3800_v42, %v3799_v2  ;;  %v1183_v54 = vpop.f32.mrf.mxu0  ;;  %v4522_v20 = vld [vmem:[%s6300_s5 + $0x54] ss:$8 sps:$4 sm:$0xff]   ;;  %v4532_v2 = vld [vmem:[%s6300_s5 + $0x10] ss:$8 sps:$4 sm:$0xff]  }
 0x187   : > { %2137 = vmatprep.subr.bf16.mxu0 %v4513_v35  ;;  %v962_v1 = vpop.permute.xlu1 %961 }
 0x188   : > { %vm1006_vm2 = vcmp.eq.s32.totalorder %v4953_v63, %v962_v1  ;;  %v4355_v60 = vpop.f32.mrf.mxu0  ;;  %v4534_v1 = vld [vmem:[%s6300_s5 + $0x14] ss:$8 sps:$4 sm:$0xff]  }
 0x189   : > { %v3802_v40 = vsel %vm1006_vm2, 1.0, %v4644_v8  ;;  %v5384_v13 = vpack.c.bf16 %v4355_v60, %v4354_v15 }
 0x18a   : > { %2138 = vmatpush1.bf16.msra.mxu0 %v4511_v7  ;;  %v5326_v44 = vpack.c.bf16 %v3802_v40, %v3801_v6  ;;  %v1186_v31 = vpop.f32.mrf.mxu0  ;;  %v4535_v6 = vld [vmem:[%s6300_s5] ss:$8 sps:$4 sm:$0xff]  }
 0x18b   : > { %v968_v43 = vpop.permute.xlu1 %967  ;;  %v5370_v10 = vpack.c.bf16 %v1186_v31, %v1183_v54 }
 0x18c   : > { %3837 = vmatmul.mubr.msk.bf16.gmra.mxu1 %vm1366_vm10, %v5278_v23  ;;  %vm1008_vm4 = vcmp.eq.s32.totalorder %v4953_v63, %v968_v43  ;;  %v4358_v9 = vpop.f32.mrf.mxu0  ;;  %v4537_v43 = vld [vmem:[%s6300_s5 + $0x4] ss:$8 sps:$4 sm:$0xff]  }
 0x18d   : > { %3847 = vmatmul.mubr.msk.bf16.gmra.mxu0 %vm1366_vm10, %v5185_v48  ;;  %1537 = vmatprep.mubr.bf16.mxu1 %v4640_v0  ;;  %v3804_v47 = vsel %vm1008_vm4, 1.0, %v4644_v8 }
 0x18e   : > { %1670 = vmatprep.mubr.bf16.mxu0 %v4640_v0  ;;  %v1199_v36 = vpop.f32.mrf.mxu0 }
 0x18f   : > { %v974_v49 = vpop.permute.xlu1 %973 }
 0x190   : > { %vm1010_vm6 = vcmp.eq.s32.totalorder %v4953_v63, %v974_v49  ;;  %v4538_v49 = vld [vmem:[%s6300_s5 + $0xf0] ss:$8 sps:$4 sm:$0xff]  }
 0x191   : > { %v3806_v55 = vsel %vm1010_vm6, 1.0, %v4644_v8 }
 0x193   : > { %v980_v30 = vpop.permute.xlu1 %979 }
 0x194   : > { %3838 = vmatmul.mubr.msk.bf16.gmra.mxu1 %vm1366_vm10, %v5290_v26  ;;  %vm1012_vm8 = vcmp.eq.s32.totalorder %v4953_v63, %v980_v30  ;;  %v4543_v30 = vld [vmem:[%s6300_s5 + $0xe4] ss:$8 sps:$4 sm:$0xff]  }
 0x195   : > { %3848 = vmatmul.mubr.msk.bf16.gmra.mxu0 %vm1366_vm10, %v5215_v61  ;;  %1547 = vmatprep.mubr.bf16.mxu1 %v4640_v0  ;;  %v3808_v61 = vsel %vm1012_vm8, 1.0, %v4644_v8 }
 0x196   : > { %1680 = vmatprep.mubr.bf16.mxu0 %v4640_v0 }
 0x19c   : > { %3839 = vmatmul.mubr.msk.bf16.gmra.mxu1 %vm1366_vm10, %v5302_v50 }
 0x19d   : > { %3849 = vmatmul.mubr.msk.bf16.gmra.mxu0 %vm1366_vm10, %v5180_v45  ;;  %1557 = vmatprep.mubr.bf16.mxu1 %v4640_v0  ;;  %v965_v45 = vpop.permute.xlu0 %964 }
 0x19e   : > { %1690 = vmatprep.mubr.bf16.mxu0 %v4640_v0  ;;  %vm1007_vm5 = vcmp.eq.s32.totalorder %v4953_v63, %v965_v45 }
 0x19f   : > { %v3803_v48 = vsel %vm1007_vm5, 1.0, %v4644_v8 }
 0x1a0   : > { %v5338_v52 = vpack.c.bf16 %v3804_v47, %v3803_v48 }
 0x1a1   : > { %v971_v21 = vpop.permute.xlu0 %970 }
 0x1a2   : > { %vm1009_vm7 = vcmp.eq.s32.totalorder %v4953_v63, %v971_v21 }
 0x1a3   : > { %v3805_v57 = vsel %vm1009_vm7, 1.0, %v4644_v8 }
 0x1a4   : > { %3840 = vmatmul.mubr.msk.bf16.gmra.mxu1 %vm1366_vm10, %v5314_v39  ;;  %v5350_v53 = vpack.c.bf16 %v3806_v55, %v3805_v57 }
 0x1a5   : > { %3850 = vmatmul.mubr.msk.bf16.gmra.mxu0 %vm1366_vm10, %v5210_v3  ;;  %1567 = vmatprep.mubr.bf16.mxu1 %v4640_v0  ;;  %v977_v3 = vpop.permute.xlu0 %976 }
 0x1a6   : > { %1700 = vmatprep.mubr.bf16.mxu0 %v4640_v0  ;;  %vm1011_vm9 = vcmp.eq.s32.totalorder %v4953_v63, %v977_v3  ;;  %v4359_v63 = vpop.f32.mrf.mxu0  ;;  %v4541_v3 = vld [vmem:[%s6300_s5 + $0xe0] ss:$8 sps:$4 sm:$0xff]  }
 0x1a7   : > { %v3807_v4 = vsel %vm1011_vm9, 1.0, %v4644_v8  ;;  %v4514_v8 = vld [vmem:[%s6300_s5 + $0x70] ss:$8 sps:$4 sm:$0xff]   ;;  %v5412_v7 = vpack.c.bf16 %v4359_v63, %v4358_v9 }
 0x1a8   : > { %v5362_v32 = vpack.c.bf16 %v3808_v61, %v3807_v4  ;;  %v4544_v63 = vld [vmem:[%s6300_s5 + $0xd0] ss:$8 sps:$4 sm:$0xff]  }
 0x1ac   : > { %3841 = vmatmul.mubr.msk.bf16.gmra.mxu1 %vm1366_vm10, %v5326_v44 }
 0x1ad   : > { %3851 = vmatmul.mubr.msk.bf16.gmra.mxu0 %vm1366_vm10, %v5233_v11  ;;  %1577 = vmatprep.mubr.bf16.mxu1 %v4640_v0  ;;  %v1202_v11 = vpop.f32.mrf.mxu0 }
 0x1ae   : > { %1710 = vmatprep.mubr.bf16.mxu0 %v4640_v0  ;;  %v5398_v17 = vpack.c.bf16 %v1202_v11, %v1199_v36 }
 0x1af   : > { %v4362_v12 = vpop.f32.mrf.mxu0 }
 0x1b1   : > { %v1215_v33 = vpop.f32.mrf.mxu0 }
 0x1b3   : > { %v4363_v41 = vpop.f32.mrf.mxu0 }
 0x1b4   : > { %3842 = vmatmul.mubr.msk.bf16.gmra.mxu1 %vm1366_vm10, %v5338_v52  ;;  %v5440_v38 = vpack.c.bf16 %v4363_v41, %v4362_v12  ;;  %v4549_v12 = vld [vmem:[%s6300_s5 + $0xc4] ss:$8 sps:$4 sm:$0xff]  }
 0x1b5   : > { %3852 = vmatmul.mubr.msk.bf16.gmra.mxu0 %vm1366_vm10, %v5257_v19  ;;  %1587 = vmatprep.mubr.bf16.mxu1 %v4640_v0  ;;  %v1218_v18 = vpop.f32.mrf.mxu0  ;;  %v4520_v19 = vld [vmem:[%s6300_s5 + $0x50] ss:$8 sps:$4 sm:$0xff]  }
 0x1b6   : > { %1720 = vmatprep.mubr.bf16.mxu0 %v4640_v0  ;;  %v5426_v62 = vpack.c.bf16 %v1218_v18, %v1215_v33  ;;  %v4547_v33 = vld [vmem:[%s6300_s5 + $0xc0] ss:$8 sps:$4 sm:$0xff]  }
 0x1b7   : > { %v4366_v35 = vpop.f32.mrf.mxu0 }
 0x1b9   : > { %v1231_v56 = vpop.f32.mrf.mxu0 }
 0x1bb   : > { %v4367_v37 = vpop.f32.mrf.mxu0 }
 0x1bc   : > { %3843 = vmatmul.mubr.msk.bf16.gmra.mxu1 %vm1366_vm10, %v5350_v53  ;;  %v5468_v40 = vpack.c.bf16 %v4367_v37, %v4366_v35  ;;  %v4552_v35 = vld [vmem:[%s6300_s5 + $0xb4] ss:$8 sps:$4 sm:$0xff]  }
 0x1bd   : > { %3853 = vmatmul.mubr.msk.bf16.gmra.mxu0 %vm1366_vm10, %v5278_v23  ;;  %1597 = vmatprep.mubr.bf16.mxu1 %v4640_v0  ;;  %v1234_v23 = vpop.f32.mrf.mxu0 }
 0x1be   : > { %1730 = vmatprep.mubr.bf16.mxu0 %v4640_v0  ;;  %v5454_v42 = vpack.c.bf16 %v1234_v23, %v1231_v56 }
 0x1c4   : > { %3844 = vmatmul.mubr.msk.bf16.gmra.mxu1 %vm1366_vm10, %v5362_v32 }
 0x1c5   : > { %3854 = vmatmul.mubr.msk.bf16.gmra.mxu0 %vm1366_vm10, %v5290_v26  ;;  %1962 = vmatprep.mubr.bf16.mxu1 %v4640_v0 }
 0x1c6   : > { %1740 = vmatprep.mubr.bf16.mxu0 %v4640_v0 }
 0x1cc   : > { %3877 = vmatmul.mubr.msk.bf16.vlgmr.msra.gmra.mxu1 %vm1881_vm11, %v5370_v10 }
 0x1cd   : > { %3855 = vmatmul.mubr.msk.bf16.gmra.mxu0 %vm1366_vm10, %v5302_v50  ;;  %1972 = vmatprep.mubr.bf16.mxu1 %v4640_v0  ;;  %v4370_v24 = vpop.f32.mrf.mxu0 }
 0x1ce   : > { %1750 = vmatprep.mubr.bf16.mxu0 %v4640_v0  ;;  %2979 = vmatpush1.bf16.msra.mxu1 %v4514_v8 }
 0x1cf   : > { %2980 = vmatprep.subr.bf16.mxu1 %v4519_v16  ;;  %v1247_v26 = vpop.f32.mrf.mxu0 }
 0x1d1   : > { %v4371_v27 = vpop.f32.mrf.mxu0 }
 0x1d2   : > { %2981 = vmatpush1.bf16.msra.mxu1 %v4517_v14  ;;  %v5498_v21 = vpack.c.bf16 %v4371_v27, %v4370_v24 }
 0x1d3   : > { %2982 = vmatprep.subr.bf16.mxu1 %v4522_v20  ;;  %v1250_v50 = vpop.f32.mrf.mxu0 }
 0x1d4   : > { %3878 = vmatmul.mubr.msk.bf16.gmra.mxu1 %vm1881_vm11, %v5384_v13  ;;  %v5484_v47 = vpack.c.bf16 %v1250_v50, %v1247_v26  ;;  %v4555_v26 = vld [vmem:[%s6300_s5 + $0xa4] ss:$8 sps:$4 sm:$0xff]  }
 0x1d5   : > { %3856 = vmatmul.mubr.msk.bf16.gmra.mxu0 %vm1366_vm10, %v5314_v39  ;;  %1982 = vmatprep.mubr.bf16.mxu1 %v4640_v0 }
 0x1d6   : > { %1760 = vmatprep.mubr.bf16.mxu0 %v4640_v0  ;;  %2983 = vmatpush1.bf16.msra.mxu1 %v4520_v19 }
 0x1d7   : > { %2984 = vmatprep.subr.bf16.mxu1 %v4525_v22 }
 0x1da   : > { %2985 = vmatpush1.bf16.msra.mxu1 %v4523_v46  ;;  %v4550_v46 = vld [vmem:[%s6300_s5 + $0xb0] ss:$8 sps:$4 sm:$0xff]  }
 0x1db   : > { %2986 = vmatprep.subr.bf16.mxu1 %v4528_v25 }
 0x1dc   : > { %3879 = vmatmul.mubr.msk.bf16.gmra.mxu1 %vm1881_vm11, %v5398_v17 }
 0x1dd   : > { %3857 = vmatmul.mubr.msk.bf16.gmra.mxu0 %vm1366_vm10, %v5326_v44  ;;  %1992 = vmatprep.mubr.bf16.mxu1 %v4640_v0 }
 0x1de   : > { %1770 = vmatprep.mubr.bf16.mxu0 %v4640_v0  ;;  %2987 = vmatpush1.bf16.msra.mxu1 %v4526_v51 }
 0x1df   : > { %2988 = vmatprep.subr.bf16.mxu1 %v4531_v29 }
 0x1e2   : > { %2989 = vmatpush1.bf16.msra.mxu1 %v4529_v28  ;;  %v4553_v28 = vld [vmem:[%s6300_s5 + $0xa0] ss:$8 sps:$4 sm:$0xff]  }
 0x1e3   : > { %2990 = vmatprep.subr.bf16.mxu1 %v4534_v1 }
 0x1e4   : > { %3880 = vmatmul.mubr.msk.bf16.gmra.mxu1 %vm1881_vm11, %v5412_v7 }
 0x1e5   : > { %3858 = vmatmul.mubr.msk.bf16.gmra.mxu0 %vm1366_vm10, %v5338_v52  ;;  %2002 = vmatprep.mubr.bf16.mxu1 %v4640_v0  ;;  %v4374_v34 = vpop.f32.mrf.mxu0  ;;  %v4540_v52 = vld [vmem:[%s6300_s5 + $0xf4] ss:$8 sps:$4 sm:$0xff]  }
 0x1e6   : > { %1780 = vmatprep.mubr.bf16.mxu0 %v4640_v0  ;;  %2991 = vmatpush1.bf16.msra.mxu1 %v4532_v2 }
 0x1e7   : > { %v1263_v39 = vpop.f32.mrf.mxu0  ;;  %2992 = vmatprep.subr.bf16.mxu1 %v4537_v43 }
 0x1e9   : > { %v4375_v58 = vpop.f32.mrf.mxu0 }
 0x1ea   : > { %2993 = vmatpush1.bf16.msra.mxu1 %v4535_v6  ;;  %v5533_v36 = vpack.c.bf16 %v4375_v58, %v4374_v34  ;;  %v4556_v58 = vld [vmem:[%s6300_s5 + $0x90] ss:$8 sps:$4 sm:$0xff]  }
 0x1eb   : > { %v1266_v44 = vpop.f32.mrf.mxu0  ;;  %2994 = vmatprep.subr.bf16.mxu1 %v4540_v52 }
 0x1ec   : > { %3881 = vmatmul.mubr.msk.bf16.gmra.mxu1 %vm1881_vm11, %v5426_v62 }
 0x1ed   : > { %3859 = vmatmul.mubr.msk.bf16.gmra.mxu0 %vm1366_vm10, %v5350_v53  ;;  %2012 = vmatprep.mubr.bf16.mxu1 %v4640_v0  ;;  %v5513_v53 = vpack.c.bf16 %v1266_v44, %v1263_v39 }
 0x1ee   : > { %1790 = vmatprep.mubr.bf16.mxu0 %v4640_v0  ;;  %2995 = vmatpush2.bf16.msra.mxu1 %v4538_v49  ;;  %v4561_v49 = vld [vmem:[%s6300_s5 + $0x84] ss:$8 sps:$4 sm:$0xff]  }
 0x1ef   : > { %2996 = vmatprep.subr.bf16.mxu1 %v4543_v30 }
 0x1f2   : > { %2997 = vmatpush2.bf16.msra.mxu1 %v4541_v3 }
 0x1f4   : > { %3882 = vmatmul.mubr.msk.bf16.gmra.mxu1 %vm1881_vm11, %v5440_v38 }
 0x1f5   : > { %3860 = vmatmul.mubr.msk.bf16.gmra.mxu0 %vm1366_vm10, %v5362_v32  ;;  %2022 = vmatprep.mubr.bf16.mxu1 %v4640_v0  ;;  %v4546_v32 = vld [vmem:[%s6300_s5 + $0xd4] ss:$8 sps:$4 sm:$0xff]  }
 0x1f6   : > { %2155 = vmatprep.mubr.bf16.mxu0 %v4640_v0  ;;  %2998 = vmatprep.subr.bf16.mxu1 %v4546_v32 }
 0x1f7   : > { %2999 = vmatpush2.bf16.msra.mxu1 %v4544_v63 }
 0x1f8   : > { %3000 = vmatprep.subr.bf16.mxu1 %v4549_v12 }
 0x1fb   : > { %3001 = vmatpush2.bf16.msra.mxu1 %v4547_v33 }
 0x1fc   : > { %3883 = vmatmul.mubr.msk.bf16.gmra.mxu1 %vm1881_vm11, %v5454_v42  ;;  %3002 = vmatprep.subr.bf16.mxu1 %v4552_v35 }
 0x1fd   : > { %3893 = vmatmul.mubr.msk.bf16.vlgmr.msra.gmra.mxu0 %vm1881_vm11, %v5370_v10  ;;  %2032 = vmatprep.mubr.bf16.mxu1 %v4640_v0  ;;  %v5482_v45 = vpop.f32.mrf.mxu0 }
 0x1fe   : > { %2165 = vmatprep.mubr.bf16.mxu0 %v4640_v0 }
 0x1ff   : > { %v1279_v48 = vpop.f32.mrf.mxu0  ;;  %3003 = vmatpush2.bf16.msra.mxu1 %v4550_v46 }
 0x200   : > { %3004 = vmatprep.subr.bf16.mxu1 %v4555_v26 }
 0x201   : > { %v4379_v15 = vpop.f32.mrf.mxu0 }
 0x202   : > { %v5584_v56 = vpack.c.bf16 %v4379_v15, %v5482_v45 }
 0x203   : > { %v1282_v54 = vpop.f32.mrf.mxu0  ;;  %3005 = vmatpush2.bf16.msra.mxu1 %v4553_v28 }
 0x204   : > { %3884 = vmatmul.mubr.msk.bf16.gmra.mxu1 %vm1881_vm11, %v5468_v40 }
 0x205   : > { %3894 = vmatmul.mubr.msk.bf16.gmra.mxu0 %vm1881_vm11, %v5384_v13  ;;  %2042 = vmatprep.mubr.bf16.mxu1 %v4640_v0  ;;  %v5555_v13 = vpack.c.bf16 %v1282_v54, %v1279_v48  ;;  %v4559_v54 = vld [vmem:[%s6300_s5 + $0x80] ss:$8 sps:$4 sm:$0xff]  }
 0x206   : > { %2175 = vmatprep.mubr.bf16.mxu0 %v4640_v0 }
 0x20c   : > { %3885 = vmatmul.mubr.msk.bf16.gmra.mxu1 %vm1881_vm11, %v5484_v47 }
 0x20d   : > { %3895 = vmatmul.mubr.msk.bf16.gmra.mxu0 %vm1881_vm11, %v5398_v17  ;;  %2052 = vmatprep.mubr.bf16.mxu1 %v4640_v0 }
 0x20e   : > { %2185 = vmatprep.mubr.bf16.mxu0 %v4640_v0 }
 0x214   : > { %3886 = vmatmul.mubr.msk.bf16.gmra.mxu1 %vm1881_vm11, %v5498_v21 }
 0x215   : > { %v5502_v55 = vpop.f32.mrf.mxu0  ;;  %3896 = vmatmul.mubr.msk.bf16.gmra.mxu0 %vm1881_vm11, %v5412_v7  ;;  %2062 = vmatprep.mubr.bf16.mxu1 %v4640_v0 }
 0x216   : > { %2195 = vmatprep.mubr.bf16.mxu0 %v4640_v0 }
 0x217   : > { %v1295_v57 = vpop.f32.mrf.mxu0 }
 0x219   : > { %v5508_v60 = vpop.f32.mrf.mxu0 }
 0x21a   : > { %v5649_v6 = vpack.c.bf16 %v5508_v60, %v5502_v55 }
 0x21b   : > { %v1298_v31 = vpop.f32.mrf.mxu0 }
 0x21c   : > { %3887 = vmatmul.mubr.msk.bf16.gmra.mxu1 %vm1881_vm11, %v5513_v53 }
 0x21d   : > { %v5520_v61 = vpop.f32.mrf.mxu0  ;;  %3897 = vmatmul.mubr.msk.bf16.gmra.mxu0 %vm1881_vm11, %v5426_v62  ;;  %2072 = vmatprep.mubr.bf16.mxu1 %v4640_v0 }
 0x21e   : > { %2205 = vmatprep.mubr.bf16.mxu0 %v4640_v0 }
 0x21f   : > { %v5526_v4 = vpop.f32.mrf.mxu0 }
 0x221   : > { %v5528_v9 = vpop.f32.mrf.mxu0 }
 0x223   : > { %v5538_v10 = vpop.f32.mrf.mxu0 }
 0x224   : > { %3888 = vmatmul.mubr.msk.bf16.gmra.mxu1 %vm1881_vm11, %v5533_v36 }
 0x225   : > { %v5542_v8 = vpop.f32.mrf.mxu0  ;;  %3898 = vmatmul.mubr.msk.bf16.gmra.mxu0 %vm1881_vm11, %v5440_v38  ;;  %2082 = vmatprep.mubr.bf16.mxu1 %v4640_v0  ;;  %v5614_v38 = vpack.c.bf16 %v1298_v31, %v1295_v57 }
 0x226   : > { %2215 = vmatprep.mubr.bf16.mxu0 %v4640_v0 }
 0x227   : > { %v5548_v5 = vpop.f32.mrf.mxu0 }
 0x229   : > { %v5550_v11 = vpop.f32.mrf.mxu0 }
 0x22b   : > { %v5560_v14 = vpop.f32.mrf.mxu0 }
 0x22c   : > { %v5562_v16 = vpop.f32.mrf.mxu1  ;;  %3889 = vmatmul.mubr.msk.bf16.gmra.mxu1 %vm1881_vm11, %v5555_v13 }
 0x22d   : > { %v5566_v41 = vpop.f32.mrf.mxu0  ;;  %3899 = vmatmul.mubr.msk.bf16.gmra.mxu0 %vm1881_vm11, %v5454_v42  ;;  %2092 = vmatprep.mubr.bf16.mxu1 %v4640_v0 }
 0x22e   : > { %v5571_v17 = vpop.f32.mrf.mxu1  ;;  %2225 = vmatprep.mubr.bf16.mxu0 %v4640_v0 }
 0x22f   : > { %v5574_v18 = vpop.f32.mrf.mxu0 }
 0x230   : > { %v5576_v19 = vpop.f32.mrf.mxu1 }
 0x231   : > { %v5578_v20 = vpop.f32.mrf.mxu0 }
 0x232   : > { %v5586_v7 = vpop.f32.mrf.mxu1 }
 0x233   : > { %v5591_v22 = vpop.f32.mrf.mxu0 }
 0x234   : > { %v5593_v37 = vpop.f32.mrf.mxu1  ;;  %3890 = vmatmul.mubr.msk.bf16.gmra.mxu1 %vm1881_vm11, %v5584_v56 }
 0x235   : > { %v5597_v23 = vpop.f32.mrf.mxu0  ;;  %3900 = vmatmul.mubr.msk.bf16.gmra.mxu0 %vm1881_vm11, %v5468_v40  ;;  %2102 = vmatprep.mubr.bf16.mxu1 %v4640_v0  ;;  %v4558_v40 = vld [vmem:[%s6300_s5 + $0x94] ss:$8 sps:$4 sm:$0xff]  }
 0x236   : > { %v5602_v62 = vpop.f32.mrf.mxu1  ;;  %2235 = vmatprep.mubr.bf16.mxu0 %v4640_v0  ;;  %3006 = vmatprep.subr.bf16.mxu1 %v4558_v40 }
 0x237   : > { %v5605_v24 = vpop.f32.mrf.mxu0  ;;  %3007 = vmatpush2.bf16.msra.mxu1 %v4556_v58 }
 0x238   : > { %v5607_v51 = vpop.f32.mrf.mxu1  ;;  %3008 = vmatprep.subr.bf16.mxu1 %v4561_v49 }
 0x239   : > { %v5609_v25 = vpop.f32.mrf.mxu0 }
 0x23a   : > { %v5616_v27 = vpop.f32.mrf.mxu1 }
 0x23b   : > { %v5621_v29 = vpop.f32.mrf.mxu0  ;;  %3009 = vmatpush2.bf16.msra.mxu1 %v4559_v54 }
 0x23c   : > { %v5623_v50 = vpop.f32.mrf.mxu1  ;;  %3891 = vmatmul.mubr.msk.bf16.gmra.mxu1 %vm1881_vm11, %v5614_v38 }
 0x23d   : > { %v5627_v34 = vpop.f32.mrf.mxu0  ;;  %3901 = vmatmul.mubr.msk.bf16.gmra.mxu0 %vm1881_vm11, %v5484_v47  ;;  %2112 = vmatprep.mubr.bf16.mxu1 %v4640_v0 }
 0x23e   : > { %v5632_v42 = vpop.f32.mrf.mxu1  ;;  %2245 = vmatprep.mubr.bf16.mxu0 %v4640_v0 }
 0x23f   : > { %v5635_v2 = vpop.f32.mrf.mxu0 }
 0x240   : > { %v5637_v1 = vpop.f32.mrf.mxu1 }
 0x241   : > { %v5639_v39 = vpop.f32.mrf.mxu0 }
 0x242   : > { %v5651_v43 = vpop.f32.mrf.mxu1 }
 0x243   : > { %v5653_v44 = vpop.f32.mrf.mxu0 }
 0x244   : > { %v5655_v45 = vpop.f32.mrf.mxu1  ;;  %3892 = vmatmul.mubr.msk.bf16.gmra.mxu1 %vm1881_vm11, %v5649_v6 }
 0x245   : > { %v5659_v47 = vpop.f32.mrf.mxu0  ;;  %3902 = vmatmul.mubr.msk.bf16.gmra.mxu0 %vm1881_vm11, %v5498_v21 }
 0x246   : > { %v5663_v48 = vpop.f32.mrf.mxu1  ;;  %2255 = vmatprep.mubr.bf16.mxu0 %v4640_v0 }
 0x247   : > { %v5666_v15 = vpop.f32.mrf.mxu0 }
 0x248   : > { %v5671_v52 = vpop.f32.mrf.mxu1 }
 0x249   : > { %v5676_v55 = vpop.f32.mrf.mxu0 }
 0x24a   : > { %v5678_v21 = vpop.f32.mrf.mxu1 }
 0x24b   : > { %v5680_v57 = vpop.f32.mrf.mxu0 }
 0x24c   : > { %v5682_v60 = vpop.f32.mrf.mxu1 }
 0x24d   : > { %v5684_v30 = vpop.f32.mrf.mxu0  ;;  %3903 = vmatmul.mubr.msk.bf16.gmra.mxu0 %vm1881_vm11, %v5513_v53 }
 0x24e   : > { %v5688_v3 = vpop.f32.mrf.mxu1  ;;  %2265 = vmatprep.mubr.bf16.mxu0 %v4640_v0 }
 0x24f   : > { %v5691_v31 = vpop.f32.mrf.mxu0 }
 0x250   : > { %v5693_v32 = vpop.f32.mrf.mxu1 }
 0x251   : > { %v5695_v63 = vpop.f32.mrf.mxu0 }
 0x252   : > { %v5697_v12 = vpop.f32.mrf.mxu1 }
 0x253   : > { %v5699_v33 = vpop.f32.mrf.mxu0 }
 0x254   : > { %6309 = vst [vmem:[#allocation5_spill] sm:$0xff] %v5699_v33  ;;  %v5701_v35 = vpop.f32.mrf.mxu1 }
 0x255   : > { %6310 = vst [vmem:[#allocation6_spill] sm:$0xff] %v5701_v35  ;;  %v5703_v46 = vpop.f32.mrf.mxu0  ;;  %3904 = vmatmul.mubr.msk.bf16.gmra.mxu0 %vm1881_vm11, %v5533_v36 }
 0x256   : > { %6311 = vst [vmem:[#allocation7_spill] sm:$0xff] %v5703_v46  ;;  %v5707_v53 = vpop.f32.mrf.mxu1  ;;  %2275 = vmatprep.mubr.bf16.mxu0 %v4640_v0 }
 0x257   : > { %6312 = vst [vmem:[#allocation8_spill] sm:$0xff] %v5707_v53  ;;  %v5710_v26 = vpop.f32.mrf.mxu0 }
 0x258   : > { %6313 = vst [vmem:[#allocation9_spill] sm:$0xff] %v5710_v26  ;;  %v5712_v28 = vpop.f32.mrf.mxu1 }
 0x259   : > { %6314 = vst [vmem:[#allocation10_spill] sm:$0xff] %v5712_v28  ;;  %v5714_v58 = vpop.f32.mrf.mxu0 }
 0x25a   : > { %6315 = vst [vmem:[#allocation11_spill] sm:$0xff] %v5714_v58  ;;  %v5716_v40 = vpop.f32.mrf.mxu1 }
 0x25b   : > { %6316 = vst [vmem:[#allocation12_spill] sm:$0xff] %v5716_v40  ;;  %v5718_v49 = vpop.f32.mrf.mxu0 }
 0x25c   : > { %6317 = vst [vmem:[#allocation13_spill] sm:$0xff] %v5718_v49  ;;  %v5720_v54 = vpop.f32.mrf.mxu1 }
 0x25d   : > { %6318 = vst [vmem:[#allocation14_spill] sm:$0xff] %v5720_v54  ;;  %v5722_v59 = vpop.f32.mrf.mxu0  ;;  %3905 = vmatmul.mubr.msk.bf16.gmra.mxu0 %vm1881_vm11, %v5555_v13 }
 0x25e   : > { %6319 = vst [vmem:[#allocation15_spill] sm:$0xff] %v5722_v59  ;;  %v5726_v36 = vpop.f32.mrf.mxu1  ;;  %2285 = vmatprep.mubr.bf16.mxu0 %v4640_v0 }
 0x25f   : > { %6320 = vst [vmem:[#allocation16_spill] sm:$0xff] %v5726_v36  ;;  %v5729_v46 = vpop.f32.mrf.mxu0 }
 0x260   : > { %6321 = vst [vmem:[#allocation17_spill] sm:$0xff] %v5729_v46  ;;  %v5731_v28 = vpop.f32.mrf.mxu1 }
 0x261   : > { %6322 = vst [vmem:[#allocation18_spill] sm:$0xff] %v5731_v28  ;;  %v5733_v58 = vpop.f32.mrf.mxu0 }
 0x262   : > { %6323 = vst [vmem:[#allocation19_spill] sm:$0xff] %v5733_v58  ;;  %v5735_v40 = vpop.f32.mrf.mxu1 }
 0x263   : > { %6324 = vst [vmem:[#allocation20_spill] sm:$0xff] %v5735_v40  ;;  %v5737_v49 = vpop.f32.mrf.mxu0 }
 0x264   : > { %6325 = vst [vmem:[#allocation21_spill] sm:$0xff] %v5737_v49  ;;  %v5739_v54 = vpop.f32.mrf.mxu1 }
 0x265   : > { %6326 = vst [vmem:[#allocation22_spill] sm:$0xff] %v5739_v54  ;;  %v5741_v59 = vpop.f32.mrf.mxu0  ;;  %3906 = vmatmul.mubr.msk.bf16.gmra.mxu0 %vm1881_vm11, %v5584_v56 }
 0x266   : > { %6327 = vst [vmem:[#allocation23_spill] sm:$0xff] %v5741_v59  ;;  %v5745_v13 = vpop.f32.mrf.mxu1  ;;  %2295 = vmatprep.mubr.bf16.mxu0 %v4640_v0 }
 0x267   : > { %6328 = vst [vmem:[#allocation24_spill] sm:$0xff] %v5745_v13  ;;  %v5748_v46 = vpop.f32.mrf.mxu0 }
 0x268   : > { %6329 = vst [vmem:[#allocation25_spill] sm:$0xff] %v5748_v46  ;;  %v5750_v28 = vpop.f32.mrf.mxu1 }
 0x269   : > { %6330 = vst [vmem:[#allocation26_spill] sm:$0xff] %v5750_v28  ;;  %v5752_v58 = vpop.f32.mrf.mxu0 }
 0x26a   : > { %6331 = vst [vmem:[#allocation27_spill] sm:$0xff] %v5752_v58  ;;  %v5754_v40 = vpop.f32.mrf.mxu1 }
 0x26b   : > { %6332 = vst [vmem:[#allocation28_spill] sm:$0xff] %v5754_v40  ;;  %v5756_v49 = vpop.f32.mrf.mxu0 }
 0x26c   : > { %6333 = vst [vmem:[#allocation29_spill] sm:$0xff] %v5756_v49  ;;  %v5758_v54 = vpop.f32.mrf.mxu1 }
 0x26d   : > { %6334 = vst [vmem:[#allocation30_spill] sm:$0xff] %v5758_v54  ;;  %v5760_v59 = vpop.f32.mrf.mxu0  ;;  %3907 = vmatmul.mubr.msk.bf16.gmra.mxu0 %vm1881_vm11, %v5614_v38 }
 0x26e   : > { %6335 = vst [vmem:[#allocation31_spill] sm:$0xff] %v5760_v59  ;;  %v5764_v56 = vpop.f32.mrf.mxu1  ;;  %2305 = vmatprep.mubr.bf16.mxu0 %v4640_v0 }
 0x26f   : > { %6336 = vst [vmem:[#allocation32_spill] sm:$0xff] %v5764_v56  ;;  %v5767_v46 = vpop.f32.mrf.mxu0 }
 0x270   : > { %6337 = vst [vmem:[#allocation33_spill] sm:$0xff] %v5767_v46  ;;  %v5769_v28 = vpop.f32.mrf.mxu1 }
 0x271   : > { %6338 = vst [vmem:[#allocation34_spill] sm:$0xff] %v5769_v28  ;;  %v5771_v58 = vpop.f32.mrf.mxu0 }
 0x272   : > { %6339 = vst [vmem:[#allocation35_spill] sm:$0xff] %v5771_v58  ;;  %v5773_v40 = vpop.f32.mrf.mxu1 }
 0x273   : > { %6340 = vst [vmem:[#allocation36_spill] sm:$0xff] %v5773_v40  ;;  %v5775_v49 = vpop.f32.mrf.mxu0 }
 0x274   : > { %6341 = vst [vmem:[#allocation37_spill] sm:$0xff] %v5775_v49  ;;  %v5777_v54 = vpop.f32.mrf.mxu1 }
 0x275   : > { %6342 = vst [vmem:[#allocation38_spill] sm:$0xff] %v5777_v54  ;;  %v5779_v59 = vpop.f32.mrf.mxu0  ;;  %3908 = vmatmul.mubr.msk.bf16.gmra.mxu0 %vm1881_vm11, %v5649_v6 }
 0x276   : > { %6343 = vst [vmem:[#allocation39_spill] sm:$0xff] %v5779_v59  ;;  %v5783_v38 = vpop.f32.mrf.mxu1 }
 0x277   : > { %6344 = vst [vmem:[#allocation40_spill] sm:$0xff] %v5783_v38  ;;  %v5785_v0 = vpop.f32.mrf.mxu0 }
 0x278   : > { %6345 = vst [vmem:[#allocation41_spill] sm:$0xff] %v5785_v0  ;;  %v5787_v46 = vpop.f32.mrf.mxu1 }
 0x279   : > { %6346 = vst [vmem:[#allocation42_spill] sm:$0xff] %v5787_v46  ;;  %v5789_v28 = vpop.f32.mrf.mxu0 }
 0x27a   : > { %6347 = vst [vmem:[#allocation43_spill] sm:$0xff] %v5789_v28  ;;  %v5791_v58 = vpop.f32.mrf.mxu1 }
 0x27b   : > { %6348 = vst [vmem:[#allocation44_spill] sm:$0xff] %v5791_v58  ;;  %v5793_v40 = vpop.f32.mrf.mxu0 }
 0x27c   : > { %6349 = vst [vmem:[#allocation45_spill] sm:$0xff] %v5793_v40  ;;  %v5795_v49 = vpop.f32.mrf.mxu1 }
 0x27d   : > { %6350 = vst [vmem:[#allocation46_spill] sm:$0xff] %v5795_v49  ;;  %v5797_v54 = vpop.f32.mrf.mxu0  ;;  %v6360_v49 = vlaneseq }
 0x27e   : > { %6351 = vst [vmem:[#allocation47_spill] sm:$0xff] %v5797_v54  ;;  %v5799_v59 = vpop.f32.mrf.mxu1 }
 0x27f   : > { %6352 = vst [vmem:[#allocation48_spill] sm:$0xff] %v5799_v59  ;;  %v5801_v56 = vpop.f32.mrf.mxu0  ;;  %v5816_v0 = vshrl.u32 %v6360_v49, 7  ;;  %v5833_v49 = vld [vmem:[%s6299_s4] sm:$0xf] }
 0x280   : > { %6353 = vst [vmem:[#allocation49_spill] sm:$0xff] %v5801_v56  ;;  %v5803_v6 = vpop.f32.mrf.mxu1 }
 0x281   : > { %6354 = vst [vmem:[#allocation50_spill] sm:$0xff] %v5803_v6  ;;  %v5805_v38 = vpop.f32.mrf.mxu0 }
 0x282   : > { %6355 = vst [vmem:[#allocation51_spill] sm:$0xff] %v5805_v38  ;;  %v5807_v46 = vpop.f32.mrf.mxu1 }
 0x283   : > { %6356 = vst [vmem:[#allocation52_spill] sm:$0xff] %v5807_v46  ;;  %v5809_v28 = vpop.f32.mrf.mxu0  ;;  %v2320_v46 = vsub.s32 0, %v5816_v0 }
 0x284   : > { %6357 = vst [vmem:[#allocation53_spill] sm:$0xff] %v5809_v28  ;;  %v5811_v58 = vpop.f32.mrf.mxu1  ;;  %v2324_v28 = vsub.s32 1, %v5816_v0 }
 0x285   : > { %6358 = vst [vmem:[#allocation54_spill] sm:$0xff] %v5811_v58  ;;  %v5813_v40 = vpop.f32.mrf.mxu0 }
 0x286   : > { %6359 = vst [vmem:[#allocation55_spill] sm:$0xff] %v5813_v40  ;;  %v5818_v54 = vpop.f32.mrf.mxu1  ;;  %v5845_v58 = vrot.slane %v5833_v49, %v2324_v28 }
 0x287   : > { %6361 = vst [vmem:[#allocation56_spill] sm:$0xff] %v5818_v54  ;;  %v5820_v56 = vpop.f32.mrf.mxu0 }
 0x288   : > { %6362 = vst [vmem:[#allocation57_spill] sm:$0xff] %v5820_v56  ;;  %v5822_v6 = vpop.f32.mrf.mxu1 }
 0x289   : > { %6363 = vst [vmem:[#allocation58_spill] sm:$0xff] %v5822_v6  ;;  %v5824_v38 = vpop.f32.mrf.mxu0  ;;  %v5840_v6 = vrot.slane %v5833_v49, %v2320_v46 }
 0x28a   : > { %6364 = vst [vmem:[#allocation59_spill] sm:$0xff] %v5824_v38  ;;  %v5828_v59 = vpop.f32.mrf.mxu1 }
 0x28b   : > { %6365 = vst [vmem:[#allocation60_spill] sm:$0xff] %v5828_v59  ;;  %v5835_v40 = vpop.f32.mrf.mxu0 }
 0x28c   : > { %6366 = vst [vmem:[#allocation61_spill] sm:$0xff] %v5835_v40  ;;  %v1964_v54 = vpop.f32.mrf.mxu1 }
 0x28d   : > { %v1965_v56 = vadd.f32 %v1964_v54, %v5520_v61  ;;  %v5842_v38 = vpop.f32.mrf.mxu0 }
 0x28e   : > { %6367 = vst [vmem:[#allocation62_spill] sm:$0xff] %v5842_v38  ;;  %v1966_v59 = vpop.f32.mrf.mxu1 }
 0x28f   : > { %v1967_v13 = vadd.f32 %v1966_v59, %v5526_v4  ;;  %v5850_v36 = vpop.f32.mrf.mxu0  ;;  %v2338_v26 = vadd.f32 %v5840_v6, %v1965_v56 }
 0x290   : > { %v1968_v40 = vpop.f32.mrf.mxu1 }
 0x291   : > { %v2339_v61 = vadd.f32 %v5845_v58, %v1967_v13  ;;  %v1969_v46 = vadd.f32 %v1968_v40, %v5528_v9  ;;  %v5855_v54 = vpop.f32.mrf.mxu0 }
 0x292   : > { %v1970_v38 = vpop.f32.mrf.mxu1 }
 0x293   : > { %v4046_v53 = vpack.c.bf16 %v2339_v61, %v2338_v26  ;;  %v1971_v28 = vadd.f32 %v1970_v38, %v5538_v10  ;;  %v5858_v35 = vpop.f32.mrf.mxu0  ;;  %v2342_v59 = vadd.f32 %v5840_v6, %v1969_v46 }
 0x294   : > { %v1974_v33 = vpop.f32.mrf.mxu1 }
 0x295   : > { %2658 = vst [vmem:[%s5860_s26] sm:$0xff] %v4046_v53  ;;  %v2343_v4 = vadd.f32 %v5845_v58, %v1971_v28  ;;  %v1975_v9 = vadd.f32 %v1974_v33, %v5542_v8  ;;  %v5866_v40 = vpop.f32.mrf.mxu0 }
 0x296   : > { %6368 = vst [vmem:[#allocation63_spill] sm:$0xff] %v5866_v40  ;;  %v1976_v26 = vpop.f32.mrf.mxu1 }
 0x297   : > { %v4047_v13 = vpack.c.bf16 %v2343_v4, %v2342_v59  ;;  %v1977_v10 = vadd.f32 %v1976_v26, %v5548_v5  ;;  %v5869_v56 = vpop.f32.mrf.mxu0  ;;  %v2346_v61 = vadd.f32 %v5840_v6, %v1975_v9 }
 0x298   : > { %v1978_v38 = vpop.f32.mrf.mxu1 }
 0x299   : > { %2659 = vst [vmem:[%s5860_s26 + $0x8] sm:$0xff] %v4047_v13  ;;  %v2347_v53 = vadd.f32 %v5845_v58, %v1977_v10  ;;  %v1979_v46 = vadd.f32 %v1978_v38, %v5550_v11  ;;  %v5875_v28 = vpop.f32.mrf.mxu0 }
 0x29a   : > { %v1980_v8 = vpop.f32.mrf.mxu1 }
 0x29b   : > { %v4048_v33 = vpack.c.bf16 %v2347_v53, %v2346_v61  ;;  %v1981_v40 = vadd.f32 %v1980_v8, %v5560_v14  ;;  %v5878_v59 = vpop.f32.mrf.mxu0  ;;  %v2350_v4 = vadd.f32 %v5840_v6, %v1979_v46 }
 0x29c   : > { %v1984_v5 = vpop.f32.mrf.mxu1 }
 0x29d   : > { %2660 = vst [vmem:[%s5860_s26 + $0x10] sm:$0xff] %v4048_v33  ;;  %v2351_v26 = vadd.f32 %v5845_v58, %v1981_v40  ;;  %v1985_v9 = vadd.f32 %v1984_v5, %v5566_v41  ;;  %v5884_v13 = vpop.f32.mrf.mxu0 }
 0x29e   : > { %v1986_v11 = vpop.f32.mrf.mxu1 }
 0x29f   : > { %v4049_v10 = vpack.c.bf16 %v2351_v26, %v2350_v4  ;;  %v1987_v38 = vadd.f32 %v1986_v11, %v5574_v18  ;;  %v5887_v61 = vpop.f32.mrf.mxu0  ;;  %v2354_v53 = vadd.f32 %v5840_v6, %v1985_v9 }
 0x2a0   : > { %v1988_v14 = vpop.f32.mrf.mxu1 }
 0x2a1   : > { %2661 = vst [vmem:[%s5860_s26 + $0x18] sm:$0xff] %v4049_v10  ;;  %v2355_v8 = vadd.f32 %v5845_v58, %v1987_v38  ;;  %v1989_v46 = vadd.f32 %v1988_v14, %v5578_v20  ;;  %v5893_v40 = vpop.f32.mrf.mxu0 }
 0x2a2   : > { %v1990_v41 = vpop.f32.mrf.mxu1 }
 0x2a3   : > { %v4050_v33 = vpack.c.bf16 %v2355_v8, %v2354_v53  ;;  %v1991_v5 = vadd.f32 %v1990_v41, %v5591_v22  ;;  %v5896_v4 = vpop.f32.mrf.mxu0  ;;  %v2358_v26 = vadd.f32 %v5840_v6, %v1989_v46 }
 0x2a4   : > { %v1994_v18 = vpop.f32.mrf.mxu1 }
 0x2a5   : > { %2662 = vst [vmem:[%s5860_s26 + $0x20] sm:$0xff] %v4050_v33  ;;  %v2359_v11 = vadd.f32 %v5845_v58, %v1991_v5  ;;  %v1995_v9 = vadd.f32 %v1994_v18, %v5597_v23  ;;  %v5902_v10 = vpop.f32.mrf.mxu0 }
 0x2a6   : > { %v1996_v20 = vpop.f32.mrf.mxu1 }
 0x2a7   : > { %v4051_v38 = vpack.c.bf16 %v2359_v11, %v2358_v26  ;;  %v1997_v14 = vadd.f32 %v1996_v20, %v5605_v24  ;;  %v5905_v53 = vpop.f32.mrf.mxu0  ;;  %v2362_v8 = vadd.f32 %v5840_v6, %v1995_v9 }
 0x2a8   : > { %v1998_v22 = vpop.f32.mrf.mxu1 }
 0x2a9   : > { %2663 = vst [vmem:[%s5860_s26 + $0x28] sm:$0xff] %v4051_v38  ;;  %v2363_v41 = vadd.f32 %v5845_v58, %v1997_v14  ;;  %v1999_v46 = vadd.f32 %v1998_v22, %v5609_v25  ;;  %v5911_v33 = vpop.f32.mrf.mxu0 }
 0x2aa   : > { %v2000_v23 = vpop.f32.mrf.mxu1 }
 0x2ab   : > { %v4052_v5 = vpack.c.bf16 %v2363_v41, %v2362_v8  ;;  %v2001_v18 = vadd.f32 %v2000_v23, %v5621_v29  ;;  %v5914_v26 = vpop.f32.mrf.mxu0  ;;  %v2366_v11 = vadd.f32 %v5840_v6, %v1999_v46 }
 0x2ac   : > { %v2004_v24 = vpop.f32.mrf.mxu1 }
 0x2ad   : > { %2664 = vst [vmem:[%s5860_s26 + $0x30] sm:$0xff] %v4052_v5  ;;  %v2367_v20 = vadd.f32 %v5845_v58, %v2001_v18  ;;  %v2005_v9 = vadd.f32 %v2004_v24, %v5562_v16  ;;  %v5920_v38 = vpop.f32.mrf.mxu0 }
 0x2ae   : > { %v2006_v25 = vpop.f32.mrf.mxu1 }
 0x2af   : > { %v4053_v14 = vpack.c.bf16 %v2367_v20, %v2366_v11  ;;  %v2007_v22 = vadd.f32 %v2006_v25, %v5571_v17  ;;  %v5923_v8 = vpop.f32.mrf.mxu0  ;;  %v2370_v41 = vadd.f32 %v5840_v6, %v2005_v9 }
 0x2b0   : > { %v2008_v29 = vpop.f32.mrf.mxu1 }
 0x2b1   : > { %2665 = vst [vmem:[%s5860_s26 + $0x38] sm:$0xff] %v4053_v14  ;;  %v2371_v23 = vadd.f32 %v5845_v58, %v2007_v22  ;;  %v2009_v46 = vadd.f32 %v2008_v29, %v5576_v19  ;;  %v5929_v5 = vpop.f32.mrf.mxu0 }
 0x2b2   : > { %v2010_v16 = vpop.f32.mrf.mxu1 }
 0x2b3   : > { %v4054_v18 = vpack.c.bf16 %v2371_v23, %v2370_v41  ;;  %v2011_v24 = vadd.f32 %v2010_v16, %v5586_v7  ;;  %v5932_v11 = vpop.f32.mrf.mxu0  ;;  %v2374_v20 = vadd.f32 %v5840_v6, %v2009_v46 }
 0x2b4   : > { %v2014_v17 = vpop.f32.mrf.mxu1 }
 0x2b5   : > { %2666 = vst [vmem:[%s5860_s26 + $0x40] sm:$0xff] %v4054_v18  ;;  %v2375_v25 = vadd.f32 %v5845_v58, %v2011_v24  ;;  %v2015_v9 = vadd.f32 %v2014_v17, %v5593_v37  ;;  %v5938_v14 = vpop.f32.mrf.mxu0 }
 0x2b6   : > { %v2016_v19 = vpop.f32.mrf.mxu1 }
 0x2b7   : > { %v4055_v22 = vpack.c.bf16 %v2375_v25, %v2374_v20  ;;  %v2017_v29 = vadd.f32 %v2016_v19, %v5602_v62  ;;  %v5941_v41 = vpop.f32.mrf.mxu0  ;;  %v2378_v23 = vadd.f32 %v5840_v6, %v2015_v9  ;;  %v2328_v62 = vsub.s32 2, %v5816_v0 }
 0x2b8   : > { %v2018_v7 = vpop.f32.mrf.mxu1  ;;  %v2332_v19 = vsub.s32 3, %v5816_v0 }
 0x2b9   : > { %2667 = vst [vmem:[%s5860_s26 + $0x48] sm:$0xff] %v4055_v22  ;;  %v2379_v16 = vadd.f32 %v5845_v58, %v2017_v29  ;;  %v2019_v46 = vadd.f32 %v2018_v7, %v5607_v51  ;;  %v5947_v18 = vpop.f32.mrf.mxu0 }
 0x2ba   : > { %v2020_v37 = vpop.f32.mrf.mxu1 }
 0x2bb   : > { %v4056_v24 = vpack.c.bf16 %v2379_v16, %v2378_v23  ;;  %v2021_v17 = vadd.f32 %v2020_v37, %v5616_v27  ;;  %v5950_v20 = vpop.f32.mrf.mxu0  ;;  %v2382_v9 = vadd.f32 %v5840_v6, %v2019_v46 }
 0x2bc   : > { %6369 = vst [vmem:[#allocation64_spill] sm:$0xff] %v5950_v20  ;;  %v2024_v25 = vpop.f32.mrf.mxu1  ;;  %v5961_v20 = vrot.slane %v5833_v49, %v2328_v62 }
 0x2bd   : > { %2668 = vst [vmem:[%s5860_s26 + $0x50] sm:$0xff] %v4056_v24  ;;  %v2383_v22 = vadd.f32 %v5845_v58, %v2021_v17  ;;  %v2025_v51 = vadd.f32 %v2024_v25, %v5623_v50  ;;  %v2157_v29 = vpop.f32.mrf.mxu0  ;;  %v5965_v24 = vrot.slane %v5833_v49, %v2332_v19 }
 0x2be   : > { %v2026_v7 = vpop.f32.mrf.mxu1  ;;  %v2158_v37 = vadd.f32 %v2157_v29, %v5627_v34 }
 0x2bf   : > { %v4057_v23 = vpack.c.bf16 %v2383_v22, %v2382_v9  ;;  %v2027_v27 = vadd.f32 %v2026_v7, %v5632_v42  ;;  %v2159_v16 = vpop.f32.mrf.mxu0  ;;  %v2386_v50 = vadd.f32 %v5840_v6, %v2025_v51 }
 0x2c0   : > { %v2160_v0 = vadd.f32 %v2159_v16, %v5635_v2  ;;  %v2028_v46 = vpop.f32.mrf.mxu1  ;;  %v2340_v49 = vadd.f32 %v5961_v20, %v2158_v37 }
 0x2c1   : > { %2669 = vst [vmem:[%s5860_s26 + $0x58] sm:$0xff] %v4057_v23  ;;  %v2387_v17 = vadd.f32 %v5845_v58, %v2027_v27  ;;  %v2029_v42 = vadd.f32 %v2028_v46, %v5637_v1  ;;  %v2161_v25 = vpop.f32.mrf.mxu0 }
 0x2c2   : > { %v2162_v34 = vadd.f32 %v2161_v25, %v5639_v39  ;;  %v2030_v9 = vpop.f32.mrf.mxu1  ;;  %v2341_v19 = vadd.f32 %v5965_v24, %v2160_v0 }
 0x2c3   : > { %v4058_v62 = vpack.c.bf16 %v2387_v17, %v2386_v50  ;;  %v2031_v22 = vadd.f32 %v2030_v9, %v5651_v43  ;;  %v2163_v2 = vpop.f32.mrf.mxu0  ;;  %v2390_v1 = vadd.f32 %v5840_v6, %v2029_v42  ;;  %v2690_v17 = vmax.f32 %v2340_v49, 0.0 }
 0x2c4   : > { %v2344_v29 = vadd.f32 %v5961_v20, %v2162_v34  ;;  %v2164_v51 = vadd.f32 %v2163_v2, %v5653_v44  ;;  %v2034_v7 = vpop.f32.mrf.mxu1  ;;  %v2691_v44 = vmax.f32 %v2341_v19, 0.0 }
 0x2c5   : > { %2670 = vst [vmem:[%s5860_s26 + $0x60] sm:$0xff] %v4058_v62  ;;  %v2391_v39 = vadd.f32 %v5845_v58, %v2031_v22  ;;  %v2035_v23 = vadd.f32 %v2034_v7, %v5655_v45  ;;  %v2167_v27 = vpop.f32.mrf.mxu0 }
 0x2c6   : > { %v2345_v43 = vadd.f32 %v5965_v24, %v2164_v51  ;;  %v2036_v16 = vpop.f32.mrf.mxu1  ;;  %v2692_v37 = vmax.f32 %v2344_v29, 0.0  ;;  %v2168_v45 = vadd.f32 %v2167_v27, %v5659_v47 }
 0x2c7   : > { %v4059_v46 = vpack.c.bf16 %v2391_v39, %v2390_v1  ;;  %v2037_v0 = vadd.f32 %v2036_v16, %v5663_v48  ;;  %v2169_v50 = vpop.f32.mrf.mxu0  ;;  %v2394_v42 = vadd.f32 %v5840_v6, %v2035_v23 }
 0x2c8   : > { %v2693_v25 = vmax.f32 %v2345_v43, 0.0  ;;  %v2170_v34 = vadd.f32 %v2169_v50, %v5666_v15  ;;  %v2038_v9 = vpop.f32.mrf.mxu1  ;;  %v2754_v19 = vpack.c.bf16 %v2692_v37, %v2690_v17 }
 0x2c9   : > { %2671 = vst [vmem:[%s5860_s26 + $0x68] sm:$0xff] %v4059_v46  ;;  %v2395_v62 = vadd.f32 %v5845_v58, %v2037_v0  ;;  %v2039_v22 = vadd.f32 %v2038_v9, %v5671_v52  ;;  %v2171_v2 = vpop.f32.mrf.mxu0  ;;  %v2348_v52 = vadd.f32 %v5961_v20, %v2168_v45 }
 0x2ca   : > { %v2172_v48 = vadd.f32 %v2171_v2, %v5676_v55  ;;  %v2040_v29 = vpop.f32.mrf.mxu1  ;;  %v2755_v49 = vpack.c.bf16 %v2693_v25, %v2691_v44  ;;  %v2349_v1 = vadd.f32 %v5965_v24, %v2170_v34 }
 0x2cb   : > { %v4060_v51 = vpack.c.bf16 %v2395_v62, %v2394_v42  ;;  %v2041_v15 = vadd.f32 %v2040_v29, %v5678_v21  ;;  %v2173_v7 = vpop.f32.mrf.mxu0  ;;  %v2398_v55 = vadd.f32 %v5840_v6, %v2039_v22  ;;  %v2694_v42 = vmax.f32 %v2348_v52, 0.0 }
 0x2cc   : > { %v2352_v39 = vadd.f32 %v5961_v20, %v2172_v48  ;;  %v2174_v47 = vadd.f32 %v2173_v7, %v5680_v57  ;;  %v2044_v23 = vpop.f32.mrf.mxu1  ;;  %3010 = vmatprep.mubr.bf16.mxu1 %v2755_v49  ;;  %v2695_v17 = vmax.f32 %v2349_v1, 0.0  ;;  %v6370_v7 = vld [vmem:[#allocation5_spill] sm:$0xff] }
 0x2cd   : > { %2672 = vst [vmem:[%s5860_s26 + $0x70] sm:$0xff] %v4060_v51  ;;  %v2399_v27 = vadd.f32 %v5845_v58, %v2041_v15  ;;  %v2045_v43 = vadd.f32 %v2044_v23, %v5682_v60  ;;  %v2177_v21 = vpop.f32.mrf.mxu0  ;;  %3011 = vmatmul.mubr.bf16.vlgmr.msra.gmra.mxu1 %v2754_v19 }
 0x2ce   : > { %v2353_v16 = vadd.f32 %v5965_v24, %v2174_v47  ;;  %v2046_v37 = vpop.f32.mrf.mxu1  ;;  %v2696_v46 = vmax.f32 %v2352_v39, 0.0  ;;  %v2178_v25 = vadd.f32 %v2177_v21, %v5684_v30  ;;  %v6371_v47 = vld [vmem:[#allocation6_spill] sm:$0xff]  ;;  %v6372_v21 = vld [vmem:[#allocation8_spill] sm:$0xff] }
 0x2cf   : > { %v4061_v0 = vpack.c.bf16 %v2399_v27, %v2398_v55  ;;  %v2047_v57 = vadd.f32 %v2046_v37, %v5688_v3  ;;  %v2179_v50 = vpop.f32.mrf.mxu0  ;;  %v2402_v60 = vadd.f32 %v5840_v6, %v2045_v43 }
 0x2d0   : > { %v2697_v44 = vmax.f32 %v2353_v16, 0.0  ;;  %v2180_v34 = vadd.f32 %v2179_v50, %v5691_v31  ;;  %v2048_v9 = vpop.f32.mrf.mxu1  ;;  %v2756_v29 = vpack.c.bf16 %v2696_v46, %v2694_v42  ;;  %v2356_v19 = vadd.f32 %v5961_v20, %v2178_v25  ;;  %v6373_v50 = vld [vmem:[#allocation9_spill] sm:$0xff] }
 0x2d1   : > { %2673 = vst [vmem:[%s5860_s26 + $0x78] sm:$0xff] %v4061_v0  ;;  %v2403_v45 = vadd.f32 %v5845_v58, %v2047_v57  ;;  %v2049_v62 = vadd.f32 %v2048_v9, %v5693_v32  ;;  %v2181_v22 = vpop.f32.mrf.mxu0 }
 0x2d2   : > { %v2182_v3 = vadd.f32 %v2181_v22, %v5695_v63  ;;  %v2050_v2 = vpop.f32.mrf.mxu1  ;;  %v2757_v48 = vpack.c.bf16 %v2697_v44, %v2695_v17  ;;  %v2357_v51 = vadd.f32 %v5965_v24, %v2180_v34  ;;  %v2698_v46 = vmax.f32 %v2356_v19, 0.0  ;;  %v6374_v34 = vld [vmem:[#allocation7_spill] sm:$0xff] }
 0x2d3   : > { %v4062_v49 = vpack.c.bf16 %v2403_v45, %v2402_v60  ;;  %v2051_v30 = vadd.f32 %v2050_v2, %v5697_v12  ;;  %v2183_v31 = vpop.f32.mrf.mxu0  ;;  %v2406_v32 = vadd.f32 %v5840_v6, %v2049_v62  ;;  %v6375_v60 = vld [vmem:[#allocation10_spill] sm:$0xff]  ;;  %v6376_v22 = vld [vmem:[#allocation11_spill] sm:$0xff] }
 0x2d4   : > { %v2360_v15 = vadd.f32 %v5961_v20, %v2182_v3  ;;  %v2184_v1 = vadd.f32 %v2183_v31, %v6370_v7  ;;  %v2054_v39 = vpop.f32.mrf.mxu1  ;;  %3020 = vmatprep.mubr.bf16.mxu1 %v2757_v48  ;;  %v2699_v0 = vmax.f32 %v2357_v51, 0.0  ;;  %v6378_v7 = vld [vmem:[#allocation13_spill] sm:$0xff] }
 0x2d5   : > { %2674 = vst [vmem:[%s5860_s26 + $0x80] sm:$0xff] %v4062_v49  ;;  %v2407_v63 = vadd.f32 %v5845_v58, %v2051_v30  ;;  %v2055_v23 = vadd.f32 %v2054_v39, %v6371_v47  ;;  %v2187_v12 = vpop.f32.mrf.mxu0  ;;  %3021 = vmatmul.mubr.bf16.gmra.mxu1 %v2756_v29  ;;  %v6377_v30 = vld [vmem:[#allocation12_spill] sm:$0xff] }
 0x2d6   : > { %v2361_v52 = vadd.f32 %v5965_v24, %v2184_v1  ;;  %v2056_v55 = vpop.f32.mrf.mxu1  ;;  %v2700_v27 = vmax.f32 %v2360_v15, 0.0  ;;  %v2188_v9 = vadd.f32 %v2187_v12, %v6374_v34 }
 0x2d7   : > { %v4063_v43 = vpack.c.bf16 %v2407_v63, %v2406_v32  ;;  %v2057_v16 = vadd.f32 %v2056_v55, %v6372_v21  ;;  %v2189_v37 = vpop.f32.mrf.mxu0  ;;  %v2410_v25 = vadd.f32 %v5840_v6, %v2055_v23  ;;  %v6379_v23 = vld [vmem:[#allocation14_spill] sm:$0xff] }
 0x2d8   : > { %v2701_v57 = vmax.f32 %v2361_v52, 0.0  ;;  %v2190_v17 = vadd.f32 %v2189_v37, %v6373_v50  ;;  %v2058_v44 = vpop.f32.mrf.mxu1  ;;  %v2758_v29 = vpack.c.bf16 %v2700_v27, %v2698_v46  ;;  %v2364_v32 = vadd.f32 %v5961_v20, %v2188_v9  ;;  %v6381_v50 = vld [vmem:[#allocation15_spill] sm:$0xff] }
 0x2d9   : > { %2675 = vst [vmem:[%s5860_s26 + $0x88] sm:$0xff] %v4063_v43  ;;  %v2411_v42 = vadd.f32 %v5845_v58, %v2057_v16  ;;  %v2059_v45 = vadd.f32 %v2058_v44, %v6375_v60  ;;  %v2191_v62 = vpop.f32.mrf.mxu0  ;;  %v6380_v16 = vld [vmem:[#allocation16_spill] sm:$0xff]  ;;  %v6382_v44 = vld [vmem:[#allocation17_spill] sm:$0xff] }
 0x2da   : > { %v2192_v3 = vadd.f32 %v2191_v62, %v6376_v22  ;;  %v2060_v2 = vpop.f32.mrf.mxu1  ;;  %v2759_v48 = vpack.c.bf16 %v2701_v57, %v2699_v0  ;;  %v2365_v51 = vadd.f32 %v5965_v24, %v2190_v17  ;;  %v2702_v9 = vmax.f32 %v2364_v32, 0.0 }
 0x2db   : > { %v4064_v49 = vpack.c.bf16 %v2411_v42, %v2410_v25  ;;  %v2061_v31 = vadd.f32 %v2060_v2, %v6377_v30  ;;  %v2193_v19 = vpop.f32.mrf.mxu0  ;;  %v2414_v63 = vadd.f32 %v5840_v6, %v2059_v45  ;;  %v6383_v45 = vld [vmem:[#allocation18_spill] sm:$0xff] }
 0x2dc   : > { %v2368_v15 = vadd.f32 %v5961_v20, %v2192_v3  ;;  %v2194_v1 = vadd.f32 %v2193_v19, %v6378_v7  ;;  %v2064_v39 = vpop.f32.mrf.mxu1  ;;  %3030 = vmatprep.mubr.bf16.mxu1 %v2759_v48  ;;  %v2703_v0 = vmax.f32 %v2365_v51, 0.0  ;;  %v6384_v3 = vld [vmem:[#allocation19_spill] sm:$0xff] }
 0x2dd   : > { %2676 = vst [vmem:[%s5860_s26 + $0x90] sm:$0xff] %v4064_v49  ;;  %v2415_v47 = vadd.f32 %v5845_v58, %v2061_v31  ;;  %v2065_v12 = vadd.f32 %v2064_v39, %v6379_v23  ;;  %v2197_v52 = vpop.f32.mrf.mxu0  ;;  %3031 = vmatmul.mubr.bf16.gmra.mxu1 %v2758_v29  ;;  %v6385_v31 = vld [vmem:[#allocation20_spill] sm:$0xff]  ;;  %v6386_v39 = vld [vmem:[#allocation21_spill] sm:$0xff] }
 0x2de   : > { %v2369_v55 = vadd.f32 %v5965_v24, %v2194_v1  ;;  %v2066_v27 = vpop.f32.mrf.mxu1  ;;  %v2704_v43 = vmax.f32 %v2368_v15, 0.0  ;;  %v2198_v17 = vadd.f32 %v2197_v52, %v6381_v50 }
 0x2df   : > { %v4065_v21 = vpack.c.bf16 %v2415_v47, %v2414_v63  ;;  %v2067_v37 = vadd.f32 %v2066_v27, %v6380_v16  ;;  %v2199_v46 = vpop.f32.mrf.mxu0  ;;  %v2418_v42 = vadd.f32 %v5840_v6, %v2065_v12  ;;  %v6387_v12 = vld [vmem:[#allocation22_spill] sm:$0xff] }
 0x2e0   : > { %v2705_v57 = vmax.f32 %v2369_v55, 0.0  ;;  %v2200_v25 = vadd.f32 %v2199_v46, %v6382_v44  ;;  %v2068_v34 = vpop.f32.mrf.mxu1  ;;  %v2760_v49 = vpack.c.bf16 %v2704_v43, %v2702_v9  ;;  %v2372_v15 = vadd.f32 %v5961_v20, %v2198_v17  ;;  %v6389_v44 = vld [vmem:[#allocation25_spill] sm:$0xff] }
 0x2e1   : > { %2677 = vst [vmem:[%s5860_s26 + $0x98] sm:$0xff] %v4065_v21  ;;  %v2419_v60 = vadd.f32 %v5845_v58, %v2067_v37  ;;  %v2069_v62 = vadd.f32 %v2068_v34, %v6383_v45  ;;  %v2201_v22 = vpop.f32.mrf.mxu0  ;;  %v6388_v37 = vld [vmem:[#allocation24_spill] sm:$0xff] }
 0x2e2   : > { %v2202_v2 = vadd.f32 %v2201_v22, %v6384_v3  ;;  %v2070_v48 = vpop.f32.mrf.mxu1  ;;  %v2761_v29 = vpack.c.bf16 %v2705_v57, %v2703_v0  ;;  %v2373_v7 = vadd.f32 %v5965_v24, %v2200_v25  ;;  %v2706_v57 = vmax.f32 %v2372_v15, 0.0 }
 0x2e3   : > { %v4066_v30 = vpack.c.bf16 %v2419_v60, %v2418_v42  ;;  %v2071_v19 = vadd.f32 %v2070_v48, %v6385_v31  ;;  %v2203_v51 = vpop.f32.mrf.mxu0  ;;  %v2422_v47 = vadd.f32 %v5840_v6, %v2069_v62  ;;  %v6390_v42 = vld [vmem:[#allocation23_spill] sm:$0xff]  ;;  %v6391_v62 = vld [vmem:[#allocation26_spill] sm:$0xff] }
 0x2e4   : > { %v2376_v1 = vadd.f32 %v5961_v20, %v2202_v2  ;;  %v2204_v32 = vadd.f32 %v2203_v51, %v6386_v39  ;;  %v2074_v63 = vpop.f32.mrf.mxu1  ;;  %3040 = vmatprep.mubr.bf16.mxu1 %v2761_v29  ;;  %v2707_v50 = vmax.f32 %v2373_v7, 0.0  ;;  %v6392_v2 = vld [vmem:[#allocation27_spill] sm:$0xff]  ;;  %v6394_v39 = vld [vmem:[#allocation29_spill] sm:$0xff] }
 0x2e5   : > { %2678 = vst [vmem:[%s5860_s26 + $0xa0] sm:$0xff] %v4066_v30  ;;  %v2423_v23 = vadd.f32 %v5845_v58, %v2071_v19  ;;  %v2075_v52 = vadd.f32 %v2074_v63, %v6387_v12  ;;  %v2207_v55 = vpop.f32.mrf.mxu0  ;;  %3041 = vmatmul.mubr.bf16.gmra.mxu1 %v2760_v49  ;;  %v6393_v19 = vld [vmem:[#allocation28_spill] sm:$0xff] }
 0x2e6   : > { %v2377_v27 = vadd.f32 %v5965_v24, %v2204_v32  ;;  %v2076_v43 = vpop.f32.mrf.mxu1  ;;  %v2708_v21 = vmax.f32 %v2376_v1, 0.0  ;;  %v2208_v60 = vadd.f32 %v2207_v55, %v6390_v42 }
 0x2e7   : > { %v4067_v16 = vpack.c.bf16 %v2423_v23, %v2422_v47  ;;  %v2077_v46 = vadd.f32 %v2076_v43, %v6388_v37  ;;  %v2209_v0 = vpop.f32.mrf.mxu0  ;;  %v2426_v9 = vadd.f32 %v5840_v6, %v2075_v52  ;;  %v6395_v52 = vld [vmem:[#allocation30_spill] sm:$0xff] }
 0x2e8   : > { %v2709_v17 = vmax.f32 %v2377_v27, 0.0  ;;  %v2210_v25 = vadd.f32 %v2209_v0, %v6389_v44  ;;  %v2078_v34 = vpop.f32.mrf.mxu1  ;;  %v2762_v30 = vpack.c.bf16 %v2708_v21, %v2706_v57  ;;  %v2380_v47 = vadd.f32 %v5961_v20, %v2208_v60  ;;  %v6397_v44 = vld [vmem:[#allocation31_spill] sm:$0xff] }
 0x2e9   : > { %2679 = vst [vmem:[%s5860_s26 + $0xa8] sm:$0xff] %v4067_v16  ;;  %v2427_v45 = vadd.f32 %v5845_v58, %v2077_v46  ;;  %v2079_v22 = vadd.f32 %v2078_v34, %v6391_v62  ;;  %v2211_v3 = vpop.f32.mrf.mxu0  ;;  %v6396_v46 = vld [vmem:[#allocation32_spill] sm:$0xff]  ;;  %v6398_v34 = vld [vmem:[#allocation33_spill] sm:$0xff] }
 0x2ea   : > { %v2212_v48 = vadd.f32 %v2211_v3, %v6392_v2  ;;  %v2080_v29 = vpop.f32.mrf.mxu1  ;;  %v2763_v49 = vpack.c.bf16 %v2709_v17, %v2707_v50  ;;  %v2381_v7 = vadd.f32 %v5965_v24, %v2210_v25  ;;  %v2710_v60 = vmax.f32 %v2380_v47, 0.0 }
 0x2eb   : > { %v4068_v31 = vpack.c.bf16 %v2427_v45, %v2426_v9  ;;  %v2081_v51 = vadd.f32 %v2080_v29, %v6393_v19  ;;  %v2213_v15 = vpop.f32.mrf.mxu0  ;;  %v2430_v23 = vadd.f32 %v5840_v6, %v2079_v22  ;;  %v6399_v22 = vld [vmem:[#allocation34_spill] sm:$0xff] }
 0x2ec   : > { %v2384_v1 = vadd.f32 %v5961_v20, %v2212_v48  ;;  %v2214_v32 = vadd.f32 %v2213_v15, %v6394_v39  ;;  %v2084_v63 = vpop.f32.mrf.mxu1  ;;  %3050 = vmatprep.mubr.bf16.mxu1 %v2763_v49  ;;  %v2711_v50 = vmax.f32 %v2381_v7, 0.0  ;;  %v6400_v48 = vld [vmem:[#allocation35_spill] sm:$0xff] }
 0x2ed   : > { %2680 = vst [vmem:[%s5860_s26 + $0xb0] sm:$0xff] %v4068_v31  ;;  %v2431_v12 = vadd.f32 %v5845_v58, %v2081_v51  ;;  %v2085_v55 = vadd.f32 %v2084_v63, %v6395_v52  ;;  %v2217_v27 = vpop.f32.mrf.mxu0  ;;  %3051 = vmatmul.mubr.bf16.gmra.mxu1 %v2762_v30  ;;  %v6401_v51 = vld [vmem:[#allocation36_spill] sm:$0xff]  ;;  %v6402_v63 = vld [vmem:[#allocation37_spill] sm:$0xff] }
 0x2ee   : > { %v2385_v43 = vadd.f32 %v5965_v24, %v2214_v32  ;;  %v2086_v21 = vpop.f32.mrf.mxu1  ;;  %v2712_v16 = vmax.f32 %v2384_v1, 0.0  ;;  %v2218_v25 = vadd.f32 %v2217_v27, %v6397_v44 }
 0x2ef   : > { %v4069_v37 = vpack.c.bf16 %v2431_v12, %v2430_v23  ;;  %v2087_v0 = vadd.f32 %v2086_v21, %v6396_v46  ;;  %v2219_v57 = vpop.f32.mrf.mxu0  ;;  %v2434_v45 = vadd.f32 %v5840_v6, %v2085_v55  ;;  %v6403_v55 = vld [vmem:[#allocation38_spill] sm:$0xff] }
 0x2f0   : > { %v2713_v17 = vmax.f32 %v2385_v43, 0.0  ;;  %v2220_v9 = vadd.f32 %v2219_v57, %v6398_v34  ;;  %v2088_v42 = vpop.f32.mrf.mxu1  ;;  %v2764_v31 = vpack.c.bf16 %v2712_v16, %v2710_v60  ;;  %v2388_v1 = vadd.f32 %v5961_v20, %v2218_v25  ;;  %v6405_v34 = vld [vmem:[#allocation41_spill] sm:$0xff] }
 0x2f1   : > { %2681 = vst [vmem:[%s5860_s26 + $0xb8] sm:$0xff] %v4069_v37  ;;  %v2435_v62 = vadd.f32 %v5845_v58, %v2087_v0  ;;  %v2089_v3 = vadd.f32 %v2088_v42, %v6399_v22  ;;  %v2221_v2 = vpop.f32.mrf.mxu0  ;;  %v6404_v0 = vld [vmem:[#allocation40_spill] sm:$0xff] }
 0x2f2   : > { %v2222_v29 = vadd.f32 %v2221_v2, %v6400_v48  ;;  %v2090_v49 = vpop.f32.mrf.mxu1  ;;  %v2765_v30 = vpack.c.bf16 %v2713_v17, %v2711_v50  ;;  %v2389_v39 = vadd.f32 %v5965_v24, %v2220_v9  ;;  %v2714_v17 = vmax.f32 %v2388_v1, 0.0 }
 0x2f3   : > { %v4070_v19 = vpack.c.bf16 %v2435_v62, %v2434_v45  ;;  %v2091_v15 = vadd.f32 %v2090_v49, %v6401_v51  ;;  %v2223_v7 = vpop.f32.mrf.mxu0  ;;  %v2438_v12 = vadd.f32 %v5840_v6, %v2089_v3  ;;  %v6406_v45 = vld [vmem:[#allocation39_spill] sm:$0xff]  ;;  %v6407_v3 = vld [vmem:[#allocation42_spill] sm:$0xff] }
 0x2f4   : > { %v2392_v32 = vadd.f32 %v5961_v20, %v2222_v29  ;;  %v2224_v47 = vadd.f32 %v2223_v7, %v6402_v63  ;;  %v2094_v23 = vpop.f32.mrf.mxu1  ;;  %3060 = vmatprep.mubr.bf16.mxu1 %v2765_v30  ;;  %v2715_v44 = vmax.f32 %v2389_v39, 0.0  ;;  %v6408_v29 = vld [vmem:[#allocation43_spill] sm:$0xff]  ;;  %v6410_v63 = vld [vmem:[#allocation45_spill] sm:$0xff] }
 0x2f5   : > { %2682 = vst [vmem:[%s5860_s26 + $0xc0] sm:$0xff] %v4070_v19  ;;  %v2439_v52 = vadd.f32 %v5845_v58, %v2091_v15  ;;  %v2095_v27 = vadd.f32 %v2094_v23, %v6403_v55  ;;  %v2227_v43 = vpop.f32.mrf.mxu0  ;;  %3061 = vmatmul.mubr.bf16.gmra.mxu1 %v2764_v31  ;;  %v6409_v15 = vld [vmem:[#allocation44_spill] sm:$0xff] }
 0x2f6   : > { %v2393_v21 = vadd.f32 %v5965_v24, %v2224_v47  ;;  %v2096_v16 = vpop.f32.mrf.mxu1  ;;  %v2716_v37 = vmax.f32 %v2392_v32, 0.0  ;;  %v2228_v62 = vadd.f32 %v2227_v43, %v6406_v45 }
 0x2f7   : > { %v4071_v46 = vpack.c.bf16 %v2439_v52, %v2438_v12  ;;  %v2097_v57 = vadd.f32 %v2096_v16, %v6404_v0  ;;  %v2229_v50 = vpop.f32.mrf.mxu0  ;;  %v2442_v60 = vadd.f32 %v5840_v6, %v2095_v27  ;;  %v6411_v27 = vld [vmem:[#allocation46_spill] sm:$0xff] }
 0x2f8   : > { %v2717_v25 = vmax.f32 %v2393_v21, 0.0  ;;  %v2230_v9 = vadd.f32 %v2229_v50, %v6405_v34  ;;  %v2098_v42 = vpop.f32.mrf.mxu1  ;;  %v2766_v19 = vpack.c.bf16 %v2716_v37, %v2714_v17  ;;  %v2396_v12 = vadd.f32 %v5961_v20, %v2228_v62  ;;  %v6413_v34 = vld [vmem:[#allocation47_spill] sm:$0xff] }
 0x2f9   : > { %2683 = vst [vmem:[%s5860_s26 + $0xc8] sm:$0xff] %v4071_v46  ;;  %v2443_v22 = vadd.f32 %v5845_v58, %v2097_v57  ;;  %v2099_v2 = vadd.f32 %v2098_v42, %v6407_v3  ;;  %v2231_v48 = vpop.f32.mrf.mxu0  ;;  %v6412_v57 = vld [vmem:[#allocation48_spill] sm:$0xff]  ;;  %v6414_v42 = vld [vmem:[#allocation49_spill] sm:$0xff] }
 0x2fa   : > { %v2232_v49 = vadd.f32 %v2231_v48, %v6408_v29  ;;  %v2100_v30 = vpop.f32.mrf.mxu1  ;;  %v2767_v31 = vpack.c.bf16 %v2717_v25, %v2715_v44  ;;  %v2397_v39 = vadd.f32 %v5965_v24, %v2230_v9  ;;  %v2718_v62 = vmax.f32 %v2396_v12, 0.0 }
 0x2fb   : > { %v4072_v51 = vpack.c.bf16 %v2443_v22, %v2442_v60  ;;  %v2101_v7 = vadd.f32 %v2100_v30, %v6409_v15  ;;  %v2233_v1 = vpop.f32.mrf.mxu0  ;;  %v2446_v52 = vadd.f32 %v5840_v6, %v2099_v2  ;;  %v6415_v2 = vld [vmem:[#allocation50_spill] sm:$0xff] }
 0x2fc   : > { %v2400_v32 = vadd.f32 %v5961_v20, %v2232_v49  ;;  %v2234_v47 = vadd.f32 %v2233_v1, %v6410_v63  ;;  %v2104_v23 = vpop.f32.mrf.mxu1  ;;  %3070 = vmatprep.mubr.bf16.mxu1 %v2767_v31  ;;  %v2719_v44 = vmax.f32 %v2397_v39, 0.0  ;;  %v6416_v49 = vld [vmem:[#allocation51_spill] sm:$0xff] }
 0x2fd   : > { %2684 = vst [vmem:[%s5860_s26 + $0xd0] sm:$0xff] %v4072_v51  ;;  %v2447_v55 = vadd.f32 %v5845_v58, %v2101_v7  ;;  %v2105_v43 = vadd.f32 %v2104_v23, %v6411_v27  ;;  %v2237_v21 = vpop.f32.mrf.mxu0  ;;  %3071 = vmatmul.mubr.bf16.gmra.mxu1 %v2766_v19  ;;  %v6417_v7 = vld [vmem:[#allocation52_spill] sm:$0xff]  ;;  %v6418_v23 = vld [vmem:[#allocation53_spill] sm:$0xff] }
 0x2fe   : > { %v2401_v16 = vadd.f32 %v5965_v24, %v2234_v47  ;;  %v2106_v37 = vpop.f32.mrf.mxu1  ;;  %v2720_v46 = vmax.f32 %v2400_v32, 0.0  ;;  %v2238_v9 = vadd.f32 %v2237_v21, %v6413_v34 }
 0x2ff   : > { %v4073_v0 = vpack.c.bf16 %v2447_v55, %v2446_v52  ;;  %v2107_v50 = vadd.f32 %v2106_v37, %v6412_v57  ;;  %v2239_v17 = vpop.f32.mrf.mxu0  ;;  %v2450_v22 = vadd.f32 %v5840_v6, %v2105_v43  ;;  %v6419_v43 = vld [vmem:[#allocation54_spill] sm:$0xff] }
 0x300   : > { %v2721_v25 = vmax.f32 %v2401_v16, 0.0  ;;  %v2240_v60 = vadd.f32 %v2239_v17, %v6414_v42  ;;  %v2108_v45 = vpop.f32.mrf.mxu1  ;;  %v2768_v51 = vpack.c.bf16 %v2720_v46, %v2718_v62  ;;  %v2404_v32 = vadd.f32 %v5961_v20, %v2238_v9  ;;  %v6421_v42 = vld [vmem:[#allocation57_spill] sm:$0xff] }
 0x301   : > { %2685 = vst [vmem:[%s5860_s26 + $0xd8] sm:$0xff] %v4073_v0  ;;  %v2451_v3 = vadd.f32 %v5845_v58, %v2107_v50  ;;  %v2109_v48 = vadd.f32 %v2108_v45, %v6415_v2  ;;  %v2241_v29 = vpop.f32.mrf.mxu0  ;;  %v6420_v50 = vld [vmem:[#allocation56_spill] sm:$0xff] }
 0x302   : > { %v2242_v30 = vadd.f32 %v2241_v29, %v6416_v49  ;;  %v2110_v31 = vpop.f32.mrf.mxu1  ;;  %v2769_v19 = vpack.c.bf16 %v2721_v25, %v2719_v44  ;;  %v2405_v63 = vadd.f32 %v5965_v24, %v2240_v60  ;;  %v2722_v25 = vmax.f32 %v2404_v32, 0.0 }
 0x303   : > { %v4074_v15 = vpack.c.bf16 %v2451_v3, %v2450_v22  ;;  %v2111_v1 = vadd.f32 %v2110_v31, %v6417_v7  ;;  %v2243_v39 = vpop.f32.mrf.mxu0  ;;  %v2454_v55 = vadd.f32 %v5840_v6, %v2109_v48  ;;  %v6422_v22 = vld [vmem:[#allocation55_spill] sm:$0xff]  ;;  %v6423_v48 = vld [vmem:[#allocation58_spill] sm:$0xff] }
 0x304   : > { %v2408_v47 = vadd.f32 %v5961_v20, %v2242_v30  ;;  %v2244_v12 = vadd.f32 %v2243_v39, %v6418_v23  ;;  %v2114_v52 = vpop.f32.mrf.mxu1  ;;  %3080 = vmatprep.mubr.bf16.mxu1 %v2769_v19  ;;  %v2723_v34 = vmax.f32 %v2405_v63, 0.0  ;;  %v6424_v30 = vld [vmem:[#allocation59_spill] sm:$0xff]  ;;  %v6426_v23 = vld [vmem:[#allocation61_spill] sm:$0xff] }
 0x305   : > { %2686 = vst [vmem:[%s5860_s26 + $0xe0] sm:$0xff] %v4074_v15  ;;  %v2455_v27 = vadd.f32 %v5845_v58, %v2111_v1  ;;  %v2115_v21 = vadd.f32 %v2114_v52, %v6419_v43  ;;  %v2247_v16 = vpop.f32.mrf.mxu0  ;;  %3081 = vmatmul.mubr.bf16.gmra.mxu1 %v2768_v51  ;;  %v6425_v1 = vld [vmem:[#allocation60_spill] sm:$0xff] }
 0x306   : > { %v2409_v37 = vadd.f32 %v5965_v24, %v2244_v12  ;;  %v2116_v46 = vpop.f32.mrf.mxu1  ;;  %v2724_v0 = vmax.f32 %v2408_v47, 0.0  ;;  %v2248_v3 = vadd.f32 %v2247_v16, %v6422_v22 }
 0x307   : > { %v4075_v57 = vpack.c.bf16 %v2455_v27, %v2454_v55  ;;  %v2117_v17 = vadd.f32 %v2116_v46, %v6420_v50  ;;  %v2249_v44 = vpop.f32.mrf.mxu0  ;;  %v2458_v62 = vadd.f32 %v5840_v6, %v2115_v21 }
 0x308   : > { %v2725_v9 = vmax.f32 %v2409_v37, 0.0  ;;  %v2250_v60 = vadd.f32 %v2249_v44, %v6421_v42  ;;  %v2118_v45 = vpop.f32.mrf.mxu1  ;;  %v2770_v15 = vpack.c.bf16 %v2724_v0, %v2722_v25  ;;  %v2412_v52 = vadd.f32 %v5961_v20, %v2248_v3  ;;  %v6427_v44 = vld [vmem:[#allocation62_spill] sm:$0xff] }
 0x309   : > { %2687 = vst [vmem:[%s5860_s26 + $0xe8] sm:$0xff] %v4075_v57  ;;  %v2459_v2 = vadd.f32 %v5845_v58, %v2117_v17  ;;  %v2119_v29 = vadd.f32 %v2118_v45, %v6423_v48  ;;  %v2251_v49 = vpop.f32.mrf.mxu0 }
 0x30a   : > { %v2252_v31 = vadd.f32 %v2251_v49, %v6424_v30  ;;  %v2120_v19 = vpop.f32.mrf.mxu1  ;;  %v2771_v51 = vpack.c.bf16 %v2725_v9, %v2723_v34  ;;  %v2413_v63 = vadd.f32 %v5965_v24, %v2250_v60  ;;  %v2726_v17 = vmax.f32 %v2412_v52, 0.0 }
 0x30b   : > { %v4076_v7 = vpack.c.bf16 %v2459_v2, %v2458_v62  ;;  %v2121_v39 = vadd.f32 %v2120_v19, %v6425_v1  ;;  %v2253_v32 = vpop.f32.mrf.mxu0  ;;  %v2462_v55 = vadd.f32 %v5840_v6, %v2119_v29 }
 0x30c   : > { %v2416_v47 = vadd.f32 %v5961_v20, %v2252_v31  ;;  %v2254_v12 = vadd.f32 %v2253_v32, %v6426_v23  ;;  %3090 = vmatprep.mubr.bf16.mxu1 %v2771_v51  ;;  %v2727_v0 = vmax.f32 %v2413_v63, 0.0  ;;  %v6428_v31 = vld [vmem:[#allocation63_spill] sm:$0xff] }
 0x30d   : > { %2688 = vst [vmem:[%s5860_s26 + $0xf0] sm:$0xff] %v4076_v7  ;;  %v2463_v27 = vadd.f32 %v5845_v58, %v2121_v39  ;;  %v2257_v43 = vpop.f32.mrf.mxu0  ;;  %3091 = vmatmul.mubr.bf16.gmra.mxu1 %v2770_v15 }
 0x30e   : > { %v2417_v21 = vadd.f32 %v5965_v24, %v2254_v12  ;;  %v2728_v16 = vmax.f32 %v2416_v47, 0.0  ;;  %v2258_v25 = vadd.f32 %v2257_v43, %v6427_v44 }
 0x30f   : > { %v4077_v37 = vpack.c.bf16 %v2463_v27, %v2462_v55  ;;  %v2259_v46 = vpop.f32.mrf.mxu0 }
 0x310   : > { %v2729_v57 = vmax.f32 %v2417_v21, 0.0  ;;  %v2260_v50 = vadd.f32 %v2259_v46, %v5850_v36  ;;  %v2772_v58 = vpack.c.bf16 %v2728_v16, %v2726_v17  ;;  %v2420_v22 = vadd.f32 %v5961_v20, %v2258_v25 }
 0x311   : > { %2689 = vst [vmem:[%s5860_s26 + $0xf8] sm:$0xff] %v4077_v37  ;;  %v2261_v34 = vpop.f32.mrf.mxu0  ;;  %s4568_s26 = scalar_lea.vmem %s4567_s25, 8192 }
 0x312   : > { %v2262_v6 = vadd.f32 %v2261_v34, %v5855_v54  ;;  %v2773_v9 = vpack.c.bf16 %v2729_v57, %v2727_v0  ;;  %v2421_v60 = vadd.f32 %v5965_v24, %v2260_v50  ;;  %v2730_v30 = vmax.f32 %v2420_v22, 0.0  ;;  %p4570_p2 = scmp.lt.s32.totalorder %s4568_s26, %s4562_s23 }
 0x313   : > { %v2263_v42 = vpop.f32.mrf.mxu0 }
 0x314   : > { %v2424_v45 = vadd.f32 %v5961_v20, %v2262_v6  ;;  %v2264_v62 = vadd.f32 %v2263_v42, %v5858_v35  ;;  %3100 = vmatprep.mubr.bf16.mxu1 %v2773_v9  ;;  %v2731_v29 = vmax.f32 %v2421_v60, 0.0  ;;  %p4571_p3 = por %p4570_p2, %p4569_p1 }
 0x315   : > { %v2267_v36 = vpop.f32.mrf.mxu0  ;;  %3101 = vmatmul.mubr.bf16.gmra.mxu1 %v2772_v58 }
 0x316   : > { %v2425_v3 = vadd.f32 %v5965_v24, %v2264_v62  ;;  %v2732_v2 = vmax.f32 %v2424_v45, 0.0  ;;  %v2268_v19 = vadd.f32 %v2267_v36, %v6428_v31  ;;  %p4572_p5 = pnand %p4571_p3, %p4565_p0 }
 0x317   : > { %v2269_v48 = vpop.f32.mrf.mxu0 }
 0x318   : > { %v2733_v54 = vmax.f32 %v2425_v3, 0.0  ;;  %v2270_v49 = vadd.f32 %v2269_v48, %v5869_v56  ;;  %v2774_v7 = vpack.c.bf16 %v2732_v2, %v2730_v30  ;;  %v2428_v47 = vadd.f32 %v5961_v20, %v2268_v19 }
 0x319   : > { %v2271_v51 = vpop.f32.mrf.mxu0 }
 0x31a   : > { %v2272_v15 = vadd.f32 %v2271_v51, %v5875_v28  ;;  %v2775_v35 = vpack.c.bf16 %v2733_v54, %v2731_v29  ;;  %v2429_v39 = vadd.f32 %v5965_v24, %v2270_v49  ;;  %v2734_v43 = vmax.f32 %v2428_v47, 0.0 }
 0x31b   : > { %v2273_v1 = vpop.f32.mrf.mxu0 }
 0x31c   : > { %v2432_v32 = vadd.f32 %v5961_v20, %v2272_v15  ;;  %v2274_v63 = vadd.f32 %v2273_v1, %v5878_v59  ;;  %3110 = vmatprep.mubr.bf16.mxu1 %v2775_v35  ;;  %v2735_v55 = vmax.f32 %v2429_v39, 0.0 }
 0x31d   : > { %v2277_v23 = vpop.f32.mrf.mxu0  ;;  %3111 = vmatmul.mubr.bf16.gmra.mxu1 %v2774_v7 }
 0x31e   : > { %v2433_v56 = vadd.f32 %v5965_v24, %v2274_v63  ;;  %v2736_v12 = vmax.f32 %v2432_v32, 0.0  ;;  %v2278_v21 = vadd.f32 %v2277_v23, %v5884_v13 }
 0x31f   : > { %v2279_v52 = vpop.f32.mrf.mxu0 }
 0x320   : > { %v2737_v28 = vmax.f32 %v2433_v56, 0.0  ;;  %v2280_v27 = vadd.f32 %v2279_v52, %v5887_v61  ;;  %v2776_v46 = vpack.c.bf16 %v2736_v12, %v2734_v43  ;;  %v2436_v44 = vadd.f32 %v5961_v20, %v2278_v21 }
 0x321   : > { %v2281_v16 = vpop.f32.mrf.mxu0 }
 0x322   : > { %v2282_v37 = vadd.f32 %v2281_v16, %v5893_v40  ;;  %v2777_v59 = vpack.c.bf16 %v2737_v28, %v2735_v55  ;;  %v2437_v57 = vadd.f32 %v5965_v24, %v2280_v27  ;;  %v2738_v58 = vmax.f32 %v2436_v44, 0.0 }
 0x323   : > { %v2283_v0 = vpop.f32.mrf.mxu0 }
 0x324   : > { %v2440_v50 = vadd.f32 %v5961_v20, %v2282_v37  ;;  %v2284_v17 = vadd.f32 %v2283_v0, %v5896_v4  ;;  %3120 = vmatprep.mubr.bf16.mxu1 %v2777_v59  ;;  %v2739_v6 = vmax.f32 %v2437_v57, 0.0  ;;  %v6429_v59 = vld [vmem:[#allocation64_spill] sm:$0xff] }
 0x325   : > { %v2287_v25 = vpop.f32.mrf.mxu0  ;;  %3121 = vmatmul.mubr.bf16.gmra.mxu1 %v2776_v46 }
 0x326   : > { %v2441_v61 = vadd.f32 %v5965_v24, %v2284_v17  ;;  %v2740_v13 = vmax.f32 %v2440_v50, 0.0  ;;  %v2288_v42 = vadd.f32 %v2287_v25, %v5902_v10 }
 0x327   : > { %v2289_v34 = vpop.f32.mrf.mxu0 }
 0x328   : > { %v2741_v40 = vmax.f32 %v2441_v61, 0.0  ;;  %v2290_v9 = vadd.f32 %v2289_v34, %v5905_v53  ;;  %v2778_v62 = vpack.c.bf16 %v2740_v13, %v2738_v58  ;;  %v2444_v48 = vadd.f32 %v5961_v20, %v2288_v42 }
 0x329   : > { %v2291_v60 = vpop.f32.mrf.mxu0 }
 0x32a   : > { %v2292_v45 = vadd.f32 %v2291_v60, %v5911_v33  ;;  %v2779_v4 = vpack.c.bf16 %v2741_v40, %v2739_v6  ;;  %v2445_v36 = vadd.f32 %v5965_v24, %v2290_v9  ;;  %v2742_v31 = vmax.f32 %v2444_v48, 0.0 }
 0x32b   : > { %v2293_v22 = vpop.f32.mrf.mxu0 }
 0x32c   : > { %v2448_v3 = vadd.f32 %v5961_v20, %v2292_v45  ;;  %v2294_v2 = vadd.f32 %v2293_v22, %v5914_v26  ;;  %3130 = vmatprep.mubr.bf16.mxu1 %v2779_v4  ;;  %v2743_v49 = vmax.f32 %v2445_v36, 0.0 }
 0x32d   : > { %v2297_v29 = vpop.f32.mrf.mxu0  ;;  %3131 = vmatmul.mubr.bf16.gmra.mxu1 %v2778_v62 }
 0x32e   : > { %v2449_v53 = vadd.f32 %v5965_v24, %v2294_v2  ;;  %v2744_v10 = vmax.f32 %v2448_v3, 0.0  ;;  %v2298_v19 = vadd.f32 %v2297_v29, %v5920_v38 }
 0x32f   : > { %v2299_v54 = vpop.f32.mrf.mxu0 }
 0x330   : > { %v2745_v33 = vmax.f32 %v2449_v53, 0.0  ;;  %v2300_v30 = vadd.f32 %v2299_v54, %v5923_v8  ;;  %v2780_v35 = vpack.c.bf16 %v2744_v10, %v2742_v31  ;;  %v2452_v63 = vadd.f32 %v5961_v20, %v2298_v19 }
 0x331   : > { %v2301_v51 = vpop.f32.mrf.mxu0 }
 0x332   : > { %v2302_v15 = vadd.f32 %v2301_v51, %v5929_v5  ;;  %v2781_v26 = vpack.c.bf16 %v2745_v33, %v2743_v49  ;;  %v2453_v1 = vadd.f32 %v5965_v24, %v2300_v30  ;;  %v2746_v52 = vmax.f32 %v2452_v63, 0.0 }
 0x333   : > { %v2303_v7 = vpop.f32.mrf.mxu0 }
 0x334   : > { %v2456_v39 = vadd.f32 %v5961_v20, %v2302_v15  ;;  %v2304_v32 = vadd.f32 %v2303_v7, %v5932_v11  ;;  %3140 = vmatprep.mubr.bf16.mxu1 %v2781_v26  ;;  %v2747_v56 = vmax.f32 %v2453_v1, 0.0 }
 0x335   : > { %v2307_v47 = vpop.f32.mrf.mxu0  ;;  %3141 = vmatmul.mubr.bf16.gmra.mxu1 %v2780_v35 }
 0x336   : > { %v2457_v8 = vadd.f32 %v5965_v24, %v2304_v32  ;;  %v2748_v38 = vmax.f32 %v2456_v39, 0.0  ;;  %v2308_v55 = vadd.f32 %v2307_v47, %v5938_v14 }
 0x337   : > { %v2309_v23 = vpop.f32.mrf.mxu0 }
 0x338   : > { %v2749_v5 = vmax.f32 %v2457_v8, 0.0  ;;  %v2310_v12 = vadd.f32 %v2309_v23, %v5941_v41  ;;  %v2782_v43 = vpack.c.bf16 %v2748_v38, %v2746_v52  ;;  %v2460_v41 = vadd.f32 %v5961_v20, %v2308_v55 }
 0x339   : > { %v2311_v28 = vpop.f32.mrf.mxu0 }
 0x33a   : > { %v2312_v27 = vadd.f32 %v2311_v28, %v5947_v18  ;;  %v2783_v11 = vpack.c.bf16 %v2749_v5, %v2747_v56  ;;  %v2461_v16 = vadd.f32 %v5965_v24, %v2310_v12  ;;  %v2750_v50 = vmax.f32 %v2460_v41, 0.0 }
 0x33b   : > { %v2313_v21 = vpop.f32.mrf.mxu0 }
 0x33c   : > { %v2464_v37 = vadd.f32 %v5961_v20, %v2312_v27  ;;  %v2314_v46 = vadd.f32 %v2313_v21, %v6429_v59  ;;  %3150 = vmatprep.mubr.bf16.mxu1 %v2783_v11  ;;  %v2751_v0 = vmax.f32 %v2461_v16, 0.0 }
 0x33d   : > { %3151 = vmatmul.mubr.bf16.gmra.mxu1 %v2782_v43 }
 0x33e   : > { %v2465_v14 = vadd.f32 %v5965_v24, %v2314_v46  ;;  %v2752_v18 = vmax.f32 %v2464_v37, 0.0 }
 0x340   : > { %v2753_v57 = vmax.f32 %v2465_v14, 0.0  ;;  %v2784_v44 = vpack.c.bf16 %v2752_v18, %v2750_v50 }
 0x342   : > { %v2785_v17 = vpack.c.bf16 %v2753_v57, %v2751_v0 }
 0x344   : > { %3160 = vmatprep.mubr.bf16.mxu1 %v2785_v17 }
 0x345   : > { %3161 = vmatmul.mubr.bf16.gmra.mxu1 %v2784_v44 }
 0x38d   : > { %v3012_v25 = vpop.f32.mrf.mxu1 }
 0x38f   : > { %v3014_v20 = vpop.f32.mrf.mxu1 }
 0x390   : > { %4575 = shalt.err (!%p4572_p5)
}
 0x391   : > { %s4576_s24 = scalar_lea.hbm %s6198_s21, 4096  ;;  %s4580_s20 = scalar_lea.hbm %s6301_s6, 8192 }
 0x392   : > { %p4577_p6 = scmp.ne.s32.totalorder %s6198_s21, %s4576_s24  ;;  %p4581_p10 = scmp.lt.s32.totalorder %s6198_s21, %s6301_s6 }
 0x393   : > { %p4582_p11 = scmp.lt.s32.totalorder %s4580_s20, %s4576_s24 }
 0x394   : > { %p4578_p7 = pnand %p4577_p6, %p4733_p4 }
 0x395   : > { %p4583_p12 = por %p4582_p11, %p4581_p10 }
 0x396   : > { %p4579_p9 = pneg %p4578_p7 }
 0x398   : > { %p4584_p13 = pnand %p4583_p12, %p4579_p9 }
 0x39a   : > { %4587 = shalt.err (!%p4584_p13)
}
 0x39b   : > { %s4646_s23 = smov 128   ;;  %s4647_s25 = smov 8   ;;  %v3016_v24 = vpop.f32.mrf.mxu1 }
 0x39c   : > { %4386 = dma.vmem_to_hbm [thread:$0]  (%p4733_p4), %s6200_s14, 4096, %s6198_s21, %s6204_s22, %s4646_s23, %s4646_s23, %s4647_s25   ;;  %v4146_v61 = vpack.c.bf16 %v3016_v24, %v3012_v25 }
 0x39d   : > { %s6430_s26 = sshll.u32 %s4752_s19, 7  ;;  %v3018_v13 = vpop.f32.mrf.mxu1 }
 0x39e   : > { %s6232_s11 = scalar_lea.vmem %s6302_s7, %s6430_s26  ;;  %s6431_s24 = smov %s6430_s26  ;;  %v4226_v34 = vpack.c.bf16 %v3018_v13, %v3014_v20 }
 0x39f   : > { %s6239_s0 = scalar_lea.vmem %s6303_s8, %s6431_s24  ;;  %4147 = vst [vmem:[%s6232_s11] sm:$0xff] %v4146_v61   ;;  %v3022_v6 = vpop.f32.mrf.mxu1 }
 0x3a0   : > { %4227 = vst [vmem:[%s6239_s0] sm:$0xff] %v4226_v34  }
 0x3a1   : > { %v3024_v40 = vpop.f32.mrf.mxu1 }
 0x3a3   : > { %v3026_v9 = vpop.f32.mrf.mxu1 }
 0x3a4   : > { %v4151_v58 = vpack.c.bf16 %v3026_v9, %v3022_v6 }
 0x3a5   : > { %v3028_v42 = vpop.f32.mrf.mxu1 }
 0x3a6   : > { %4303 = vst [vmem:[%s6232_s11 + $0x8] sm:$0xff] %v4151_v58   ;;  %v4231_v60 = vpack.c.bf16 %v3028_v42, %v3024_v40 }
 0x3a7   : > { %v3032_v45 = vpop.f32.mrf.mxu1 }
 0x3a8   : > { %4318 = vst [vmem:[%s6239_s0 + $0x8] sm:$0xff] %v4231_v60  }
 0x3a9   : > { %v3034_v4 = vpop.f32.mrf.mxu1 }
 0x3ab   : > { %v3036_v62 = vpop.f32.mrf.mxu1 }
 0x3ac   : > { %v4156_v22 = vpack.c.bf16 %v3036_v62, %v3032_v45 }
 0x3ad   : > { %v3038_v36 = vpop.f32.mrf.mxu1 }
 0x3ae   : > { %4304 = vst [vmem:[%s6232_s11 + $0x10] sm:$0xff] %v4156_v22   ;;  %v4236_v3 = vpack.c.bf16 %v3038_v36, %v3034_v4 }
 0x3af   : > { %v3042_v2 = vpop.f32.mrf.mxu1 }
 0x3b0   : > { %4319 = vst [vmem:[%s6239_s0 + $0x10] sm:$0xff] %v4236_v3  }
 0x3b1   : > { %v3044_v48 = vpop.f32.mrf.mxu1 }
 0x3b3   : > { %v3046_v29 = vpop.f32.mrf.mxu1 }
 0x3b4   : > { %v4161_v53 = vpack.c.bf16 %v3046_v29, %v3042_v2 }
 0x3b5   : > { %v3048_v10 = vpop.f32.mrf.mxu1 }
 0x3b6   : > { %4305 = vst [vmem:[%s6232_s11 + $0x18] sm:$0xff] %v4161_v53   ;;  %v4241_v54 = vpack.c.bf16 %v3048_v10, %v3044_v48 }
 0x3b7   : > { %v3052_v49 = vpop.f32.mrf.mxu1 }
 0x3b8   : > { %4320 = vst [vmem:[%s6239_s0 + $0x18] sm:$0xff] %v4241_v54  }
 0x3b9   : > { %v3054_v33 = vpop.f32.mrf.mxu1 }
 0x3bb   : > { %v3056_v30 = vpop.f32.mrf.mxu1 }
 0x3bc   : > { %v4166_v31 = vpack.c.bf16 %v3056_v30, %v3052_v49 }
 0x3bd   : > { %v3058_v19 = vpop.f32.mrf.mxu1 }
 0x3be   : > { %4306 = vst [vmem:[%s6232_s11 + $0x20] sm:$0xff] %v4166_v31   ;;  %v4246_v51 = vpack.c.bf16 %v3058_v19, %v3054_v33 }
 0x3bf   : > { %v3062_v15 = vpop.f32.mrf.mxu1 }
 0x3c0   : > { %4321 = vst [vmem:[%s6239_s0 + $0x20] sm:$0xff] %v4246_v51  }
 0x3c1   : > { %v3064_v26 = vpop.f32.mrf.mxu1 }
 0x3c3   : > { %v3066_v35 = vpop.f32.mrf.mxu1 }
 0x3c4   : > { %v4171_v7 = vpack.c.bf16 %v3066_v35, %v3062_v15 }
 0x3c5   : > { %v3068_v1 = vpop.f32.mrf.mxu1 }
 0x3c6   : > { %4307 = vst [vmem:[%s6232_s11 + $0x28] sm:$0xff] %v4171_v7   ;;  %v4251_v39 = vpack.c.bf16 %v3068_v1, %v3064_v26 }
 0x3c7   : > { %v3072_v32 = vpop.f32.mrf.mxu1 }
 0x3c8   : > { %4322 = vst [vmem:[%s6239_s0 + $0x28] sm:$0xff] %v4251_v39  }
 0x3c9   : > { %v3074_v63 = vpop.f32.mrf.mxu1 }
 0x3cb   : > { %v3076_v47 = vpop.f32.mrf.mxu1 }
 0x3cc   : > { %v4176_v8 = vpack.c.bf16 %v3076_v47, %v3072_v32 }
 0x3cd   : > { %v3078_v38 = vpop.f32.mrf.mxu1 }
 0x3ce   : > { %4308 = vst [vmem:[%s6232_s11 + $0x30] sm:$0xff] %v4176_v8   ;;  %v4256_v23 = vpack.c.bf16 %v3078_v38, %v3074_v63 }
 0x3cf   : > { %v3082_v56 = vpop.f32.mrf.mxu1 }
 0x3d0   : > { %4323 = vst [vmem:[%s6239_s0 + $0x30] sm:$0xff] %v4256_v23  }
 0x3d1   : > { %v3084_v5 = vpop.f32.mrf.mxu1 }
 0x3d3   : > { %v3086_v12 = vpop.f32.mrf.mxu1 }
 0x3d4   : > { %v4181_v52 = vpack.c.bf16 %v3086_v12, %v3082_v56 }
 0x3d5   : > { %v3088_v55 = vpop.f32.mrf.mxu1 }
 0x3d6   : > { %4309 = vst [vmem:[%s6232_s11 + $0x38] sm:$0xff] %v4181_v52   ;;  %v4261_v28 = vpack.c.bf16 %v3088_v55, %v3084_v5 }
 0x3d7   : > { %v3092_v27 = vpop.f32.mrf.mxu1 }
 0x3d8   : > { %4324 = vst [vmem:[%s6239_s0 + $0x38] sm:$0xff] %v4261_v28  }
 0x3d9   : > { %v3094_v11 = vpop.f32.mrf.mxu1 }
 0x3db   : > { %v3096_v43 = vpop.f32.mrf.mxu1 }
 0x3dc   : > { %v4186_v21 = vpack.c.bf16 %v3096_v43, %v3092_v27 }
 0x3dd   : > { %v3098_v16 = vpop.f32.mrf.mxu1 }
 0x3de   : > { %4310 = vst [vmem:[%s6232_s11 + $0x40] sm:$0xff] %v4186_v21   ;;  %v4266_v37 = vpack.c.bf16 %v3098_v16, %v3094_v11 }
 0x3df   : > { %v3102_v59 = vpop.f32.mrf.mxu1 }
 0x3e0   : > { %4325 = vst [vmem:[%s6239_s0 + $0x40] sm:$0xff] %v4266_v37  }
 0x3e1   : > { %v3104_v46 = vpop.f32.mrf.mxu1 }
 0x3e3   : > { %v3106_v41 = vpop.f32.mrf.mxu1 }
 0x3e4   : > { %v4191_v14 = vpack.c.bf16 %v3106_v41, %v3102_v59 }
 0x3e5   : > { %v3108_v18 = vpop.f32.mrf.mxu1 }
 0x3e6   : > { %4311 = vst [vmem:[%s6232_s11 + $0x48] sm:$0xff] %v4191_v14   ;;  %v4271_v0 = vpack.c.bf16 %v3108_v18, %v3104_v46 }
 0x3e7   : > { %v3112_v57 = vpop.f32.mrf.mxu1 }
 0x3e8   : > { %4326 = vst [vmem:[%s6239_s0 + $0x48] sm:$0xff] %v4271_v0  }
 0x3e9   : > { %v3114_v50 = vpop.f32.mrf.mxu1 }
 0x3eb   : > { %v3116_v17 = vpop.f32.mrf.mxu1 }
 0x3ec   : > { %v4196_v44 = vpack.c.bf16 %v3116_v17, %v3112_v57 }
 0x3ed   : > { %v3118_v25 = vpop.f32.mrf.mxu1 }
 0x3ee   : > { %4312 = vst [vmem:[%s6232_s11 + $0x50] sm:$0xff] %v4196_v44   ;;  %v4276_v20 = vpack.c.bf16 %v3118_v25, %v3114_v50 }
 0x3ef   : > { %v3122_v24 = vpop.f32.mrf.mxu1 }
 0x3f0   : > { %4327 = vst [vmem:[%s6239_s0 + $0x50] sm:$0xff] %v4276_v20  }
 0x3f1   : > { %v3124_v61 = vpop.f32.mrf.mxu1 }
 0x3f3   : > { %v3126_v13 = vpop.f32.mrf.mxu1 }
 0x3f4   : > { %v4201_v34 = vpack.c.bf16 %v3126_v13, %v3122_v24 }
 0x3f5   : > { %v3128_v6 = vpop.f32.mrf.mxu1 }
 0x3f6   : > { %4313 = vst [vmem:[%s6232_s11 + $0x58] sm:$0xff] %v4201_v34   ;;  %v4281_v40 = vpack.c.bf16 %v3128_v6, %v3124_v61 }
 0x3f7   : > { %v3132_v9 = vpop.f32.mrf.mxu1 }
 0x3f8   : > { %4328 = vst [vmem:[%s6239_s0 + $0x58] sm:$0xff] %v4281_v40  }
 0x3f9   : > { %v3134_v58 = vpop.f32.mrf.mxu1 }
 0x3fb   : > { %v3136_v42 = vpop.f32.mrf.mxu1 }
 0x3fc   : > { %v4206_v60 = vpack.c.bf16 %v3136_v42, %v3132_v9 }
 0x3fd   : > { %v3138_v45 = vpop.f32.mrf.mxu1 }
 0x3fe   : > { %4314 = vst [vmem:[%s6232_s11 + $0x60] sm:$0xff] %v4206_v60   ;;  %v4286_v4 = vpack.c.bf16 %v3138_v45, %v3134_v58 }
 0x3ff   : > { %v3142_v62 = vpop.f32.mrf.mxu1 }
 0x400   : > { %4329 = vst [vmem:[%s6239_s0 + $0x60] sm:$0xff] %v4286_v4  }
 0x401   : > { %v3144_v22 = vpop.f32.mrf.mxu1 }
 0x403   : > { %v3146_v36 = vpop.f32.mrf.mxu1 }
 0x404   : > { %v4211_v3 = vpack.c.bf16 %v3146_v36, %v3142_v62 }
 0x405   : > { %v3148_v2 = vpop.f32.mrf.mxu1 }
 0x406   : > { %4315 = vst [vmem:[%s6232_s11 + $0x68] sm:$0xff] %v4211_v3   ;;  %v4291_v48 = vpack.c.bf16 %v3148_v2, %v3144_v22 }
 0x407   : > { %v3152_v29 = vpop.f32.mrf.mxu1 }
 0x408   : > { %4330 = vst [vmem:[%s6239_s0 + $0x68] sm:$0xff] %v4291_v48  }
 0x409   : > { %v3154_v53 = vpop.f32.mrf.mxu1 }
 0x40b   : > { %v3156_v10 = vpop.f32.mrf.mxu1 }
 0x40c   : > { %v4216_v54 = vpack.c.bf16 %v3156_v10, %v3152_v29 }
 0x40d   : > { %v3158_v49 = vpop.f32.mrf.mxu1 }
 0x40e   : > { %4316 = vst [vmem:[%s6232_s11 + $0x70] sm:$0xff] %v4216_v54   ;;  %v4296_v33 = vpack.c.bf16 %v3158_v49, %v3154_v53 }
 0x40f   : > { %v3162_v30 = vpop.f32.mrf.mxu1 }
 0x410   : > { %4331 = vst [vmem:[%s6239_s0 + $0x70] sm:$0xff] %v4296_v33  }
 0x411   : > { %v3164_v31 = vpop.f32.mrf.mxu1 }
 0x413   : > { %v3166_v19 = vpop.f32.mrf.mxu1 }
 0x414   : > { %v4221_v51 = vpack.c.bf16 %v3166_v19, %v3162_v30 }
 0x415   : > { %v3168_v15 = vpop.f32.mrf.mxu1 }
 0x416   : > { %4317 = vst [vmem:[%s6232_s11 + $0x78] sm:$0xff] %v4221_v51   ;;  %v4301_v26 = vpack.c.bf16 %v3168_v15, %v3164_v31 }
 0x418   : > { %4332 = vst [vmem:[%s6239_s0 + $0x78] sm:$0xff] %v4301_v26  }
 0x419 PF: > { %p4392_p4 = scmp.ge.s32.totalorder %s4638_s10, 2  ;;  %s3549_s15 = sand.u32 1, %s4618_s27  }
 0x41a   : > { %s3550_s19 = scalar_lea.sflag [#allocation3], %s3549_s15 }
 0x41b   : > { %p4389_p0 = pnand %p4392_p4, %p4740_p8 }
 0x41d   : > { %p4390_p1 = pneg %p4389_p0 }
 0x41f   : > { %4613 = dma.done.wait (%p4390_p1), %s3550_s19, 4096  }
 0x420   : > { %4615 = vsyncadd (%p4390_p1), %s3550_s19, 4294963200  ;;  %s22_s10 = sadd.s32 1, %s4638_s10   ;;  %s6432_s27 = smov %s4622_s28 }
 0x421   : > { %p19_p2 = scmp.ge.s32.totalorder %s22_s10, 4   ;;  %s6433_s28 = smov %s4626_s29 }
 0x422   : > { %s6434_s29 = smov %s4746_s18  ;;  %s6435_s30 = smov %s4634_s9 }
 0x423   : > { %s6436_s9 = smov %s6438_s13  ;;  %21 = sbr.rel (!%p19_p2) target bundleno = 6 (0x6), region = 106 }
 0x428   :  { %3579 = vsyncpa [#allocation3], 1 }
 0x429   :  { %3581 = vsyncpa [#allocation3 + $0x1], 1 }

</bundles_post_ra>
